<compile_context>
chip_gen: v7x
topology: tpu7x:2x2x1
jax: 0.10.0
libtpu: 0.0.40
codegen_flags: <defaults>
</compile_context>

<pallas_src>
import jax
import jax.numpy as jnp
from jax.experimental import pallas as pl
from jax.experimental.pallas import tpu as pltpu

N = 1
C_IN = 448
C_MID = 56
H = W = 28
P = H * W                      # 784 flattened spatial positions
EPS = 1e-5
TILE_C = 112                   # output-channel tile (448 = 4 * 112, 112 % 8 == 0)


def se_block_kernel(x46_ref, x45_ref, w15t_ref, b15_ref, w16t_ref, b16_ref,
                    w17_ref, gamma_ref, beta_ref, out_ref):
    # ---- SE path on the pooled vector (tiny, ~50 KFLOP; recomputed per tile) ----
    x46 = x46_ref[...]                                                    # [1, C_IN]
    h = jnp.dot(x46, w15t_ref[...], preferred_element_type=jnp.float32)   # [1, C_MID]
    h = jnp.maximum(h + b15_ref[...], 0.0)                                # ReLU
    s = jnp.dot(h, w16t_ref[...], preferred_element_type=jnp.float32)     # [1, C_IN]
    s = jax.nn.sigmoid(s + b16_ref[...])

    # ---- fold the SE scale into this tile of w17:  w17 @ (s*x45) == (w17*s) @ x45 ----
    w17s = (w17_ref[...] * s).astype(jnp.bfloat16)                        # [TILE_C, C_IN]
    x45b = x45_ref[...].astype(jnp.bfloat16)                              # [C_IN, P]
    x52 = jnp.dot(w17s, x45b, preferred_element_type=jnp.float32)         # [TILE_C, P] f32

    # ---- BatchNorm2d, training mode: per-channel biased stats over P (lane reduce) ----
    inv_p = 1.0 / x52.shape[-1]
    mean = jnp.sum(x52, axis=-1, keepdims=True) * inv_p                   # [TILE_C, 1]
    d = x52 - mean
    var = jnp.sum(d * d, axis=-1, keepdims=True) * inv_p                  # biased variance
    inv = jax.lax.rsqrt(var + EPS)
    out_ref[...] = (d * inv) * gamma_ref[...] + beta_ref[...]
    # TODO(synk): running_mean / running_var updates (PyTorch training-mode side
    # effect) are not produced; this kernel returns only the forward output x53.


def se_block_forward(x46_nchw, x45_nchw, params):
    """x46_nchw: [N, C_IN, 1, 1], x45_nchw: [N, C_IN, H, W] (N must be 1)."""
    n, c, h, w = x45_nchw.shape
    assert n == N and c == C_IN and h == H and w == W

    # Free, contiguous reshapes (no HBM transpose passes).
    x45_cf = x45_nchw.reshape(C_IN, P)                  # [C_IN, P] channels-first
    x46_row = x46_nchw.reshape(1, C_IN)                 # [1, C_IN]

    # One-time (constant-foldable) weight prep in the wrapper: no in-kernel .T.
    w15_t = params["w15"].T                             # [C_IN, C_MID]
    w16_t = params["w16"].T                             # [C_MID, C_IN]
    b15_row = params["b15"].reshape(1, C_MID)
    b16_row = params["b16"].reshape(1, C_IN)
    gamma_col = params["gamma"].reshape(C_IN, 1)
    beta_col = params["beta"].reshape(C_IN, 1)

    n_tiles = C_IN // TILE_C

    cost = pl.CostEstimate(
        flops=2 * C_IN * C_IN * P + 4 * C_IN * C_MID,
        transcendentals=2 * C_IN,
        bytes_accessed=2 * C_IN * P * 4 + C_IN * C_IN * 4 + 2 * C_IN * C_MID * 4,
    )

    out_cf = pl.pallas_call(
        se_block_kernel,
        out_shape=jax.ShapeDtypeStruct((C_IN, P), jnp.float32),
        grid=(n_tiles,),
        in_specs=[
            pl.BlockSpec((1, C_IN), lambda i: (0, 0)),        # x46 (pooled vector)
            pl.BlockSpec((C_IN, P), lambda i: (0, 0)),        # x45, resident across tiles
            pl.BlockSpec((C_IN, C_MID), lambda i: (0, 0)),    # w15.T
            pl.BlockSpec((1, C_MID), lambda i: (0, 0)),       # b15
            pl.BlockSpec((C_MID, C_IN), lambda i: (0, 0)),    # w16.T
            pl.BlockSpec((1, C_IN), lambda i: (0, 0)),        # b16
            pl.BlockSpec((TILE_C, C_IN), lambda i: (i, 0)),   # w17 row tile
            pl.BlockSpec((TILE_C, 1), lambda i: (i, 0)),      # gamma (per out channel)
            pl.BlockSpec((TILE_C, 1), lambda i: (i, 0)),      # beta
        ],
        out_specs=pl.BlockSpec((TILE_C, P), lambda i: (i, 0)),
        compiler_params=pltpu.CompilerParams(
            dimension_semantics=("parallel",)),
        cost_estimate=cost,
    )(x46_row, x45_cf, w15_t, b15_row, w16_t, b16_row,
      params["w17"], gamma_col, beta_col)

    # Channels-first [C_IN, P] -> NCHW is a free reshape for N=1.
    return out_cf.reshape(N, C_IN, H, W)


def reference_forward(x46_nchw, x45_nchw, params):
    """Pure-JAX f32 reference mirroring the PyTorch module's math."""
    n, c, h, w = x45_nchw.shape
    x45_cf = x45_nchw.reshape(c, h * w)
    x46_row = x46_nchw.reshape(1, c)

    hmid = jnp.maximum(x46_row @ params["w15"].T + params["b15"].reshape(1, -1), 0.0)
    s = jax.nn.sigmoid(hmid @ params["w16"].T + params["b16"].reshape(1, -1))   # [1, C_IN]
    x51 = x45_cf * s.reshape(c, 1)                       # scale each input channel
    x52 = params["w17"] @ x51                            # [C_IN, P]
    mean = jnp.mean(x52, axis=-1, keepdims=True)
    var = jnp.mean((x52 - mean) ** 2, axis=-1, keepdims=True)
    y = (x52 - mean) * jax.lax.rsqrt(var + EPS) * params["gamma"].reshape(c, 1) \
        + params["beta"].reshape(c, 1)
    return y.reshape(n, c, h, w)


def init_params(key):
    ks = jax.random.split(key, 5)

    def u(k, shape, fan_in):
        bound = 1.0 / jnp.sqrt(fan_in)
        return jax.random.uniform(k, shape, jnp.float32, -bound, bound)

    return {
        "w15": u(ks[0], (C_MID, C_IN), C_IN),     # Conv2d(448->56, 1x1)
        "b15": u(ks[1], (C_MID,), C_IN),
        "w16": u(ks[2], (C_IN, C_MID), C_MID),    # Conv2d(56->448, 1x1)
        "b16": u(ks[3], (C_IN,), C_MID),
        "w17": u(ks[4], (C_IN, C_IN), C_IN),      # Conv2d(448->448, 1x1, bias=False)
        "gamma": jnp.ones((C_IN,), jnp.float32),  # BatchNorm2d affine init
        "beta": jnp.zeros((C_IN,), jnp.float32),
    }


if __name__ == "__main__":
    key = jax.random.PRNGKey(0)
    k45, k46, kp = jax.random.split(key, 3)

    x45 = jax.random.normal(k45, (N, C_IN, H, W), jnp.float32)   # feature map
    x46 = jax.random.normal(k46, (N, C_IN, 1, 1), jnp.float32)   # pooled SE input
    params = init_params(kp)

    out = jax.block_until_ready(se_block_forward(x46, x45, params))
    ref = jax.block_until_ready(reference_forward(x46, x45, params))

    assert out.shape == (N, C_IN, H, W)
    assert jnp.allclose(out, ref, atol=2e-2, rtol=2e-2), "mismatch vs JAX reference"

    print("KERNEL_OK")
</pallas_src>

<mosaic_0001>
module attributes {stable_mosaic.version = 11 : i64} {
  func.func @se_block_kernel(%arg0: i32, %arg1: memref<1x448xf32, #tpu.memory_space<vmem>>, %arg2: memref<448x784xf32, #tpu.memory_space<vmem>>, %arg3: memref<448x56xf32, #tpu.memory_space<vmem>>, %arg4: memref<1x56xf32, #tpu.memory_space<vmem>>, %arg5: memref<56x448xf32, #tpu.memory_space<vmem>>, %arg6: memref<1x448xf32, #tpu.memory_space<vmem>>, %arg7: memref<112x448xf32, #tpu.memory_space<vmem>>, %arg8: memref<112x1xf32, #tpu.memory_space<vmem>>, %arg9: memref<112x1xf32, #tpu.memory_space<vmem>>, %arg10: memref<112x784xf32, #tpu.memory_space<vmem>>) attributes {dimension_semantics = [#tpu.dimension_semantics<parallel>], iteration_bounds = array<i64: 4>, scalar_prefetch = 0 : i64, scratch_operands = 0 : i64, tpu.core_type = #tpu.core_type<tc>, window_params = [{pipeline_mode = #tpu.pipeline_mode<synchronous>, transform_indices = @transform_0, window_bounds = array<i64: 1, 448>}, {pipeline_mode = #tpu.pipeline_mode<synchronous>, transform_indices = @transform_1, window_bounds = array<i64: 448, 784>}, {pipeline_mode = #tpu.pipeline_mode<synchronous>, transform_indices = @transform_2, window_bounds = array<i64: 448, 56>}, {pipeline_mode = #tpu.pipeline_mode<synchronous>, transform_indices = @transform_3, window_bounds = array<i64: 1, 56>}, {pipeline_mode = #tpu.pipeline_mode<synchronous>, transform_indices = @transform_4, window_bounds = array<i64: 56, 448>}, {pipeline_mode = #tpu.pipeline_mode<synchronous>, transform_indices = @transform_5, window_bounds = array<i64: 1, 448>}, {transform_indices = @transform_6, window_bounds = array<i64: 112, 448>}, {transform_indices = @transform_7, window_bounds = array<i64: 112, 1>}, {transform_indices = @transform_8, window_bounds = array<i64: 112, 1>}, {transform_indices = @transform_9, window_bounds = array<i64: 112, 784>}]} {
    %c0 = arith.constant 0 : index
    %c0_0 = arith.constant 0 : index
    %0 = vector.load %arg1[%c0, %c0_0] : memref<1x448xf32, #tpu.memory_space<vmem>>, vector<1x448xf32>
    %c0_1 = arith.constant 0 : index
    %c0_2 = arith.constant 0 : index
    %1 = vector.load %arg3[%c0_1, %c0_2] : memref<448x56xf32, #tpu.memory_space<vmem>>, vector<448x56xf32>
    %cst = arith.constant dense<0.000000e+00> : vector<1x56xf32>
    %2 = tpu.matmul %0, %1, %cst {dimension_numbers = #tpu.dot_dimension_numbers<[1], [0], [0], [1], [0, 0, 1, 1], [], []>} : vector<1x448xf32>, vector<448x56xf32>, vector<1x56xf32> -> vector<1x56xf32>
    %c0_3 = arith.constant 0 : index
    %c0_4 = arith.constant 0 : index
    %3 = vector.load %arg4[%c0_3, %c0_4] : memref<1x56xf32, #tpu.memory_space<vmem>>, vector<1x56xf32>
    %4 = arith.addf %2, %3 : vector<1x56xf32>
    %cst_5 = arith.constant 0.000000e+00 : f32
    %5 = vector.broadcast %cst_5 : f32 to vector<1x56xf32>
    %6 = arith.maximumf %4, %5 : vector<1x56xf32>
    %c0_6 = arith.constant 0 : index
    %c0_7 = arith.constant 0 : index
    %7 = vector.load %arg5[%c0_6, %c0_7] : memref<56x448xf32, #tpu.memory_space<vmem>>, vector<56x448xf32>
    %cst_8 = arith.constant dense<0.000000e+00> : vector<1x448xf32>
    %8 = tpu.matmul %6, %7, %cst_8 {dimension_numbers = #tpu.dot_dimension_numbers<[1], [0], [0], [1], [0, 0, 1, 1], [], []>} : vector<1x56xf32>, vector<56x448xf32>, vector<1x448xf32> -> vector<1x448xf32>
    %c0_9 = arith.constant 0 : index
    %c0_10 = arith.constant 0 : index
    %9 = vector.load %arg6[%c0_9, %c0_10] : memref<1x448xf32, #tpu.memory_space<vmem>>, vector<1x448xf32>
    %10 = arith.addf %8, %9 : vector<1x448xf32>
    %11 = arith.negf %10 : vector<1x448xf32>
    %12 = math.exp %11 : vector<1x448xf32>
    %cst_11 = arith.constant 1.000000e+00 : f32
    %13 = vector.broadcast %cst_11 : f32 to vector<1x448xf32>
    %14 = arith.addf %13, %12 : vector<1x448xf32>
    %15 = arith.divf %13, %14 : vector<1x448xf32>
    %c0_12 = arith.constant 0 : index
    %c0_13 = arith.constant 0 : index
    %16 = vector.load %arg7[%c0_12, %c0_13] : memref<112x448xf32, #tpu.memory_space<vmem>>, vector<112x448xf32>
    %17 = vector.broadcast %15 : vector<1x448xf32> to vector<112x448xf32>
    %18 = arith.mulf %16, %17 : vector<112x448xf32>
    %19 = arith.truncf %18 : vector<112x448xf32> to vector<112x448xbf16>
    %c0_14 = arith.constant 0 : index
    %c0_15 = arith.constant 0 : index
    %20 = vector.load %arg2[%c0_14, %c0_15] : memref<448x784xf32, #tpu.memory_space<vmem>>, vector<448x784xf32>
    %21 = arith.truncf %20 : vector<448x784xf32> to vector<448x784xbf16>
    %cst_16 = arith.constant dense<0.000000e+00> : vector<112x784xf32>
    %22 = tpu.matmul %19, %21, %cst_16 {dimension_numbers = #tpu.dot_dimension_numbers<[1], [0], [0], [1], [0, 0, 1, 1], [], []>} : vector<112x448xbf16>, vector<448x784xbf16>, vector<112x784xf32> -> vector<112x784xf32>
    %cst_17 = arith.constant dense<0.000000e+00> : vector<112xf32>
    %23 = vector.multi_reduction <add>, %22, %cst_17 [1] : vector<112x784xf32> to vector<112xf32>
    %24 = vector.shape_cast %23 : vector<112xf32> to vector<112x1xf32>
    %cst_18 = arith.constant 0.00127551018 : f32
    %25 = vector.broadcast %cst_18 : f32 to vector<112x1xf32>
    %26 = arith.mulf %24, %25 : vector<112x1xf32>
    %27 = vector.broadcast %26 : vector<112x1xf32> to vector<112x784xf32>
    %28 = arith.subf %22, %27 : vector<112x784xf32>
    %29 = arith.mulf %28, %28 : vector<112x784xf32>
    %cst_19 = arith.constant dense<0.000000e+00> : vector<112xf32>
    %30 = vector.multi_reduction <add>, %29, %cst_19 [1] : vector<112x784xf32> to vector<112xf32>
    %31 = vector.shape_cast %30 : vector<112xf32> to vector<112x1xf32>
    %cst_20 = arith.constant 0.00127551018 : f32
    %32 = vector.broadcast %cst_20 : f32 to vector<112x1xf32>
    %33 = arith.mulf %31, %32 : vector<112x1xf32>
    %cst_21 = arith.constant 9.99999974E-6 : f32
    %34 = vector.broadcast %cst_21 : f32 to vector<112x1xf32>
    %35 = arith.addf %33, %34 : vector<112x1xf32>
    %36 = math.rsqrt %35 : vector<112x1xf32>
    %37 = vector.broadcast %36 : vector<112x1xf32> to vector<112x784xf32>
    %38 = arith.mulf %28, %37 : vector<112x784xf32>
    %c0_22 = arith.constant 0 : index
    %c0_23 = arith.constant 0 : index
    %39 = vector.load %arg8[%c0_22, %c0_23] : memref<112x1xf32, #tpu.memory_space<vmem>>, vector<112x1xf32>
    %40 = vector.broadcast %39 : vector<112x1xf32> to vector<112x784xf32>
    %41 = arith.mulf %38, %40 : vector<112x784xf32>
    %c0_24 = arith.constant 0 : index
    %c0_25 = arith.constant 0 : index
    %42 = vector.load %arg9[%c0_24, %c0_25] : memref<112x1xf32, #tpu.memory_space<vmem>>, vector<112x1xf32>
    %43 = vector.broadcast %42 : vector<112x1xf32> to vector<112x784xf32>
    %44 = arith.addf %41, %43 : vector<112x784xf32>
    %c0_26 = arith.constant 0 : index
    %c0_27 = arith.constant 0 : index
    %45 = vector.load %arg10[%c0_26, %c0_27] : memref<112x784xf32, #tpu.memory_space<vmem>>, vector<112x784xf32>
    tpu.vector_store %arg10[%c0_26, %c0_27], %44 {strides = array<i32>} : memref<112x784xf32, #tpu.memory_space<vmem>>, vector<112x784xf32>,
    return
  }
  func.func @transform_0(%arg0: i32) -> (i32, i32) {
    %c0_i32 = arith.constant 0 : i32
    %c0_i32_0 = arith.constant 0 : i32
    %c0_i32_1 = arith.constant 0 : i32
    return %c0_i32, %c0_i32_0 : i32, i32
  }
  func.func @transform_1(%arg0: i32) -> (i32, i32) {
    %c0_i32 = arith.constant 0 : i32
    %c0_i32_0 = arith.constant 0 : i32
    %c0_i32_1 = arith.constant 0 : i32
    return %c0_i32, %c0_i32_0 : i32, i32
  }
  func.func @transform_2(%arg0: i32) -> (i32, i32) {
    %c0_i32 = arith.constant 0 : i32
    %c0_i32_0 = arith.constant 0 : i32
    %c0_i32_1 = arith.constant 0 : i32
    return %c0_i32, %c0_i32_0 : i32, i32
  }
  func.func @transform_3(%arg0: i32) -> (i32, i32) {
    %c0_i32 = arith.constant 0 : i32
    %c0_i32_0 = arith.constant 0 : i32
    %c0_i32_1 = arith.constant 0 : i32
    return %c0_i32, %c0_i32_0 : i32, i32
  }
  func.func @transform_4(%arg0: i32) -> (i32, i32) {
    %c0_i32 = arith.constant 0 : i32
    %c0_i32_0 = arith.constant 0 : i32
    %c0_i32_1 = arith.constant 0 : i32
    return %c0_i32, %c0_i32_0 : i32, i32
  }
  func.func @transform_5(%arg0: i32) -> (i32, i32) {
    %c0_i32 = arith.constant 0 : i32
    %c0_i32_0 = arith.constant 0 : i32
    %c0_i32_1 = arith.constant 0 : i32
    return %c0_i32, %c0_i32_0 : i32, i32
  }
  func.func @transform_6(%arg0: i32) -> (i32, i32) {
    %c0_i32 = arith.constant 0 : i32
    %c0_i32_0 = arith.constant 0 : i32
    return %arg0, %c0_i32 : i32, i32
  }
  func.func @transform_7(%arg0: i32) -> (i32, i32) {
    %c0_i32 = arith.constant 0 : i32
    %c0_i32_0 = arith.constant 0 : i32
    return %arg0, %c0_i32 : i32, i32
  }
  func.func @transform_8(%arg0: i32) -> (i32, i32) {
    %c0_i32 = arith.constant 0 : i32
    %c0_i32_0 = arith.constant 0 : i32
    return %arg0, %c0_i32 : i32, i32
  }
  func.func @transform_9(%arg0: i32) -> (i32, i32) {
    %c0_i32 = arith.constant 0 : i32
    %c0_i32_0 = arith.constant 0 : i32
    return %arg0, %c0_i32 : i32, i32
  }
}

</mosaic_0001>

<bundles_post_ra>
// kernel: tpu_custom_call.1
= control target key start
LH: loop header
LB: loop body
LE: loop exit
PB: predicated region body
PF: predicated region fallthrough
CT: control target
= control target key end

     0   :  { %s6755_s0 = inlined_call_operand.hbm [shape: f32[1,448], index: 0, kind: input, shape index: {}]   ;;  %s6756_s1 = inlined_call_operand.hbm [shape: f32[448,784], index: 1, kind: input, shape index: {}]   ;;  %s6757_s2 = inlined_call_operand.vmem [shape: f32[448,56], index: 2, kind: input, shape index: {}]   ;;  %s6758_s3 = inlined_call_operand.hbm [shape: f32[1,56], index: 3, kind: input, shape index: {}]   ;;  %s6759_s4 = inlined_call_operand.hbm [shape: f32[56,448], index: 4, kind: input, shape index: {}]   ;;  %s6760_s5 = inlined_call_operand.hbm [shape: f32[1,448], index: 5, kind: input, shape index: {}]   ;;  %s6761_s6 = inlined_call_operand.hbm [shape: f32[448,448], index: 6, kind: input, shape index: {}]   ;;  %s6762_s7 = inlined_call_operand.vmem [shape: f32[448,1], index: 7, kind: input, shape index: {}]   ;;  %s6763_s8 = inlined_call_operand.vmem [shape: f32[448,1], index: 8, kind: input, shape index: {}]   ;;  %s6764_s9 = inlined_call_operand.hbm [shape: f32[448,784], index: 9, kind: output, shape index: {}]  }
   0x1   :  { %6898 = sst [smem:[#allocation100_spill]] %s6755_s0 }
   0x2   :  { %6899 = sst [smem:[#allocation101_spill]] %s6756_s1 }
   0x3   :  { %6900 = sst [smem:[#allocation102_spill]] %s6764_s9 }
   0x4   :  { %14 = vsyncpa [#allocation3], 0 }
   0x5   :  { %15 = vsyncpa [#allocation6], 0 }
   0x6   :  { %16 = vsyncpa [#allocation9], 0 }
   0x7   :  { %17 = vsyncpa [#allocation12], 0 }
   0x8   :  { %19 = vsyncpa [#allocation12 + $0x1], 0 }
   0x9   :  { %20 = vsyncpa [#allocation4], 0 }
   0xa   :  { %22 = vsyncpa [#allocation4 + $0x1], 0  ;;  %s4497_s30 = smov 0   ;;  %s4499_s10 = smov 0  }
   0xb   :  { %s4501_s11 = smov 0   ;;  %s4503_s12 = smov 0  }
   0xc LB: > { %s4431_s13 = smov [#allocation5]   ;;  %s4518_s15 = sadd.s32 4294967295, %s4429_s12   ;;  %s4429_s12 = sphi %s4503_s12, %s7180_s12   ;;  %s4425_s11 = sphi %s4501_s11, %s7179_s11   ;;  %s4421_s10 = sphi %s4499_s10, %s7178_s10   ;;  %s4417_s30 = sphi %s4497_s30, %s7177_s30  }
   0xd   : > { %s286_s14 = sshll.u32 %s4431_s13, 4  ;;  %p3697_p0 = scmp.ge.s32.totalorder %s4429_s12, 1  ;;  %s4523_s14 = int_to_ptr.vmem [resolvable:$true] %s286_s14 }
   0xe   : > { %p6766_p1 = scmp.eq.s32.totalorder %s4518_s15, 0  ;;  %p263_p2 = scmp.lt.s32.totalorder %s4429_s12, 5 }
   0xf   : > { %s4432_s17 = smov [#allocation8]   ;;  %s4433_s20 = smov [#allocation2]  }
  0x10   : > { %p4525_p3 = pnand %p3697_p0, %p263_p2  ;;  %s313_s18 = sshll.u32 %s4432_s17, 4  ;;  %s4537_s18 = int_to_ptr.vmem [resolvable:$true] %s313_s18 }
  0x11   : > { %s4539_s21 = sshll.u32 %s4433_s20, 4  ;;  %s6903_s1 = sld [smem:[#allocation101_spill]]  ;;  %s277_s21 = int_to_ptr.vmem [resolvable:$true] %s4539_s21 }
  0x12   : > { %s6901_s16 = scalar_select %p4525_p3, 1, 0 }
  0x13   : > { %p4052_p4 = pneg %p4525_p3 }
  0x15   : > { %p4533_p5 = pnand %p4052_p4, %p6766_p1 }
  0x17   : > { %s4181_s24 = scalar_lea.hbm %s6903_s1, 50176  ;;  %p4549_p7 = pneg %p4533_p5 }
  0x18   : > { %p4182_p6 = scmp.ne.s32.totalorder %s6903_s1, %s4181_s24  ;;  %p4188_p10 = scmp.lt.u32.totalorder %s4181_s24, %s6903_s1 }
  0x1a   : > { %p4184_p8 = pnand %p4549_p7, %p4182_p6 }
  0x1c   : > { %p4185_p9 = pneg %p4184_p8 }
  0x1e   : > { %p4190_p11 = pnand %p4188_p10, %p4185_p9 }
  0x20   : > { %4193 = shalt.err (!%p4190_p11)
}
  0x21   : > { %s4194_s13 = scalar_lea.vmem %s4523_s14, 50176  ;;  %p4202_p2 = scmp.lt.s32.totalorder %s4523_s14, %s4523_s14 }
  0x22   : > { %p4195_p12 = scmp.ne.s32.totalorder %s4523_s14, %s4194_s13  ;;  %p4203_p4 = scmp.lt.s32.totalorder %s4194_s13, %s4194_s13 }
  0x24   : > { %p4197_p13 = pnand %p4195_p12, %p4549_p7  ;;  %p4204_p6 = por %p4203_p4, %p4202_p2 }
  0x26   : > { %p4198_p0 = pneg %p4197_p13 }
  0x28   : > { %p4205_p8 = pnand %p4204_p6, %p4198_p0 }
  0x2a   : > { %4208 = shalt.err (!%p4205_p8)
}
  0x2b   : > { %s4434_s17 = smov 896   ;;  %s4435_s20 = smov 56  }
  0x2c   : > { %4058 = dma.hbm_to_vmem [thread:$0]  (!%p4533_p5), %s6903_s1, 50176, %s4523_s14, [#allocation6], %s4434_s17, %s4434_s17, %s4435_s20  }
  0x2d   : > { %s4209_s26 = scalar_lea.hbm %s6759_s4, 3584 }
  0x2e   : > { %p4210_p9 = scmp.ne.s32.totalorder %s6759_s4, %s4209_s26  ;;  %p4216_p12 = scmp.lt.u32.totalorder %s4209_s26, %s6759_s4 }
  0x30   : > { %p4212_p10 = pnand %p4210_p9, %p4549_p7 }
  0x32   : > { %p4213_p11 = pneg %p4212_p10 }
  0x34   : > { %p4218_p13 = pnand %p4216_p12, %p4213_p11 }
  0x36   : > { %4221 = shalt.err (!%p4218_p13)
}
  0x37   : > { %s4222_s14 = scalar_lea.vmem %s4537_s18, 3584  ;;  %p4230_p6 = scmp.lt.s32.totalorder %s4537_s18, %s4537_s18 }
  0x38   : > { %p4223_p0 = scmp.ne.s32.totalorder %s4537_s18, %s4222_s14  ;;  %p4231_p8 = scmp.lt.s32.totalorder %s4222_s14, %s4222_s14 }
  0x3a   : > { %p4225_p2 = pnand %p4223_p0, %p4549_p7  ;;  %p4232_p9 = por %p4231_p8, %p4230_p6 }
  0x3c   : > { %p4226_p4 = pneg %p4225_p2 }
  0x3e   : > { %p4233_p10 = pnand %p4232_p9, %p4226_p4 }
  0x40   : > { %4236 = shalt.err (!%p4233_p10)
}
  0x41   : > { %s6768_s17 = smov 512   ;;  %s6769_s9 = smov 32  }
  0x42   : > { %4064 = dma.hbm_to_vmem [thread:$0]  (!%p4533_p5), %s6759_s4, 3584, %s4537_s18, [#allocation9], %s6768_s17, %s6768_s17, %s6769_s9  }
  0x43   : > { %s6905_s0 = sld [smem:[#allocation100_spill]] }
  0x49   : > { %s4237_s25 = scalar_lea.hbm %s6905_s0, 64 }
  0x4a   : > { %p4238_p11 = scmp.ne.s32.totalorder %s6905_s0, %s4237_s25  ;;  %p4244_p0 = scmp.lt.u32.totalorder %s4237_s25, %s6905_s0 }
  0x4c   : > { %p4240_p12 = pnand %p4238_p11, %p4549_p7 }
  0x4e   : > { %p4241_p13 = pneg %p4240_p12 }
  0x50   : > { %p4246_p2 = pnand %p4244_p0, %p4241_p13 }
  0x52   : > { %4249 = shalt.err (!%p4246_p2)
}
  0x53   : > { %s4250_s14 = scalar_lea.vmem %s277_s21, 64  ;;  %p4258_p9 = scmp.lt.s32.totalorder %s277_s21, %s277_s21 }
  0x54   : > { %p4251_p4 = scmp.ne.s32.totalorder %s277_s21, %s4250_s14  ;;  %p4259_p10 = scmp.lt.s32.totalorder %s4250_s14, %s4250_s14 }
  0x56   : > { %p4253_p6 = pnand %p4251_p4, %p4549_p7  ;;  %p4260_p1 = por %p4259_p10, %p4258_p9 }
  0x58   : > { %p4254_p8 = pneg %p4253_p6 }
  0x5a   : > { %p4261_p3 = pnand %p4260_p1, %p4254_p8 }
  0x5c   : > { %4264 = shalt.err (!%p4261_p3)
}
  0x5d   : > { %4055 = dma.hbm_to_vmem [thread:$0]  (!%p4533_p5), %s6905_s0, 64, %s277_s21, [#allocation3]  }
  0x5e   : > { %s4438_s22 = smov [#allocation7]   ;;  %s4439_s24 = smov [#allocation10]  }
  0x5f   : > { %s303_s23 = sshll.u32 %s4438_s22, 4  ;;  %s327_s25 = sshll.u32 %s4439_s24, 4  ;;  %s304_s23 = int_to_ptr.vmem [resolvable:$true] %s303_s23  ;;  %s328_s25 = int_to_ptr.vmem [resolvable:$true] %s327_s25 }
  0x60   : > { %s4265_s29 = scalar_lea.hbm %s6758_s3, 16 }
  0x61   : > { %p4266_p1 = scmp.ne.s32.totalorder %s6758_s3, %s4265_s29  ;;  %p4272_p12 = scmp.lt.u32.totalorder %s4265_s29, %s6758_s3 }
  0x63   : > { %p4268_p3 = pnand %p4266_p1, %p4549_p7 }
  0x65   : > { %p4269_p11 = pneg %p4268_p3 }
  0x67   : > { %p4274_p13 = pnand %p4272_p12, %p4269_p11 }
  0x69   : > { %4277 = shalt.err (!%p4274_p13)
}
  0x6a   : > { %s4278_s21 = scalar_lea.vmem %s304_s23, 16  ;;  %s4285_s20 = scalar_lea.vmem %s304_s23, 32 }
  0x6b   : > { %p4279_p0 = scmp.ne.s32.totalorder %s304_s23, %s4278_s21  ;;  %p4286_p6 = scmp.lt.s32.totalorder %s304_s23, %s304_s23 }
  0x6c   : > { %p4287_p8 = scmp.lt.s32.totalorder %s4285_s20, %s4278_s21 }
  0x6d   : > { %p4281_p2 = pnand %p4279_p0, %p4549_p7 }
  0x6e   : > { %p4288_p9 = por %p4287_p8, %p4286_p6 }
  0x6f   : > { %p4282_p4 = pneg %p4281_p2 }
  0x71   : > { %p4289_p10 = pnand %p4288_p9, %p4282_p4 }
  0x73   : > { %4292 = shalt.err (!%p4289_p10)
}
  0x74   : > { %4061 = dma.hbm_to_vmem [thread:$0]  (!%p4533_p5), %s6758_s3, 16, %s304_s23, [#allocation6]  }
  0x75   : > { %s4293_s28 = scalar_lea.hbm %s6760_s5, 64 }
  0x76   : > { %p4294_p1 = scmp.ne.s32.totalorder %s6760_s5, %s4293_s28  ;;  %p4300_p12 = scmp.lt.u32.totalorder %s4293_s28, %s6760_s5 }
  0x78   : > { %p4296_p3 = pnand %p4294_p1, %p4549_p7 }
  0x7a   : > { %p4297_p11 = pneg %p4296_p3 }
  0x7c   : > { %p4302_p13 = pnand %p4300_p12, %p4297_p11 }
  0x7e   : > { %4305 = shalt.err (!%p4302_p13)
}
  0x7f   : > { %s4306_s21 = scalar_lea.vmem %s328_s25, 64  ;;  %p4314_p6 = scmp.lt.s32.totalorder %s328_s25, %s328_s25 }
  0x80   : > { %p4307_p0 = scmp.ne.s32.totalorder %s328_s25, %s4306_s21  ;;  %p4315_p8 = scmp.lt.s32.totalorder %s4306_s21, %s4306_s21 }
  0x82   : > { %p4309_p2 = pnand %p4307_p0, %p4549_p7  ;;  %p4316_p9 = por %p4315_p8, %p4314_p6 }
  0x84   : > { %p4310_p4 = pneg %p4309_p2 }
  0x86   : > { %p4317_p10 = pnand %p4316_p9, %p4310_p4 }
  0x88   : > { %4320 = shalt.err (!%p4317_p10)
}
  0x89   : > { %4067 = dma.hbm_to_vmem [thread:$0]  (!%p4533_p5), %s6760_s5, 64, %s328_s25, [#allocation9]  }
  0x8a   : > { %s3696_s27 = sadd.s32 4294967294, %s4429_s12   ;;  %s4653_s19 = sadd.s32 1, %s4429_s12  }
  0x8b   : > { %s161_s22 = sadd.s32 1, %s4425_s11  ;;  %s158_s24 = ssub.s32 %s4429_s12, %s4653_s19 }
  0x8c   : > { %p168_p7 = scmp.ne.s32.totalorder %s4425_s11, %s4421_s10  ;;  %p159_p1 = scmp.eq.s32.totalorder %s158_s24, 0 }
  0x8d   : > { %p169_p3 = scmp.eq.s32.totalorder %s4429_s12, 0  ;;  %p174_p11 = scmp.ne.s32.totalorder %s4421_s10, %s4417_s30 }
  0x8e   : > { %p250_p12 = scmp.eq.s32.totalorder %s4518_s15, 3  ;;  %p6906_p0 = scmp.eq.s32.totalorder %s4518_s15, 0 }
  0x8f   : > { %s4665_s17 = scalar_select %p159_p1, %s4425_s11, %s161_s22  }
  0x90   : > { %p170_p13 = por %p169_p3, %p168_p7  ;;  %p4669_p2 = por %p6906_p0, %p174_p11 }
  0x91   : > { %p4673_p5 = por %p250_p12, %p168_p7  ;;  %p256_p4 = scmp.eq.s32.totalorder %s3696_s27, 3 }
  0x92   : > { %p4081_p6 = scmp.lt.s32.totalorder %s4429_s12, 4  ;;  %s338_s28 = sand.u32 1, %s4425_s11  }
  0x93   : > { %s6908_s25 = scalar_select %p4673_p5, 1, 0 }
  0x94   : > { %p4679_p8 = por %p256_p4, %p174_p11  ;;  %s4024_s13 = smul.u32 448, %s338_s28 }
  0x95   : > { %p4683_p9 = pnand %p4081_p6, %p170_p13  ;;  %s3754_s18 = smul.u32 7168, %s4429_s12 }
  0x96   : > { %s6909_s29 = scalar_select %p4679_p8, 1, 0 }
  0x97   : > { %s4691_s20 = scalar_lea.hbm %s6761_s6, %s3754_s18  ;;  %s342_s27 = scalar_lea.vmem [#allocation11], %s4024_s13 }
  0x98   : > { %s350_s22 = sshll.u32 %s342_s27, 4  ;;  %s4695_s24 = scalar_lea.sflag [#allocation12], %s338_s28  ;;  %s4693_s22 = int_to_ptr.vmem [resolvable:$true] %s350_s22 }
  0x99   : > { %s4321_s9 = scalar_lea.hbm %s4691_s20, 7168  ;;  %p4323_p7 = pneg %p4683_p9 }
  0x9a   : > { %p4322_p10 = scmp.ne.s32.totalorder %s4691_s20, %s4321_s9  ;;  %s4326_s23 = scalar_lea.hbm %s6761_s6, 28672 }
  0x9b   : > { %p4327_p11 = scmp.lt.u32.totalorder %s4691_s20, %s6761_s6  ;;  %p4328_p12 = scmp.lt.u32.totalorder %s4326_s23, %s4321_s9 }
  0x9c   : > { %p4324_p1 = pnand %p4323_p7, %p4322_p10  ;;  %p4330_p0 = scmp.lt.u32.totalorder %s4321_s9, %s4691_s20 }
  0x9d   : > { %p4329_p13 = por %p4328_p12, %p4327_p11 }
  0x9e   : > { %p4325_p3 = pneg %p4324_p1 }
  0x9f   : > { %p4331_p4 = por %p4330_p0, %p4329_p13 }
  0xa1   : > { %p4332_p6 = pnand %p4331_p4, %p4325_p3 }
  0xa3   : > { %4335 = shalt.err (!%p4332_p6)
}
  0xa4   : > { %s4336_s28 = scalar_lea.vmem %s4693_s22, 7168  ;;  %s4440_s13 = smov [#allocation11]  }
  0xa5   : > { %p4337_p10 = scmp.ne.s32.totalorder %s4693_s22, %s4336_s28  ;;  %s4341_s27 = sshll.u32 %s4440_s13, 4  ;;  %s4342_s27 = int_to_ptr.vmem [resolvable:$false] %s4341_s27 }
  0xa6   : > { %s4343_s0 = scalar_lea.vmem %s4342_s27, 14336  ;;  %p4344_p5 = scmp.lt.s32.totalorder %s4693_s22, %s4342_s27 }
  0xa7   : > { %p4339_p1 = pnand %p4337_p10, %p4323_p7  ;;  %p4345_p11 = scmp.lt.s32.totalorder %s4343_s0, %s4336_s28 }
  0xa9   : > { %p4340_p8 = pneg %p4339_p1  ;;  %p4346_p12 = por %p4345_p11, %p4344_p5 }
  0xab   : > { %p4347_p13 = pnand %p4346_p12, %p4340_p8 }
  0xad   : > { %4350 = shalt.err (!%p4347_p13)
}
  0xae   : > { %s6911_s1 = smov 32   ;;  %s6912_s9 = smov 512  }
  0xaf   : > { %4071 = dma.hbm_to_vmem [thread:$0]  (!%p4683_p9), %s4691_s20, 7168, %s4693_s22, %s4695_s24, %s6912_s9, %s6912_s9, %s6911_s1  }
  0xb0   : > { %p6913_p7 = scmp.ne.s32.totalorder %s6901_s16, 0 }
  0xb2   : > { %380 = sbr.rel (%p6913_p7) target bundleno = 1531 (0x5fb), region = 56 }
  0xb9   : > { %p6914_p3 = scmp.eq.s32.totalorder %s4518_s15, 0 }
  0xbb   : > { %4396 = dma.done.wait (%p6914_p3), [#allocation3], 64   ;;  %p6915_p0 = pmov %p6914_p3 }
  0xbd   : > { %4398 = vsyncadd (%p6915_p0), [#allocation3], 4294967232  ;;  %p6916_p5 = pmov %p6915_p0 }
  0xbe   : > { %p6917_p8 = pmov %p6915_p0 }
  0xbf   : > { %4400 = dma.done.wait (%p6916_p5), [#allocation6], 50192  }
  0xc0   : > { %4402 = vsyncadd (%p6917_p8), [#allocation6], 4294917104  ;;  %p6918_p4 = pmov %p6915_p0 }
  0xc1   : > { %p6919_p9 = pmov %p6915_p0 }
  0xc2   : > { %4404 = dma.done.wait (%p6918_p4), [#allocation9], 3648  }
  0xc3   : > { %4406 = vsyncadd (%p6919_p9), [#allocation9], 4294963648  ;;  %s4741_s16 = sand.u32 1, %s4421_s10  }
  0xc4   : > { %s4025_s14 = smul.u32 448, %s4741_s16  ;;  %s403_s20 = scalar_lea.sflag [#allocation12], %s4741_s16 }
  0xc6   : > { %s4745_s22 = scalar_lea.vmem [#allocation11], %s4025_s14 }
  0xc7   : > { %4408 = dma.done.wait (%p4669_p2), %s403_s20, 7168  }
  0xc8   : > { %4410 = vsyncadd (%p4669_p2), %s403_s20, 4294960128  ;;  %v4441_v0 = vmov 0.0|0.0   ;;  %v499_v1 = vld [vmem:[%s6757_s2 + $0x100] sm:$0xff]  ;;  %v500_v2 = vld [vmem:[%s6757_s2 + $0x108] sm:$0xff]  ;;  %v525_v23 = vlaneseq  ;;  %vm544_vm0 = vcmask 523264   ;;  %vm738_vm1 = vcmask 457728  }
  0xc9   : > { %3880 = vmatprep.subr.bf16.mxu1 %v4441_v0  ;;  %v501_v3 = vld [vmem:[%s6757_s2 + $0x110] sm:$0xff]  ;;  %v3881_v4 = vpack.c.bf16 %v500_v2, %v499_v1  ;;  %v502_v5 = vld [vmem:[%s6757_s2 + $0x118] sm:$0xff]  ;;  %v483_v6 = vld [vmem:[%s6757_s2 + $0x80] sm:$0xff]  ;;  %vm2474_vm2 = vcmask 130048   ;;  %s4026_s21 = smul.u32 784, %s4741_s16  ;;  %s7174_s0 = sld [smem:[#allocation102_spill]] }
  0xca   : > { %v484_v7 = vld [vmem:[%s6757_s2 + $0x88] sm:$0xff]  ;;  %v467_v8 = vld [vmem:[%s6757_s2] sm:$0xff]  ;;  %v3884_v9 = vpack.c.bf16 %v502_v5, %v501_v3  ;;  %v485_v15 = vld [vmem:[%s6757_s2 + $0x90] sm:$0xff]  ;;  %v4820_v33 = vshrl.u32 %v525_v23, 7  ;;  %s4087_s28 = smul.u32 12544, %s4518_s15  ;;  %p7175_p10 = scmp.ne.s32.totalorder %s6908_s25, 0 }
  0xcb   : > { %3882 = vmatpush1.bf16.msra.mxu1 %v3881_v4  ;;  %v503_v10 = vld [vmem:[%s6757_s2 + $0x120] sm:$0xff]  ;;  %v504_v11 = vld [vmem:[%s6757_s2 + $0x128] sm:$0xff]  ;;  %v3848_v12 = vpack.c.bf16 %v484_v7, %v483_v6  ;;  %v486_v16 = vld [vmem:[%s6757_s2 + $0x98] sm:$0xff]  ;;  %s6333_s23 = scalar_lea.vmem [#allocation13], %s4026_s21  ;;  %s4444_s9 = smov [#allocation13]  }
  0xcc   : > { %v468_v13 = vld [vmem:[%s6757_s2 + $0x8] sm:$0xff]  ;;  %3883 = vmatprep.subr.bf16.mxu1 %v4441_v0  ;;  %v469_v17 = vld [vmem:[%s6757_s2 + $0x10] sm:$0xff]  ;;  %v3852_v18 = vpack.c.bf16 %v486_v16, %v485_v15  ;;  %v470_v19 = vld [vmem:[%s6757_s2 + $0x18] sm:$0xff]  ;;  %v3887_v24 = vpack.c.bf16 %v504_v11, %v503_v10  ;;  %v531_v43 = vsub.s32 1, %v4820_v33  ;;  %v539_v44 = vsub.s32 3, %v4820_v33  ;;  %s3549_s13 = sshll.u32 %s6333_s23, 4  ;;  %s6704_s13 = int_to_ptr.vmem [resolvable:$true] %s3549_s13 }
  0xcd   : > { %v3850_v14 = vpack.c.bf16 %v468_v13, %v467_v8  ;;  %3849 = vmatprep.subr.bf16.mxu0 %v3848_v12  ;;  %v3854_v20 = vpack.c.bf16 %v470_v19, %v469_v17  ;;  %v487_v21 = vld [vmem:[%s6757_s2 + $0xa0] sm:$0xff]  ;;  %v488_v22 = vld [vmem:[%s6757_s2 + $0xa8] sm:$0xff]  ;;  %v505_v25 = vld [vmem:[%s6757_s2 + $0x130] sm:$0xff]  ;;  %s4351_s1 = scalar_lea.vmem %s6704_s13, 12544 }
  0xce   : > { %v3856_v26 = vpack.c.bf16 %v488_v22, %v487_v21  ;;  %v471_v27 = vld [vmem:[%s6757_s2 + $0x20] sm:$0xff]  ;;  %v472_v28 = vld [vmem:[%s6757_s2 + $0x28] sm:$0xff]  ;;  %v506_v29 = vld [vmem:[%s6757_s2 + $0x138] sm:$0xff]  ;;  %p4352_p6 = scmp.ne.s32.totalorder %s6704_s13, %s4351_s1 }
  0xcf   : > { %3851 = vmatpush3.bf16.msra.mxu0 %v3850_v14  ;;  %3885 = vmatpush1.bf16.msra.mxu1 %v3884_v9  ;;  %v489_v30 = vld [vmem:[%s6757_s2 + $0xb0] sm:$0xff]  ;;  %v490_v31 = vld [vmem:[%s6757_s2 + $0xb8] sm:$0xff]  ;;  %v3858_v32 = vpack.c.bf16 %v472_v28, %v471_v27  ;;  %v3890_v34 = vpack.c.bf16 %v506_v29, %v505_v25  ;;  %v507_v35 = vld [vmem:[%s6757_s2 + $0x140] sm:$0xff] }
  0xd0   : > { %3853 = vmatprep.subr.bf16.mxu0 %v3852_v18  ;;  %3886 = vmatprep.subr.bf16.mxu1 %v4441_v0  ;;  %v3860_v36 = vpack.c.bf16 %v490_v31, %v489_v30  ;;  %v473_v37 = vld [vmem:[%s6757_s2 + $0x30] sm:$0xff]  ;;  %v474_v38 = vld [vmem:[%s6757_s2 + $0x38] sm:$0xff]  ;;  %v508_v39 = vld [vmem:[%s6757_s2 + $0x148] sm:$0xff]  ;;  %p4353_p1 = pnand %p4352_p6, %p7175_p10 }
  0xd1   : > { %v491_v40 = vld [vmem:[%s6757_s2 + $0xc0] sm:$0xff]  ;;  %v492_v41 = vld [vmem:[%s6757_s2 + $0xc8] sm:$0xff]  ;;  %v3862_v42 = vpack.c.bf16 %v474_v38, %v473_v37  ;;  %v3893_v45 = vpack.c.bf16 %v508_v39, %v507_v35  ;;  %v509_v46 = vld [vmem:[%s6757_s2 + $0x150] sm:$0xff]  ;;  %v535_v37 = vsub.s32 2, %v4820_v33 }
  0xd2   : > { %v3864_v47 = vpack.c.bf16 %v492_v41, %v491_v40  ;;  %v475_v48 = vld [vmem:[%s6757_s2 + $0x40] sm:$0xff]  ;;  %v476_v49 = vld [vmem:[%s6757_s2 + $0x48] sm:$0xff]  ;;  %v510_v50 = vld [vmem:[%s6757_s2 + $0x158] sm:$0xff]  ;;  %p4354_p11 = pneg %p4353_p1 }
  0xd3   : > { %3855 = vmatpush3.bf16.msra.mxu0 %v3854_v20  ;;  %3888 = vmatpush1.bf16.msra.mxu1 %v3887_v24  ;;  %v493_v51 = vld [vmem:[%s6757_s2 + $0xd0] sm:$0xff]  ;;  %v494_v52 = vld [vmem:[%s6757_s2 + $0xd8] sm:$0xff]  ;;  %v4862_v53 = vld [vmem:[#allocation2] sm:$0xf]  ;;  %v3866_v54 = vpack.c.bf16 %v476_v49, %v475_v48  ;;  %v3896_v57 = vpack.c.bf16 %v510_v50, %v509_v46  ;;  %v4923_v20 = vsub.s32 0, %v4820_v33 }
  0xd4   : > { %3857 = vmatprep.subr.bf16.mxu0 %v3856_v26  ;;  %3889 = vmatprep.subr.bf16.mxu1 %v4441_v0  ;;  %v532_v55 = vrot.slane %v4862_v53, %v531_v43  ;;  %v540_v56 = vrot.slane %v4862_v53, %v539_v44  ;;  %v511_v58 = vld [vmem:[%s6757_s2 + $0x160] sm:$0xff]  ;;  %v3868_v59 = vpack.c.bf16 %v494_v52, %v493_v51  ;;  %v477_v60 = vld [vmem:[%s6757_s2 + $0x50] sm:$0xff]  ;;  %v478_v61 = vld [vmem:[%s6757_s2 + $0x58] sm:$0xff] }
  0xd5   : > { %v512_v62 = vld [vmem:[%s6757_s2 + $0x168] sm:$0xff]  ;;  %v495_v63 = vld [vmem:[%s6757_s2 + $0xe0] sm:$0xff]  ;;  %v3870_v2 = vpack.c.bf16 %v478_v61, %v477_v60  ;;  %v513_v4 = vld [vmem:[%s6757_s2 + $0x170] sm:$0xff]  ;;  %v528_v28 = vrot.slane %v4862_v53, %v4923_v20  ;;  %v536_v39 = vrot.slane %v4862_v53, %v535_v37 }
  0xd6   : > { %v496_v1 = vld [vmem:[%s6757_s2 + $0xe8] sm:$0xff]  ;;  %611 = vmatprep.mubr.f32.mxu0 %v532_v55  ;;  %3714 = vmatprep.mubr.msk.f32.mxu1 %vm544_vm0, %v540_v56  ;;  %v3899_v3 = vpack.c.bf16 %v512_v62, %v511_v58  ;;  %v479_v6 = vld [vmem:[%s6757_s2 + $0x60] sm:$0xff]  ;;  %v514_v8 = vld [vmem:[%s6757_s2 + $0x178] sm:$0xff]  ;;  %v4442_v58 = vmov 0.0  }
  0xd7   : > { %3859 = vmatpush3.bf16.msra.mxu0 %v3858_v32  ;;  %3891 = vmatpush1.bf16.msra.mxu1 %v3890_v34  ;;  %v3872_v5 = vpack.c.bf16 %v496_v1, %v495_v63  ;;  %v480_v7 = vld [vmem:[%s6757_s2 + $0x68] sm:$0xff]  ;;  %v497_v9 = vld [vmem:[%s6757_s2 + $0xf0] sm:$0xff]  ;;  %v498_v10 = vld [vmem:[%s6757_s2 + $0xf8] sm:$0xff]  ;;  %v3902_v12 = vpack.c.bf16 %v514_v8, %v513_v4 }
  0xd8   : > { %3861 = vmatprep.subr.bf16.mxu0 %v3860_v36  ;;  %3892 = vmatprep.subr.bf16.mxu1 %v4441_v0  ;;  %v3874_v11 = vpack.c.bf16 %v480_v7, %v479_v6  ;;  %v515_v13 = vld [vmem:[%s6757_s2 + $0x180] sm:$0xff]  ;;  %v3876_v14 = vpack.c.bf16 %v498_v10, %v497_v9  ;;  %v481_v15 = vld [vmem:[%s6757_s2 + $0x70] sm:$0xff]  ;;  %v482_v16 = vld [vmem:[%s6757_s2 + $0x78] sm:$0xff] }
  0xd9   : > { %v516_v17 = vld [vmem:[%s6757_s2 + $0x188] sm:$0xff]  ;;  %v3878_v21 = vpack.c.bf16 %v482_v16, %v481_v15  ;;  %v517_v26 = vld [vmem:[%s6757_s2 + $0x190] sm:$0xff]  ;;  %v518_v27 = vld [vmem:[%s6757_s2 + $0x198] sm:$0xff] }
  0xda   : > { %v689_v18 = vld [vmem:[#allocation8 + $0x8] sm:$0xff]  ;;  %v3905_v22 = vpack.c.bf16 %v516_v17, %v515_v13  ;;  %v688_v24 = vld [vmem:[#allocation8] sm:$0xff]  ;;  %v3908_v30 = vpack.c.bf16 %v518_v27, %v517_v26  ;;  %v522_v36 = vld [vmem:[%s6757_s2 + $0x1b8] sm:$0xff] }
  0xdb   : > { %3863 = vmatpush3.bf16.msra.mxu0 %v3862_v42  ;;  %3894 = vmatpush1.bf16.msra.mxu1 %v3893_v45  ;;  %v693_v19 = vld [vmem:[#allocation8 + $0x28] sm:$0xff]  ;;  %v692_v25 = vld [vmem:[#allocation8 + $0x20] sm:$0xff]  ;;  %v691_v53 = vld [vmem:[#allocation8 + $0x18] sm:$0xff] }
  0xdc   : > { %3865 = vmatprep.subr.bf16.mxu0 %v3864_v47  ;;  %3895 = vmatprep.subr.bf16.mxu1 %v4441_v0  ;;  %v3916_v23 = vpack.c.bf16 %v693_v19, %v689_v18  ;;  %v3918_v29 = vpack.c.bf16 %v692_v25, %v688_v24  ;;  %v519_v31 = vld [vmem:[%s6757_s2 + $0x1a0] sm:$0xff]  ;;  %v520_v32 = vld [vmem:[%s6757_s2 + $0x1a8] sm:$0xff]  ;;  %v521_v35 = vld [vmem:[%s6757_s2 + $0x1b0] sm:$0xff] }
  0xdd   : > { %v3911_v34 = vpack.c.bf16 %v520_v32, %v519_v31  ;;  %v3914_v38 = vpack.c.bf16 %v522_v36, %v521_v35  ;;  %v697_v40 = vld [vmem:[#allocation8 + $0x48] sm:$0xff]  ;;  %v696_v45 = vld [vmem:[#allocation8 + $0x40] sm:$0xff]  ;;  %v695_v55 = vld [vmem:[#allocation8 + $0x38] sm:$0xff] }
  0xde   : > { %v701_v41 = vld [vmem:[#allocation8 + $0x68] sm:$0xff]  ;;  %v700_v46 = vld [vmem:[#allocation8 + $0x60] sm:$0xff]  ;;  %v1071_v63 = vld [vmem:[#allocation5 + $0x38] sm:$0xff] }
  0xdf   : > { %3867 = vmatpush3.bf16.msra.mxu0 %v3866_v54  ;;  %3897 = vmatpush1.bf16.msra.mxu1 %v3896_v57  ;;  %v3920_v42 = vpack.c.bf16 %v701_v41, %v697_v40  ;;  %v705_v47 = vld [vmem:[#allocation8 + $0x88] sm:$0xff]  ;;  %v3922_v48 = vpack.c.bf16 %v700_v46, %v696_v45  ;;  %v704_v50 = vld [vmem:[#allocation8 + $0x80] sm:$0xff]  ;;  %v3928_v57 = vpack.c.bf16 %v695_v55, %v691_v53  ;;  %v1127_v25 = vld [vmem:[#allocation5 + $0x1f8] sm:$0xff] }
  0xe0   : > { %3869 = vmatprep.subr.bf16.mxu0 %v3868_v59  ;;  %3898 = vmatprep.subr.bf16.mxu1 %v4441_v0  ;;  %v709_v49 = vld [vmem:[#allocation8 + $0xa8] sm:$0xff]  ;;  %v708_v51 = vld [vmem:[#allocation8 + $0xa0] sm:$0xff]  ;;  %v1135_v27 = vld [vmem:[#allocation5 + $0x238] sm:$0xff] }
  0xe1   : > { %v3924_v52 = vpack.c.bf16 %v709_v49, %v705_v47  ;;  %v713_v54 = vld [vmem:[#allocation8 + $0xc8] sm:$0xff]  ;;  %v712_v56 = vld [vmem:[#allocation8 + $0xc0] sm:$0xff]  ;;  %v523_v46 = vld [vmem:[#allocation7] sm:$0x1] }
  0xe2   : > { %v1065_v59 = vld [vmem:[#allocation5 + $0x8] sm:$0xff]  ;;  %v1072_v60 = vld [vmem:[#allocation5 + $0x40] sm:$0xff]  ;;  %v1114_v15 = vld [vmem:[#allocation5 + $0x190] sm:$0xff] }
  0xe3   : > { %3871 = vmatpush3.bf16.msra.mxu0 %v3870_v2  ;;  %3900 = vmatpush1.bf16.msra.mxu1 %v3899_v3  ;;  %v1457_v61 = vpack.c.bf16 %v1072_v60, %v1065_v59  ;;  %v1064_v62 = vld [vmem:[#allocation5] sm:$0xff]  ;;  %v1079_v2 = vld [vmem:[#allocation5 + $0x78] sm:$0xff]  ;;  %v1086_v3 = vld [vmem:[#allocation5 + $0xb0] sm:$0xff] }
  0xe4   : > { %3873 = vmatprep.subr.bf16.mxu0 %v3872_v5  ;;  %3901 = vmatprep.subr.bf16.mxu1 %v4441_v0  ;;  %v1456_v1 = vpack.c.bf16 %v1071_v63, %v1064_v62  ;;  %v1464_v4 = vpack.c.bf16 %v1086_v3, %v1079_v2  ;;  %v1078_v5 = vld [vmem:[#allocation5 + $0x70] sm:$0xff]  ;;  %v1085_v6 = vld [vmem:[#allocation5 + $0xa8] sm:$0xff]  ;;  %v1100_v9 = vld [vmem:[#allocation5 + $0x120] sm:$0xff] }
  0xe5   : > { %v1463_v7 = vpack.c.bf16 %v1085_v6, %v1078_v5  ;;  %v1093_v8 = vld [vmem:[#allocation5 + $0xe8] sm:$0xff]  ;;  %v1106_v17 = vld [vmem:[#allocation5 + $0x150] sm:$0xff]  ;;  %v1120_v24 = vld [vmem:[#allocation5 + $0x1c0] sm:$0xff] }
  0xe6   : > { %v1471_v10 = vpack.c.bf16 %v1100_v9, %v1093_v8  ;;  %v1113_v18 = vld [vmem:[#allocation5 + $0x188] sm:$0xff]  ;;  %v1484_v26 = vpack.c.bf16 %v1127_v25, %v1120_v24  ;;  %v1156_v35 = vld [vmem:[#allocation5 + $0x2e0] sm:$0xff]  ;;  %v694_v49 = vld [vmem:[#allocation8 + $0x30] sm:$0xff] }
  0xe7   : > { %3875 = vmatpush3.bf16.msra.mxu0 %v3874_v11  ;;  %3903 = vmatpush1.bf16.msra.mxu1 %v3902_v12  ;;  %v1092_v11 = vld [vmem:[#allocation5 + $0xe0] sm:$0xff]  ;;  %v1099_v12 = vld [vmem:[#allocation5 + $0x118] sm:$0xff]  ;;  %v1477_v19 = vpack.c.bf16 %v1113_v18, %v1106_v17  ;;  %v1141_v31 = vld [vmem:[#allocation5 + $0x268] sm:$0xff] }
  0xe8   : > { %3877 = vmatprep.subr.bf16.mxu0 %v3876_v14  ;;  %3904 = vmatprep.subr.bf16.mxu1 %v4441_v0  ;;  %v1470_v13 = vpack.c.bf16 %v1099_v12, %v1092_v11  ;;  %v1107_v14 = vld [vmem:[#allocation5 + $0x158] sm:$0xff]  ;;  %v1074_v6 = vld [vmem:[#allocation5 + $0x50] sm:$0xff]  ;;  %v1073_v8 = vld [vmem:[#allocation5 + $0x48] sm:$0xff] }
  0xe9   : > { %v1478_v16 = vpack.c.bf16 %v1114_v15, %v1107_v14  ;;  %v702_v59 = vld [vmem:[#allocation8 + $0x70] sm:$0xff]  ;;  %v707_v60 = vld [vmem:[#allocation8 + $0x98] sm:$0xff]  ;;  %v1081_v9 = vld [vmem:[#allocation5 + $0x88] sm:$0xff] }
  0xea   : > { %v710_v2 = vld [vmem:[#allocation8 + $0xb0] sm:$0xff]  ;;  %v1080_v14 = vld [vmem:[#allocation5 + $0x80] sm:$0xff]  ;;  %v1337_v33 = vld [vmem:[#allocation5 + $0x888] sm:$0xff] }
  0xeb   : > { %3879 = vmatpush3.bf16.msra.mxu0 %v3878_v21  ;;  %3906 = vmatpush1.bf16.msra.mxu1 %v3905_v22  ;;  %v1121_v21 = vld [vmem:[#allocation5 + $0x1c8] sm:$0xff]  ;;  %v1128_v22 = vld [vmem:[#allocation5 + $0x200] sm:$0xff]  ;;  %v1067_v5 = vld [vmem:[#allocation5 + $0x18] sm:$0xff] }
  0xec   : > { %3917 = vmatprep.subr.bf16.mxu0 %v3916_v23  ;;  %3907 = vmatprep.subr.bf16.mxu1 %v4441_v0  ;;  %v1485_v23 = vpack.c.bf16 %v1128_v22, %v1121_v21  ;;  %v714_v11 = vld [vmem:[#allocation8 + $0xd0] sm:$0xff]  ;;  %v1459_v12 = vpack.c.bf16 %v1074_v6, %v1067_v5  ;;  %v1101_v22 = vld [vmem:[#allocation5 + $0x128] sm:$0xff]  ;;  %v1116_v24 = vld [vmem:[#allocation5 + $0x1a0] sm:$0xff] }
  0xed   : > { %v1087_v15 = vld [vmem:[#allocation5 + $0xb8] sm:$0xff]  ;;  %v1102_v17 = vld [vmem:[#allocation5 + $0x130] sm:$0xff]  ;;  %v1176_v6 = vld [vmem:[#allocation5 + $0x380] sm:$0xff] }
  0xee   : > { %612 = vmatmul.mubr.f32.vlgmr.msra.gmra.mrb[0].mxu0 %v528_v28  ;;  %v1142_v28 = vld [vmem:[#allocation5 + $0x270] sm:$0xff]  ;;  %v1465_v18 = vpack.c.bf16 %v1087_v15, %v1080_v14  ;;  %v1193_v14 = vld [vmem:[#allocation5 + $0x408] sm:$0xff] }
  0xef   : > { %3919 = vmatpush1.bf16.msra.mxu0 %v3918_v29  ;;  %3909 = vmatpush1.bf16.msra.mxu1 %v3908_v30  ;;  %v1492_v29 = vpack.c.bf16 %v1142_v28, %v1135_v27  ;;  %v1134_v30 = vld [vmem:[#allocation5 + $0x230] sm:$0xff]  ;;  %v1108_v27 = vld [vmem:[#allocation5 + $0x160] sm:$0xff]  ;;  %v1115_v28 = vld [vmem:[#allocation5 + $0x198] sm:$0xff] }
  0xf0   : > { %3910 = vmatprep.subr.bf16.mxu1 %v4441_v0  ;;  %3921 = vmatprep.subr.bf16.mxu0 %v3920_v42  ;;  %v1491_v32 = vpack.c.bf16 %v1141_v31, %v1134_v30  ;;  %v1094_v21 = vld [vmem:[#allocation5 + $0xf0] sm:$0xff]  ;;  %v1479_v31 = vpack.c.bf16 %v1115_v28, %v1108_v27  ;;  %v1207_v27 = vld [vmem:[#allocation5 + $0x478] sm:$0xff] }
  0xf1   : > { %806 = vmatprep.mubr.f32.mxu0 %v4442_v58  ;;  %v1472_v25 = vpack.c.bf16 %v1101_v22, %v1094_v21  ;;  %v1130_v30 = vld [vmem:[#allocation5 + $0x210] sm:$0xff]  ;;  %v1192_v22 = vld [vmem:[#allocation5 + $0x400] sm:$0xff] }
  0xf2   : > { %v1186_v5 = vld [vmem:[#allocation5 + $0x3d0] sm:$0xff] }
  0xf3   : > { %3912 = vmatpush1.bf16.msra.mxu1 %v3911_v34  ;;  %3923 = vmatpush1.bf16.msra.mxu0 %v3922_v48  ;;  %v1149_v34 = vld [vmem:[#allocation5 + $0x2a8] sm:$0xff]  ;;  %v690_v48 = vld [vmem:[#allocation8 + $0x10] sm:$0xff] }
  0xf4   : > { %3913 = vmatprep.subr.bf16.mxu1 %v4441_v0  ;;  %v3926_v0 = vpack.c.bf16 %v708_v51, %v704_v50  ;;  %3925 = vmatprep.subr.bf16.mxu0 %v3924_v52  ;;  %v1499_v36 = vpack.c.bf16 %v1156_v35, %v1149_v34  ;;  %v699_v51 = vld [vmem:[#allocation8 + $0x58] sm:$0xff]  ;;  %v3930_v53 = vpack.c.bf16 %v694_v49, %v690_v48  ;;  %v1122_v34 = vld [vmem:[#allocation5 + $0x1d0] sm:$0xff]  ;;  %v1129_v35 = vld [vmem:[#allocation5 + $0x208] sm:$0xff] }
  0xf5   : > { %v703_v52 = vld [vmem:[#allocation8 + $0x78] sm:$0xff]  ;;  %v1150_v49 = vld [vmem:[#allocation5 + $0x2b0] sm:$0xff] }
  0xf7   : > { %3915 = vmatpush1.bf16.msra.mxu1 %v3914_v38  ;;  %3927 = vmatpush1.bf16.msra.mxu0 %v3926_v0  ;;  %v1148_v38 = vld [vmem:[#allocation5 + $0x2a0] sm:$0xff] }
  0xf8   : > { %754 = vmatprep.subr.mxu0 %v713_v54  ;;  %1673 = vmatprep.subr.bf16.mxu1 %v1457_v61  ;;  %v711_v61 = vld [vmem:[#allocation8 + $0xb8] sm:$0xff] }
  0xf9   : > { %v3936_v63 = vpack.c.bf16 %v711_v61, %v707_v60  ;;  %v1164_v61 = vld [vmem:[#allocation5 + $0x320] sm:$0xff] }
  0xfa   : > { %682 = vmatmul.mubr.f32.vlgmr.msra.gmra.mrb[0].mxu1 %v536_v39  ;;  %v1155_v39 = vld [vmem:[#allocation5 + $0x2d8] sm:$0xff] }
  0xfb   : > { %755 = vmatpush1.msra.mxu0 %v712_v56  ;;  %1674 = vmatpush1.bf16.msra.mxu1 %v1456_v1  ;;  %v1498_v40 = vpack.c.bf16 %v1155_v39, %v1148_v38  ;;  %v3932_v56 = vpack.c.bf16 %v703_v52, %v699_v51  ;;  %v706_v1 = vld [vmem:[#allocation8 + $0x90] sm:$0xff]  ;;  %v1144_v38 = vld [vmem:[#allocation5 + $0x280] sm:$0xff]  ;;  %v1486_v39 = vpack.c.bf16 %v1129_v35, %v1122_v34 }
  0xfc   : > { %3929 = vmatprep.subr.bf16.mxu0 %v3928_v57  ;;  %1675 = vmatprep.subr.bf16.mxu1 %v1464_v4  ;;  %v698_v57 = vld [vmem:[#allocation8 + $0x50] sm:$0xff]  ;;  %v3938_v3 = vpack.c.bf16 %v710_v2, %v706_v1  ;;  %v715_v4 = vld [vmem:[#allocation8 + $0xd8] sm:$0xff]  ;;  %v1177_v1 = vld [vmem:[#allocation5 + $0x388] sm:$0xff] }
  0xfd   : > { %v3934_v62 = vpack.c.bf16 %v702_v59, %v698_v57  ;;  %v1163_v52 = vld [vmem:[#allocation5 + $0x318] sm:$0xff]  ;;  %v1169_v57 = vld [vmem:[#allocation5 + $0x348] sm:$0xff]  ;;  %v1184_v2 = vld [vmem:[#allocation5 + $0x3c0] sm:$0xff] }
  0xfe   : > { %v1206_v35 = vld [vmem:[#allocation5 + $0x470] sm:$0xff] }
  0xff   : > { %1676 = vmatpush1.bf16.msra.mxu1 %v1463_v7  ;;  %v1066_v7 = vld [vmem:[#allocation5 + $0x10] sm:$0xff] }
 0x100   : > { %1677 = vmatprep.subr.bf16.mxu1 %v1471_v10  ;;  %v1088_v10 = vld [vmem:[#allocation5 + $0xc0] sm:$0xff] }
 0x103   : > { %1678 = vmatpush1.bf16.msra.mxu1 %v1470_v13  ;;  %v1458_v13 = vpack.c.bf16 %v1073_v8, %v1066_v7  ;;  %v1183_v7 = vld [vmem:[#allocation5 + $0x3b8] sm:$0xff] }
 0x104   : > { %1679 = vmatprep.subr.bf16.mxu1 %v1478_v16  ;;  %v1095_v16 = vld [vmem:[#allocation5 + $0xf8] sm:$0xff] }
 0x107   : > { %1680 = vmatpush1.bf16.msra.mxu1 %v1477_v19  ;;  %v1473_v19 = vpack.c.bf16 %v1102_v17, %v1095_v16  ;;  %v1200_v16 = vld [vmem:[#allocation5 + $0x440] sm:$0xff]  ;;  %v1190_v17 = vld [vmem:[#allocation5 + $0x3f0] sm:$0xff] }
 0x108   : > { %1681 = vmatprep.subr.bf16.mxu1 %v1485_v23  ;;  %v1109_v23 = vld [vmem:[#allocation5 + $0x168] sm:$0xff] }
 0x10b   : > { %1682 = vmatpush1.bf16.msra.mxu1 %v1484_v26  ;;  %v1480_v26 = vpack.c.bf16 %v1116_v24, %v1109_v23  ;;  %v1199_v23 = vld [vmem:[#allocation5 + $0x438] sm:$0xff] }
 0x10c   : > { %1683 = vmatprep.subr.bf16.mxu1 %v1492_v29  ;;  %v1123_v29 = vld [vmem:[#allocation5 + $0x1d8] sm:$0xff]  ;;  %v1521_v24 = vpack.c.bf16 %v1199_v23, %v1192_v22  ;;  %v1262_v23 = vld [vmem:[#allocation5 + $0x630] sm:$0xff] }
 0x10f   : > { %1684 = vmatpush1.bf16.msra.mxu1 %v1491_v32  ;;  %v1487_v32 = vpack.c.bf16 %v1130_v30, %v1123_v29  ;;  %v1214_v29 = vld [vmem:[#allocation5 + $0x4b0] sm:$0xff]  ;;  %v1204_v30 = vld [vmem:[#allocation5 + $0x460] sm:$0xff] }
 0x110   : > { %1685 = vmatprep.subr.bf16.mxu1 %v1499_v36  ;;  %v1137_v36 = vld [vmem:[#allocation5 + $0x248] sm:$0xff] }
 0x113   : > { %1686 = vmatpush1.bf16.msra.mxu1 %v1498_v40  ;;  %v1494_v40 = vpack.c.bf16 %v1144_v38, %v1137_v36  ;;  %v1213_v36 = vld [vmem:[#allocation5 + $0x4a8] sm:$0xff] }
 0x114   : > { %v1528_v38 = vpack.c.bf16 %v1213_v36, %v1206_v35  ;;  %v1276_v36 = vld [vmem:[#allocation5 + $0x6a0] sm:$0xff] }
 0x1c1   : > { %v3787_v41 = vpop.f32.mrb[0].mxu0 }
 0x1c2   : > { %v3788_v42 = vpop.f32.mrb[1].mxu0 }
 0x1c3   : > { %v3789_v45 = vadd.f32 %v3788_v42, %v3787_v41  ;;  %v1136_v41 = vld [vmem:[#allocation5 + $0x240] sm:$0xff]  ;;  %v1143_v42 = vld [vmem:[#allocation5 + $0x278] sm:$0xff] }
 0x1c5   : > { %v614_v47 = vadd.f32 %v3789_v45, %v523_v46  ;;  %v1151_v45 = vld [vmem:[#allocation5 + $0x2b8] sm:$0xff]  ;;  %v1158_v46 = vld [vmem:[#allocation5 + $0x2f0] sm:$0xff] }
 0x1c6   : > { %v1501_v48 = vpack.c.bf16 %v1158_v46, %v1151_v45  ;;  %v1228_v45 = vld [vmem:[#allocation5 + $0x520] sm:$0xff]  ;;  %v1218_v46 = vld [vmem:[#allocation5 + $0x4d0] sm:$0xff] }
 0x1cd   : > { %v683_v50 = vpop.f32.mrb[0].mxu1 }
 0x1ce   : > { %v684_v0 = vadd.f32 %v683_v50, %v614_v47  ;;  %v685_v54 = vpop.f32.mrb[1].mxu1  ;;  %v1493_v47 = vpack.c.bf16 %v1143_v42, %v1136_v41  ;;  %v1157_v50 = vld [vmem:[#allocation5 + $0x2e8] sm:$0xff] }
 0x1cf   : > { %v1500_v51 = vpack.c.bf16 %v1157_v50, %v1150_v49  ;;  %v1165_v54 = vld [vmem:[#allocation5 + $0x328] sm:$0xff]  ;;  %v1220_v50 = vld [vmem:[#allocation5 + $0x4e0] sm:$0xff] }
 0x1d0   : > { %v687_v55 = vmax.f32 %v684_v0, 0.0  ;;  %v1170_v0 = vld [vmem:[#allocation5 + $0x350] sm:$0xff]  ;;  %v1221_v41 = vld [vmem:[#allocation5 + $0x4e8] sm:$0xff] }
 0x1d2   : > { %3715 = vmatmul.mubr.msk.f32.vlgmr.msra.gmra.mrb[2].mxu0 %vm738_vm1, %v687_v55 }
 0x1d3   : > { %3931 = vmatpush1.bf16.msra.mxu0 %v3930_v53  ;;  %877 = vmatprep.mubr.f32.mxu0 %v4442_v58  ;;  %v1466_v58 = vpack.c.bf16 %v1088_v10, %v1081_v9  ;;  %v1506_v53 = vpack.c.bf16 %v1170_v0, %v1163_v52  ;;  %v1512_v9 = vpack.c.bf16 %v1183_v7, %v1176_v6  ;;  %v1178_v10 = vld [vmem:[#allocation5 + $0x390] sm:$0xff]  ;;  %v1233_v0 = vld [vmem:[#allocation5 + $0x548] sm:$0xff]  ;;  %v1256_v6 = vld [vmem:[#allocation5 + $0x600] sm:$0xff] }
 0x1d4   : > { %3933 = vmatprep.subr.bf16.mxu0 %v3932_v56  ;;  %v1162_v56 = vld [vmem:[#allocation5 + $0x310] sm:$0xff] }
 0x1d5   : > { %v1505_v60 = vpack.c.bf16 %v1169_v57, %v1162_v56  ;;  %1687 = vmatprep.subr.bf16.mxu1 %v1506_v53  ;;  %v1235_v53 = vld [vmem:[#allocation5 + $0x558] sm:$0xff]  ;;  %v1242_v56 = vld [vmem:[#allocation5 + $0x590] sm:$0xff]  ;;  %v1232_v57 = vld [vmem:[#allocation5 + $0x540] sm:$0xff] }
 0x1d6   : > { %v1246_v7 = vld [vmem:[#allocation5 + $0x5b0] sm:$0xff] }
 0x1d7   : > { %3935 = vmatpush1.bf16.msra.mxu0 %v3934_v62  ;;  %v1171_v62 = vld [vmem:[#allocation5 + $0x358] sm:$0xff]  ;;  %1688 = vmatpush1.bf16.msra.mxu1 %v1505_v60  ;;  %v1543_v60 = vpack.c.bf16 %v1242_v56, %v1235_v53 }
 0x1d8   : > { %3937 = vmatprep.subr.bf16.mxu0 %v3936_v63  ;;  %v1507_v63 = vpack.c.bf16 %v1171_v62, %v1164_v61  ;;  %v1234_v62 = vld [vmem:[#allocation5 + $0x550] sm:$0xff] }
 0x1db   : > { %3939 = vmatpush1.bf16.msra.mxu0 %v3938_v3  ;;  %v1179_v3 = vld [vmem:[#allocation5 + $0x398] sm:$0xff] }
 0x1dc   : > { %825 = vmatprep.subr.mxu0 %v715_v4  ;;  %v1513_v4 = vpack.c.bf16 %v1184_v2, %v1177_v1  ;;  %v1515_v8 = vpack.c.bf16 %v1186_v5, %v1179_v3  ;;  %v1247_v2 = vld [vmem:[#allocation5 + $0x5b8] sm:$0xff]  ;;  %v1254_v3 = vld [vmem:[#allocation5 + $0x5f0] sm:$0xff] }
 0x1dd   : > { %v1548_v5 = vpack.c.bf16 %v1254_v3, %v1247_v2 }
 0x1de   : > { %1689 = vmatprep.subr.bf16.mxu1 %v1513_v4  ;;  %v1249_v4 = vld [vmem:[#allocation5 + $0x5c8] sm:$0xff] }
 0x1df   : > { %826 = vmatpush1.msra.mxu0 %v714_v11  ;;  %v1185_v11 = vld [vmem:[#allocation5 + $0x3c8] sm:$0xff]  ;;  %1690 = vmatpush1.bf16.msra.mxu1 %v1512_v9  ;;  %v1550_v9 = vpack.c.bf16 %v1256_v6, %v1249_v4 }
 0x1e0   : > { %3716 = vmatmul.mubr.msk.f32.vlgmr.msra.gmra.mrb[4].mxu0 %vm738_vm1, %v687_v55  ;;  %1879 = vmatprep.subr.bf16.mxu0 %v1459_v12  ;;  %v1172_v55 = vld [vmem:[#allocation5 + $0x360] sm:$0xff]  ;;  %v1514_v12 = vpack.c.bf16 %v1185_v11, %v1178_v10  ;;  %v909_v4 = vld [vmem:[%s4745_s22 + $0x8] sm:$0xff] }
 0x1e1   : > { %1880 = vmatpush1.bf16.msra.mxu0 %v1458_v13  ;;  %v1508_v59 = vpack.c.bf16 %v1172_v55, %v1165_v54  ;;  %v1191_v13 = vld [vmem:[#allocation5 + $0x3f8] sm:$0xff]  ;;  %v1240_v54 = vld [vmem:[#allocation5 + $0x580] sm:$0xff]  ;;  %v917_v6 = vld [vmem:[%s4745_s22 + $0x48] sm:$0xff] }
 0x1e2   : > { %1881 = vmatprep.subr.bf16.mxu0 %v1466_v58  ;;  %v1198_v58 = vld [vmem:[#allocation5 + $0x430] sm:$0xff]  ;;  %v1541_v55 = vpack.c.bf16 %v1240_v54, %v1233_v0  ;;  %v1248_v11 = vld [vmem:[#allocation5 + $0x5c0] sm:$0xff] }
 0x1e3   : > { %v1520_v15 = vpack.c.bf16 %v1198_v58, %v1191_v13  ;;  %v1261_v58 = vld [vmem:[#allocation5 + $0x628] sm:$0xff] }
 0x1e5   : > { %1882 = vmatpush1.bf16.msra.mxu0 %v1465_v18  ;;  %v1197_v18 = vld [vmem:[#allocation5 + $0x428] sm:$0xff]  ;;  %1691 = vmatprep.subr.bf16.mxu1 %v1520_v15  ;;  %v1263_v15 = vld [vmem:[#allocation5 + $0x638] sm:$0xff] }
 0x1e6   : > { %1883 = vmatprep.subr.bf16.mxu0 %v1473_v19  ;;  %v1522_v19 = vpack.c.bf16 %v1200_v16, %v1193_v14  ;;  %v1519_v21 = vpack.c.bf16 %v1197_v18, %v1190_v17  ;;  %v1268_v14 = vld [vmem:[#allocation5 + $0x660] sm:$0xff]  ;;  %v1270_v17 = vld [vmem:[#allocation5 + $0x670] sm:$0xff] }
 0x1e7   : > { %v1555_v16 = vpack.c.bf16 %v1268_v14, %v1261_v58  ;;  %v1260_v18 = vld [vmem:[#allocation5 + $0x620] sm:$0xff] }
 0x1e8   : > { %1692 = vmatpush1.bf16.msra.mxu1 %v1519_v21  ;;  %v1557_v21 = vpack.c.bf16 %v1270_v17, %v1263_v15  ;;  %v1310_v17 = vld [vmem:[#allocation5 + $0x7b0] sm:$0xff] }
 0x1e9   : > { %1884 = vmatpush1.bf16.msra.mxu0 %v1472_v25  ;;  %v1205_v25 = vld [vmem:[#allocation5 + $0x468] sm:$0xff] }
 0x1ea   : > { %1885 = vmatprep.subr.bf16.mxu0 %v1480_v26  ;;  %v1212_v26 = vld [vmem:[#allocation5 + $0x4a0] sm:$0xff] }
 0x1eb   : > { %v1527_v28 = vpack.c.bf16 %v1212_v26, %v1205_v25  ;;  %v1275_v26 = vld [vmem:[#allocation5 + $0x698] sm:$0xff] }
 0x1ed   : > { %1886 = vmatpush1.bf16.msra.mxu0 %v1479_v31  ;;  %v1211_v31 = vld [vmem:[#allocation5 + $0x498] sm:$0xff]  ;;  %1693 = vmatprep.subr.bf16.mxu1 %v1527_v28  ;;  %v1277_v28 = vld [vmem:[#allocation5 + $0x6a8] sm:$0xff] }
 0x1ee   : > { %1887 = vmatprep.subr.bf16.mxu0 %v1487_v32  ;;  %v1529_v32 = vpack.c.bf16 %v1214_v29, %v1207_v27  ;;  %v1526_v34 = vpack.c.bf16 %v1211_v31, %v1204_v30  ;;  %v1282_v27 = vld [vmem:[#allocation5 + $0x6d0] sm:$0xff]  ;;  %v1284_v30 = vld [vmem:[#allocation5 + $0x6e0] sm:$0xff] }
 0x1ef   : > { %v1562_v29 = vpack.c.bf16 %v1282_v27, %v1275_v26  ;;  %v1274_v31 = vld [vmem:[#allocation5 + $0x690] sm:$0xff]  ;;  %v1305_v26 = vld [vmem:[#allocation5 + $0x788] sm:$0xff]  ;;  %v1312_v27 = vld [vmem:[#allocation5 + $0x7c0] sm:$0xff] }
 0x1f0   : > { %1694 = vmatpush1.bf16.msra.mxu1 %v1526_v34  ;;  %v1564_v34 = vpack.c.bf16 %v1284_v30, %v1277_v28  ;;  %v1302_v30 = vld [vmem:[#allocation5 + $0x770] sm:$0xff] }
 0x1f1   : > { %1888 = vmatpush1.bf16.msra.mxu0 %v1486_v39  ;;  %v1219_v39 = vld [vmem:[#allocation5 + $0x4d8] sm:$0xff] }
 0x1f2   : > { %1889 = vmatprep.subr.bf16.mxu0 %v1494_v40  ;;  %v1226_v40 = vld [vmem:[#allocation5 + $0x510] sm:$0xff] }
 0x1f3   : > { %v1534_v42 = vpack.c.bf16 %v1226_v40, %v1219_v39  ;;  %v1289_v40 = vld [vmem:[#allocation5 + $0x708] sm:$0xff] }
 0x1f5   : > { %1890 = vmatpush1.bf16.msra.mxu0 %v1493_v47  ;;  %v1225_v47 = vld [vmem:[#allocation5 + $0x508] sm:$0xff]  ;;  %1695 = vmatprep.subr.bf16.mxu1 %v1534_v42 }
 0x1f6   : > { %1891 = vmatprep.subr.bf16.mxu0 %v1501_v48  ;;  %v1536_v48 = vpack.c.bf16 %v1228_v45, %v1221_v41  ;;  %v1533_v49 = vpack.c.bf16 %v1225_v47, %v1218_v46  ;;  %v1296_v41 = vld [vmem:[#allocation5 + $0x740] sm:$0xff]  ;;  %v1291_v45 = vld [vmem:[#allocation5 + $0x718] sm:$0xff]  ;;  %v1298_v46 = vld [vmem:[#allocation5 + $0x750] sm:$0xff] }
 0x1f7   : > { %v1569_v42 = vpack.c.bf16 %v1296_v41, %v1289_v40  ;;  %v1571_v47 = vpack.c.bf16 %v1298_v46, %v1291_v45  ;;  %v1578_v40 = vpack.c.bf16 %v1312_v27, %v1305_v26  ;;  %v1304_v41 = vld [vmem:[#allocation5 + $0x780] sm:$0xff]  ;;  %v1351_v26 = vld [vmem:[#allocation5 + $0x8f8] sm:$0xff] }
 0x1f8   : > { %1696 = vmatpush1.bf16.msra.mxu1 %v1533_v49 }
 0x1f9   : > { %1892 = vmatpush1.bf16.msra.mxu0 %v1500_v51  ;;  %v1227_v51 = vld [vmem:[#allocation5 + $0x518] sm:$0xff]  ;;  %1697 = vmatprep.subr.bf16.mxu1 %v1541_v55 }
 0x1fa   : > { %1893 = vmatprep.subr.bf16.mxu0 %v1508_v59  ;;  %v1535_v52 = vpack.c.bf16 %v1227_v51, %v1220_v50  ;;  %v1239_v59 = vld [vmem:[#allocation5 + $0x578] sm:$0xff] }
 0x1fb   : > { %v1540_v61 = vpack.c.bf16 %v1239_v59, %v1232_v57 }
 0x1fd   : > { %1894 = vmatpush1.bf16.msra.mxu0 %v1507_v63  ;;  %v1241_v63 = vld [vmem:[#allocation5 + $0x588] sm:$0xff]  ;;  %1698 = vmatpush1.bf16.msra.mxu1 %v1540_v61 }
 0x1fe   : > { %1895 = vmatprep.subr.bf16.mxu0 %v1515_v8  ;;  %v1542_v1 = vpack.c.bf16 %v1241_v63, %v1234_v62  ;;  %v1253_v8 = vld [vmem:[#allocation5 + $0x5e8] sm:$0xff]  ;;  %1699 = vmatprep.subr.bf16.mxu1 %v1548_v5 }
 0x1ff   : > { %v1547_v10 = vpack.c.bf16 %v1253_v8, %v1246_v7  ;;  %v908_v63 = vld [vmem:[%s4745_s22] sm:$0xff]  ;;  %v913_v5 = vld [vmem:[%s4745_s22 + $0x28] sm:$0xff] }
 0x200   : > { %v921_v8 = vld [vmem:[%s4745_s22 + $0x68] sm:$0xff] }
 0x201   : > { %1896 = vmatpush1.bf16.msra.mxu0 %v1514_v12  ;;  %v1255_v12 = vld [vmem:[#allocation5 + $0x5f8] sm:$0xff]  ;;  %1700 = vmatpush1.bf16.msra.mxu1 %v1547_v10 }
 0x202   : > { %1897 = vmatprep.subr.bf16.mxu0 %v1522_v19  ;;  %v1549_v13 = vpack.c.bf16 %v1255_v12, %v1248_v11  ;;  %v1267_v19 = vld [vmem:[#allocation5 + $0x658] sm:$0xff]  ;;  %1701 = vmatprep.subr.bf16.mxu1 %v1555_v16  ;;  %v1288_v11 = vld [vmem:[#allocation5 + $0x700] sm:$0xff] }
 0x203   : > { %v1554_v22 = vpack.c.bf16 %v1267_v19, %v1260_v18  ;;  %v1295_v12 = vld [vmem:[#allocation5 + $0x738] sm:$0xff]  ;;  %v1290_v19 = vld [vmem:[#allocation5 + $0x710] sm:$0xff] }
 0x204   : > { %v1303_v16 = vld [vmem:[#allocation5 + $0x778] sm:$0xff] }
 0x205   : > { %1898 = vmatpush1.bf16.msra.mxu0 %v1521_v24  ;;  %v1269_v24 = vld [vmem:[#allocation5 + $0x668] sm:$0xff]  ;;  %1702 = vmatpush1.bf16.msra.mxu1 %v1554_v22 }
 0x206   : > { %1899 = vmatprep.subr.bf16.mxu0 %v1529_v32  ;;  %v1556_v25 = vpack.c.bf16 %v1269_v24, %v1262_v23  ;;  %v1281_v32 = vld [vmem:[#allocation5 + $0x6c8] sm:$0xff]  ;;  %1703 = vmatprep.subr.bf16.mxu1 %v1562_v29  ;;  %v1568_v24 = vpack.c.bf16 %v1295_v12, %v1288_v11  ;;  %v1576_v29 = vpack.c.bf16 %v1310_v17, %v1303_v16 }
 0x207   : > { %v1561_v35 = vpack.c.bf16 %v1281_v32, %v1274_v31  ;;  %v1309_v31 = vld [vmem:[#allocation5 + $0x7a8] sm:$0xff] }
 0x208   : > { %v920_v32 = vld [vmem:[%s4745_s22 + $0x60] sm:$0xff]  ;;  %v1575_v46 = vpack.c.bf16 %v1309_v31, %v1302_v30  ;;  %v933_v11 = vld [vmem:[%s4745_s22 + $0xc8] sm:$0xff]  ;;  %v1359_v31 = vld [vmem:[#allocation5 + $0x938] sm:$0xff] }
 0x209   : > { %1900 = vmatpush1.bf16.msra.mxu0 %v1528_v38  ;;  %v1283_v38 = vld [vmem:[#allocation5 + $0x6d8] sm:$0xff]  ;;  %1704 = vmatpush1.bf16.msra.mxu1 %v1561_v35  ;;  %v937_v16 = vld [vmem:[%s4745_s22 + $0xe8] sm:$0xff] }
 0x20a   : > { %1901 = vmatprep.subr.bf16.mxu0 %v1536_v48  ;;  %v1563_v39 = vpack.c.bf16 %v1283_v38, %v1276_v36  ;;  %1776 = vmatprep.subr.bf16.mxu1 %v1569_v42  ;;  %v4957_v48 = vld [vmem:[#allocation10] sm:$0xf]  ;;  %v1317_v36 = vld [vmem:[#allocation5 + $0x7e8] sm:$0xff]  ;;  %v1311_v42 = vld [vmem:[#allocation5 + $0x7b8] sm:$0xff] }
 0x20b   : > { %v721_v49 = vrot.slane %v4957_v48, %v4923_v20  ;;  %v725_v50 = vrot.slane %v4957_v48, %v531_v43  ;;  %v733_v22 = vrot.slane %v4957_v48, %v539_v44  ;;  %v925_v44 = vld [vmem:[%s4745_s22 + $0x88] sm:$0xff]  ;;  %v1324_v38 = vld [vmem:[#allocation5 + $0x820] sm:$0xff] }
 0x20d   : > { %1902 = vmatpush1.bf16.msra.mxu0 %v1535_v52 }
 0x20e   : > { %1903 = vmatprep.subr.bf16.mxu0 %v1543_v60 }
 0x211   : > { %1904 = vmatpush1.bf16.msra.mxu0 %v1542_v1  ;;  %v912_v1 = vld [vmem:[%s4745_s22 + $0x20] sm:$0xff] }
 0x212   : > { %1905 = vmatprep.subr.bf16.mxu0 %v1550_v9 }
 0x215   : > { %1906 = vmatpush1.bf16.msra.mxu0 %v1549_v13  ;;  %v4443_v13 = vmov 0  }
 0x216   : > { %1907 = vmatprep.subr.bf16.mxu0 %v1557_v21  ;;  %4136 = vset.pattern.permute.xlu1 %v4443_v13  ;;  %v1297_v21 = vld [vmem:[#allocation5 + $0x748] sm:$0xff] }
 0x217   : > { %4135 = vset.pattern.permute.xlu0 %v4443_v13  ;;  %v1570_v35 = vpack.c.bf16 %v1297_v21, %v1290_v19  ;;  %v1339_v19 = vld [vmem:[#allocation5 + $0x898] sm:$0xff] }
 0x219   : > { %1908 = vmatpush1.bf16.msra.mxu0 %v1556_v25  ;;  %v916_v25 = vld [vmem:[%s4745_s22 + $0x40] sm:$0xff] }
 0x21a   : > { %1909 = vmatprep.subr.bf16.mxu0 %v1564_v34 }
 0x21d   : > { %1910 = vmatpush1.bf16.msra.mxu0 %v1563_v39  ;;  %v929_v39 = vld [vmem:[%s4745_s22 + $0xa8] sm:$0xff] }
 0x21e   : > { %1982 = vmatprep.subr.bf16.mxu0 %v1571_v47 }
 0x2a5   : > { %v808_v51 = vpop.f32.mrb[2].mxu0 }
 0x2a6   : > { %v809_v52 = vadd.f32 %v808_v51, %v721_v49  ;;  %v810_v0 = vpop.f32.mrb[3].mxu0  ;;  %v1316_v51 = vld [vmem:[#allocation5 + $0x7e0] sm:$0xff] }
 0x2a7   : > { %v811_v54 = vadd.f32 %v810_v0, %v725_v50  ;;  %v1583_v50 = vpack.c.bf16 %v1324_v38, %v1317_v36  ;;  %v1366_v36 = vld [vmem:[#allocation5 + $0x970] sm:$0xff] }
 0x2a8   : > { %v3717_v53 = vmul.f32 -1.442695, %v809_v52  ;;  %v1323_v52 = vld [vmem:[#allocation5 + $0x818] sm:$0xff]  ;;  %v1346_v38 = vld [vmem:[#allocation5 + $0x8d0] sm:$0xff] }
 0x2a9   : > { %v3718_v55 = vmul.f32 -1.442695, %v811_v54 }
 0x2aa   : > { %4137 = vpow2.f32 %v3717_v53  ;;  %v1577_v53 = vpack.c.bf16 %v1311_v42, %v1304_v41  ;;  %v1361_v41 = vld [vmem:[#allocation5 + $0x948] sm:$0xff]  ;;  %v1368_v42 = vld [vmem:[#allocation5 + $0x980] sm:$0xff] }
 0x2ab   : > { %4139 = vpow2.f32 %v3718_v55  ;;  %v1331_v55 = vld [vmem:[#allocation5 + $0x858] sm:$0xff] }
 0x2b3   : > { %v4964_v56 = vpop.f32.mrb[4].mxu0 }
 0x2b4   : > { %v4138_v57 = vpop.eup %4137  ;;  %v881_v59 = vpop.f32.mrb[5].mxu0 }
 0x2b5   : > { %v4140_v60 = vpop.eup %4139  ;;  %v896_v43 = vadd.f32 1.0, %v4138_v57  ;;  %v882_v45 = vadd.f32 %v881_v59, %v733_v22  ;;  %v1319_v57 = vld [vmem:[#allocation5 + $0x7f8] sm:$0xff]  ;;  %v1326_v59 = vld [vmem:[#allocation5 + $0x830] sm:$0xff] }
 0x2b6   : > { %v897_v61 = vadd.f32 1.0, %v4140_v60  ;;  %v729_v60 = vrot.slane %v4957_v48, %v535_v37 }
 0x2b7   : > { %4141 = vrcp.f32 %v896_v43  ;;  %v1338_v43 = vld [vmem:[#allocation5 + $0x890] sm:$0xff] }
 0x2b8   : > { %4143 = vrcp.f32 %v897_v61  ;;  %v1318_v61 = vld [vmem:[#allocation5 + $0x7f0] sm:$0xff]  ;;  %v1590_v48 = vpack.c.bf16 %v1338_v43, %v1331_v55  ;;  %v1373_v55 = vld [vmem:[#allocation5 + $0x9a8] sm:$0xff]  ;;  %v1360_v43 = vld [vmem:[#allocation5 + $0x940] sm:$0xff] }
 0x2c1   : > { %v4142_v62 = vpop.eup %4141 }
 0x2c2   : > { %v4144_v2 = vpop.eup %4143  ;;  %v4969_v3 = vrot.slane %v4142_v62, %v4923_v20  ;;  %v1325_v62 = vld [vmem:[#allocation5 + $0x828] sm:$0xff] }
 0x2c3   : > { %v4975_v7 = vrot.slane %v4144_v2, %v4923_v20  ;;  %v1333_v2 = vld [vmem:[#allocation5 + $0x868] sm:$0xff]  ;;  %v1584_v12 = vpack.c.bf16 %v1325_v62, %v1318_v61  ;;  %v1367_v61 = vld [vmem:[#allocation5 + $0x978] sm:$0xff] }
 0x2c4   : > { %v980_v9 = vmul.f32 %v4969_v3, %v908_v63  ;;  %v984_v10 = vmul.f32 %v4969_v3, %v912_v1  ;;  %v988_v47 = vmul.f32 %v4969_v3, %v916_v25  ;;  %v992_v49 = vmul.f32 %v4969_v3, %v920_v32  ;;  %v924_v1 = vld [vmem:[%s4745_s22 + $0x80] sm:$0xff]  ;;  %v1347_v32 = vld [vmem:[#allocation5 + $0x8d8] sm:$0xff] }
 0x2c5   : > { %v981_v58 = vmul.f32 %v4975_v7, %v909_v4  ;;  %v985_v14 = vmul.f32 %v4975_v7, %v913_v5  ;;  %v989_v15 = vmul.f32 %v4975_v7, %v917_v6  ;;  %v993_v18 = vmul.f32 %v4975_v7, %v921_v8  ;;  %v1340_v4 = vld [vmem:[#allocation5 + $0x8a0] sm:$0xff]  ;;  %v1330_v8 = vld [vmem:[#allocation5 + $0x850] sm:$0xff] }
 0x2c6   : > { %v4992_v28 = vpack.c.bf16 %v984_v10, %v980_v9  ;;  %v997_v0 = vmul.f32 %v4975_v7, %v925_v44  ;;  %v1001_v54 = vmul.f32 %v4975_v7, %v929_v39  ;;  %v3720_v63 = vmul.f32 -1.442695, %v882_v45  ;;  %v928_v9 = vld [vmem:[%s4745_s22 + $0xa0] sm:$0xff]  ;;  %v1354_v44 = vld [vmem:[#allocation5 + $0x910] sm:$0xff] }
 0x2c7   : > { %v4989_v23 = vpack.c.bf16 %v985_v14, %v981_v58  ;;  %v4997_v34 = vpack.c.bf16 %v993_v18, %v989_v15  ;;  %v5013_v5 = vpack.c.bf16 %v992_v49, %v988_v47  ;;  %v1582_v6 = vpack.c.bf16 %v1323_v52, %v1316_v51  ;;  %v1345_v58 = vld [vmem:[#allocation5 + $0x8c8] sm:$0xff]  ;;  %v1352_v14 = vld [vmem:[#allocation5 + $0x900] sm:$0xff] }
 0x2c8   : > { %v1585_v10 = vpack.c.bf16 %v1326_v59, %v1319_v57  ;;  %v5016_v37 = vpack.c.bf16 %v1001_v54, %v997_v0  ;;  %v880_v15 = vadd.f32 %v4964_v56, %v729_v60  ;;  %v1592_v17 = vpack.c.bf16 %v1340_v4, %v1333_v2  ;;  %v1332_v18 = vld [vmem:[#allocation5 + $0x860] sm:$0xff]  ;;  %v1353_v39 = vld [vmem:[#allocation5 + $0x908] sm:$0xff] }
 0x2c9   : > { %1705 = vmatprep.mubr.bf16.mxu1 %v4989_v23  ;;  %1911 = vmatprep.mubr.bf16.mxu0 %v4989_v23  ;;  %4145 = vpow2.f32 %v3720_v63  ;;  %v1589_v21 = vpack.c.bf16 %v1337_v33, %v1330_v8  ;;  %v996_v22 = vmul.f32 %v4969_v3, %v924_v1  ;;  %v1597_v56 = vpack.c.bf16 %v1352_v14, %v1345_v58  ;;  %v1344_v25 = vld [vmem:[#allocation5 + $0x8c0] sm:$0xff]  ;;  %v1365_v51 = vld [vmem:[#allocation5 + $0x968] sm:$0xff]  ;;  %v1394_v58 = vld [vmem:[#allocation5 + $0xa50] sm:$0xff] }
 0x2ca   : > { %1706 = vmatmul.mubr.bf16.vlgmr.msra.gmra.mrb[4].mxu1 %v4992_v28  ;;  %1912 = vmatmul.mubr.bf16.vlgmr.msra.gmra.mrb[8].mxu0 %v4992_v28  ;;  %v1005_v27 = vmul.f32 %v4975_v7, %v933_v11  ;;  %v1591_v30 = vpack.c.bf16 %v1339_v19, %v1332_v18  ;;  %v936_v47 = vld [vmem:[%s4745_s22 + $0xe0] sm:$0xff]  ;;  %v1599_v49 = vpack.c.bf16 %v1354_v44, %v1347_v32  ;;  %v941_v54 = vld [vmem:[%s4745_s22 + $0x108] sm:$0xff]  ;;  %v1395_v44 = vld [vmem:[#allocation5 + $0xa58] sm:$0xff] }
 0x2cb   : > { %1715 = vmatprep.mubr.bf16.mxu1 %v4997_v34  ;;  %1777 = vmatpush1.bf16.msra.mxu1 %v1568_v24  ;;  %v1000_v24 = vmul.f32 %v4969_v3, %v928_v9  ;;  %v1604_v0 = vpack.c.bf16 %v1366_v36, %v1359_v31  ;;  %v1380_v57 = vld [vmem:[#allocation5 + $0x9e0] sm:$0xff]  ;;  %v945_v59 = vld [vmem:[%s4745_s22 + $0x128] sm:$0xff]  ;;  %v1606_v60 = vpack.c.bf16 %v1368_v42, %v1361_v41 }
 0x2cc   : > { %1921 = vmatprep.mubr.bf16.mxu0 %v4997_v34  ;;  %1778 = vmatprep.subr.bf16.mxu1 %v1576_v29  ;;  %v1009_v29 = vmul.f32 %v4975_v7, %v937_v16  ;;  %v1008_v1 = vmul.f32 %v4969_v3, %v936_v47  ;;  %v1611_v2 = vpack.c.bf16 %v1380_v57, %v1373_v55  ;;  %v1372_v4 = vld [vmem:[#allocation5 + $0x9a0] sm:$0xff]  ;;  %v1382_v11 = vld [vmem:[#allocation5 + $0x9f0] sm:$0xff] }
 0x2cd   : > { %1983 = vmatpush1.bf16.msra.mxu0 %v1570_v35  ;;  %v3719_v35 = vmul.f32 -1.442695, %v880_v15  ;;  %v5030_v45 = vpack.c.bf16 %v1000_v24, %v996_v22  ;;  %v1013_v33 = vmul.f32 %v4975_v7, %v941_v54  ;;  %v1017_v9 = vmul.f32 %v4975_v7, %v945_v59  ;;  %v1374_v14 = vld [vmem:[#allocation5 + $0x9b0] sm:$0xff]  ;;  %v1381_v15 = vld [vmem:[#allocation5 + $0x9e8] sm:$0xff]  ;;  %v1396_v18 = vld [vmem:[#allocation5 + $0xa60] sm:$0xff] }
 0x2ce   : > { %1984 = vmatprep.subr.bf16.mxu0 %v1578_v40  ;;  %v932_v40 = vld [vmem:[%s4745_s22 + $0xc0] sm:$0xff]  ;;  %v5033_v52 = vpack.c.bf16 %v1009_v29, %v1005_v27  ;;  %v949_v29 = vld [vmem:[%s4745_s22 + $0x148] sm:$0xff]  ;;  %v1612_v31 = vpack.c.bf16 %v1381_v15, %v1374_v14  ;;  %v1423_v14 = vld [vmem:[#allocation5 + $0xb38] sm:$0xff] }
 0x2cf   : > { %1779 = vmatpush1.bf16.msra.mxu1 %v1575_v46  ;;  %v1596_v46 = vpack.c.bf16 %v1351_v26, %v1344_v25  ;;  %4147 = vpow2.f32 %v3719_v35  ;;  %v1004_v63 = vmul.f32 %v4969_v3, %v932_v40  ;;  %v940_v16 = vld [vmem:[%s4745_s22 + $0x100] sm:$0xff]  ;;  %v1386_v25 = vld [vmem:[#allocation5 + $0xa10] sm:$0xff]  ;;  %v5049_v27 = vpack.c.bf16 %v1017_v9, %v1013_v33 }
 0x2d0   : > { %1780 = vmatprep.subr.bf16.mxu1 %v1583_v50  ;;  %v1358_v50 = vld [vmem:[#allocation5 + $0x930] sm:$0xff]  ;;  %v944_v24 = vld [vmem:[%s4745_s22 + $0x120] sm:$0xff]  ;;  %v1012_v42 = vmul.f32 %v4969_v3, %v940_v16 }
 0x2d1   : > { %1985 = vmatpush1.bf16.msra.mxu0 %v1577_v53  ;;  %v1598_v53 = vpack.c.bf16 %v1353_v39, %v1346_v38  ;;  %v1603_v62 = vpack.c.bf16 %v1365_v51, %v1358_v50  ;;  %v1393_v26 = vld [vmem:[#allocation5 + $0xa48] sm:$0xff]  ;;  %v1388_v32 = vld [vmem:[#allocation5 + $0xa20] sm:$0xff]  ;;  %v1407_v50 = vld [vmem:[#allocation5 + $0xab8] sm:$0xff]  ;;  %v1021_v51 = vmul.f32 %v4975_v7, %v949_v29 }
 0x2d2   : > { %1716 = vmatmul.mubr.bf16.gmra.mrb[8].mxu1 %v5013_v5  ;;  %1922 = vmatmul.mubr.bf16.gmra.mrb[12].mxu0 %v5013_v5  ;;  %v953_v35 = vld [vmem:[%s4745_s22 + $0x168] sm:$0xff]  ;;  %v1408_v39 = vld [vmem:[#allocation5 + $0xac0] sm:$0xff]  ;;  %v1617_v40 = vpack.c.bf16 %v1393_v26, %v1386_v25  ;;  %v1619_v47 = vpack.c.bf16 %v1395_v44, %v1388_v32  ;;  %v1435_v26 = vld [vmem:[#allocation5 + $0xb98] sm:$0xff] }
 0x2d3   : > { %1725 = vmatprep.mubr.bf16.mxu1 %v5016_v37  ;;  %1931 = vmatprep.mubr.bf16.mxu0 %v5016_v37  ;;  %v4146_v8 = vpop.eup %4145  ;;  %v1401_v38 = vld [vmem:[#allocation5 + $0xa88] sm:$0xff]  ;;  %v1410_v55 = vld [vmem:[#allocation5 + $0xad0] sm:$0xff]  ;;  %v1428_v25 = vld [vmem:[#allocation5 + $0xb60] sm:$0xff] }
 0x2d4   : > { %1781 = vmatpush1.bf16.msra.mxu1 %v1582_v6  ;;  %1986 = vmatprep.subr.bf16.mxu0 %v1585_v10  ;;  %v1379_v6 = vld [vmem:[#allocation5 + $0x9d8] sm:$0xff]  ;;  %v1605_v10 = vpack.c.bf16 %v1367_v61, %v1360_v43  ;;  %v899_v19 = vadd.f32 1.0, %v4146_v8  ;;  %v1625_v54 = vpack.c.bf16 %v1408_v39, %v1401_v38  ;;  %v1402_v57 = vld [vmem:[#allocation5 + $0xa90] sm:$0xff]  ;;  %v1409_v59 = vld [vmem:[#allocation5 + $0xac8] sm:$0xff] }
 0x2d5   : > { %1782 = vmatprep.subr.bf16.mxu1 %v1590_v48  ;;  %1987 = vmatpush1.bf16.msra.mxu0 %v1584_v12  ;;  %v1375_v48 = vld [vmem:[#allocation5 + $0x9b8] sm:$0xff]  ;;  %v1610_v22 = vpack.c.bf16 %v1379_v6, %v1372_v4  ;;  %v1422_v43 = vld [vmem:[#allocation5 + $0xb30] sm:$0xff]  ;;  %v952_v6 = vld [vmem:[%s4745_s22 + $0x160] sm:$0xff] }
 0x2d6   : > { %1988 = vmatprep.subr.bf16.mxu0 %v1592_v17  ;;  %v1387_v12 = vld [vmem:[#allocation5 + $0xa18] sm:$0xff]  ;;  %v1389_v17 = vld [vmem:[#allocation5 + $0xa28] sm:$0xff]  ;;  %4149 = vrcp.f32 %v899_v19  ;;  %v1414_v33 = vld [vmem:[#allocation5 + $0xaf0] sm:$0xff] }
 0x2d7   : > { %v1620_v36 = vpack.c.bf16 %v1396_v18, %v1389_v17  ;;  %v1421_v9 = vld [vmem:[#allocation5 + $0xb28] sm:$0xff]  ;;  %v1436_v18 = vld [vmem:[#allocation5 + $0xba0] sm:$0xff]  ;;  %v1431_v29 = vld [vmem:[#allocation5 + $0xb78] sm:$0xff] }
 0x2d8   : > { %1783 = vmatpush1.bf16.msra.mxu1 %v1589_v21  ;;  %v5046_v21 = vpack.c.bf16 %v1008_v1, %v1004_v63  ;;  %v1417_v63 = vld [vmem:[#allocation5 + $0xb08] sm:$0xff]  ;;  %v1424_v1 = vld [vmem:[#allocation5 + $0xb40] sm:$0xff]  ;;  %v1631_v19 = vpack.c.bf16 %v1421_v9, %v1414_v33  ;;  %v1438_v44 = vld [vmem:[#allocation5 + $0xbb0] sm:$0xff] }
 0x2d9   : > { %1784 = vmatprep.subr.bf16.mxu1 %v1597_v56  ;;  %1989 = vmatpush1.bf16.msra.mxu0 %v1591_v30  ;;  %v1613_v56 = vpack.c.bf16 %v1382_v11, %v1375_v48  ;;  %v1618_v30 = vpack.c.bf16 %v1394_v58, %v1387_v12  ;;  %v4148_v41 = vpop.eup %4147  ;;  %v957_v48 = vld [vmem:[%s4745_s22 + $0x188] sm:$0xff]  ;;  %v1626_v11 = vpack.c.bf16 %v1409_v59, %v1402_v57  ;;  %v1416_v58 = vld [vmem:[#allocation5 + $0xb00] sm:$0xff]  ;;  %v1443_v39 = vld [vmem:[#allocation5 + $0xbd8] sm:$0xff] }
 0x2da   : > { %1726 = vmatmul.mubr.bf16.gmra.mrb[12].mxu1 %v5030_v45  ;;  %1932 = vmatmul.mubr.bf16.gmra.mrb[16].mxu0 %v5030_v45  ;;  %v898_v61 = vadd.f32 1.0, %v4148_v41  ;;  %v961_v15 = vld [vmem:[%s4745_s22 + $0x1a8] sm:$0xff]  ;;  %v1634_v16 = vpack.c.bf16 %v1424_v1, %v1417_v63  ;;  %v956_v41 = vld [vmem:[%s4745_s22 + $0x180] sm:$0xff]  ;;  %v911_v57 = vld [vmem:[%s4745_s22 + $0x18] sm:$0xff] }
 0x2db   : > { %1735 = vmatprep.mubr.bf16.mxu1 %v5033_v52  ;;  %1941 = vmatprep.mubr.bf16.mxu0 %v5033_v52  ;;  %v1429_v17 = vld [vmem:[#allocation5 + $0xb68] sm:$0xff]  ;;  %v1076_v1 = vld [vmem:[#allocation5 + $0x60] sm:$0xff] }
 0x2dc   : > { %1785 = vmatpush1.bf16.msra.mxu1 %v1596_v46  ;;  %1990 = vmatprep.subr.bf16.mxu0 %v1599_v49  ;;  %v1016_v46 = vmul.f32 %v4969_v3, %v944_v24  ;;  %v1400_v49 = vld [vmem:[#allocation5 + $0xa80] sm:$0xff]  ;;  %4151 = vrcp.f32 %v898_v61  ;;  %v1024_v24 = vmul.f32 %v4969_v3, %v952_v6  ;;  %v1639_v32 = vpack.c.bf16 %v1436_v18, %v1429_v17  ;;  %v1069_v63 = vld [vmem:[#allocation5 + $0x28] sm:$0xff]  ;;  %v910_v18 = vld [vmem:[%s4745_s22 + $0x10] sm:$0xff] }
 0x2dd   : > { %1786 = vmatprep.subr.bf16.mxu1 %v1604_v0  ;;  %1991 = vmatpush1.bf16.msra.mxu0 %v1598_v53  ;;  %v1025_v0 = vmul.f32 %v4975_v7, %v953_v35  ;;  %v1403_v53 = vld [vmem:[#allocation5 + $0xa98] sm:$0xff]  ;;  %v1624_v4 = vpack.c.bf16 %v1407_v50, %v1400_v49  ;;  %v1430_v35 = vld [vmem:[#allocation5 + $0xb70] sm:$0xff]  ;;  %v960_v49 = vld [vmem:[%s4745_s22 + $0x1a0] sm:$0xff]  ;;  %v1641_v50 = vpack.c.bf16 %v1438_v44, %v1431_v29 }
 0x2de   : > { %1992 = vmatprep.subr.bf16.mxu0 %v1606_v60  ;;  %v1415_v60 = vld [vmem:[#allocation5 + $0xaf8] sm:$0xff]  ;;  %v1627_v8 = vpack.c.bf16 %v1410_v55, %v1403_v53  ;;  %v1028_v6 = vmul.f32 %v4969_v3, %v956_v41  ;;  %v1070_v44 = vld [vmem:[#allocation5 + $0x30] sm:$0xff] }
 0x2df   : > { %v1632_v12 = vpack.c.bf16 %v1422_v43, %v1415_v60  ;;  %v1444_v60 = vld [vmem:[#allocation5 + $0xbe0] sm:$0xff]  ;;  %v1451_v43 = vld [vmem:[#allocation5 + $0xc18] sm:$0xff] }
 0x2e0   : > { %1787 = vmatpush1.bf16.msra.mxu1 %v1603_v62  ;;  %v948_v62 = vld [vmem:[%s4745_s22 + $0x140] sm:$0xff]  ;;  %v4150_v38 = vpop.eup %4149  ;;  %v915_v61 = vld [vmem:[%s4745_s22 + $0x38] sm:$0xff]  ;;  %v1647_v33 = vpack.c.bf16 %v1451_v43, %v1444_v60 }
 0x2e1   : > { %1788 = vmatprep.subr.bf16.mxu1 %v1611_v2  ;;  %1993 = vmatpush1.bf16.msra.mxu0 %v1605_v10  ;;  %v5062_v2 = vpack.c.bf16 %v1016_v46, %v1012_v42  ;;  %v5065_v10 = vpack.c.bf16 %v1025_v0, %v1021_v51  ;;  %v1445_v42 = vld [vmem:[#allocation5 + $0xbe8] sm:$0xff]  ;;  %v1452_v46 = vld [vmem:[#allocation5 + $0xc20] sm:$0xff]  ;;  %v1442_v0 = vld [vmem:[#allocation5 + $0xbd0] sm:$0xff]  ;;  %v5082_v53 = vrot.slane %v4150_v38, %v4923_v20 }
 0x2e2   : > { %1736 = vmatmul.mubr.bf16.gmra.mrb[16].mxu1 %v5046_v21  ;;  %1942 = vmatmul.mubr.bf16.gmra.mrb[20].mxu0 %v5046_v21  ;;  %v918_v38 = vld [vmem:[%s4745_s22 + $0x50] sm:$0xff]  ;;  %v1084_v43 = vld [vmem:[#allocation5 + $0xa0] sm:$0xff] }
 0x2e3   : > { %1745 = vmatprep.mubr.bf16.mxu1 %v5049_v27  ;;  %1951 = vmatprep.mubr.bf16.mxu0 %v5049_v27 }
 0x2e4   : > { %1789 = vmatpush1.bf16.msra.mxu1 %v1610_v22  ;;  %1994 = vmatprep.subr.bf16.mxu0 %v1613_v56  ;;  %v1020_v22 = vmul.f32 %v4969_v3, %v948_v62  ;;  %v1633_v56 = vpack.c.bf16 %v1423_v14, %v1416_v58  ;;  %v1648_v62 = vpack.c.bf16 %v1452_v46, %v1445_v42  ;;  %v1182_v58 = vld [vmem:[#allocation5 + $0x3b0] sm:$0xff]  ;;  %v1189_v14 = vld [vmem:[#allocation5 + $0x3e8] sm:$0xff] }
 0x2e5   : > { %1790 = vmatprep.subr.bf16.mxu1 %v1618_v30  ;;  %1995 = vmatpush1.bf16.msra.mxu0 %v1612_v31  ;;  %v1029_v30 = vmul.f32 %v4975_v7, %v957_v48  ;;  %v1033_v31 = vmul.f32 %v4975_v7, %v961_v15  ;;  %v1638_v7 = vpack.c.bf16 %v1435_v26, %v1428_v25  ;;  %v1068_v25 = vld [vmem:[#allocation5 + $0x20] sm:$0xff]  ;;  %v1075_v26 = vld [vmem:[#allocation5 + $0x58] sm:$0xff]  ;;  %v1082_v46 = vld [vmem:[#allocation5 + $0x90] sm:$0xff] }
 0x2e6   : > { %1996 = vmatprep.subr.bf16.mxu0 %v1620_v36  ;;  %v1437_v36 = vld [vmem:[#allocation5 + $0xba8] sm:$0xff]  ;;  %v4152_v9 = vpop.eup %4151  ;;  %v983_v48 = vmul.f32 %v5082_v53, %v911_v57 }
 0x2e7   : > { %v1640_v51 = vpack.c.bf16 %v1437_v36, %v1430_v35  ;;  %v5084_v55 = vpack.c.bf16 %v1033_v31, %v1029_v30  ;;  %v1083_v31 = vld [vmem:[#allocation5 + $0x98] sm:$0xff]  ;;  %v1077_v35 = vld [vmem:[#allocation5 + $0x68] sm:$0xff]  ;;  %v1460_v36 = vpack.c.bf16 %v1075_v26, %v1068_v25  ;;  %v1224_v26 = vld [vmem:[#allocation5 + $0x500] sm:$0xff] }
 0x2e8   : > { %1791 = vmatpush1.bf16.msra.mxu1 %v1617_v40  ;;  %v1450_v40 = vld [vmem:[#allocation5 + $0xc10] sm:$0xff]  ;;  %v1462_v57 = vpack.c.bf16 %v1077_v35, %v1070_v44  ;;  %v1117_v25 = vld [vmem:[#allocation5 + $0x1a8] sm:$0xff] }
 0x2e9   : > { %1997 = vmatpush1.bf16.msra.mxu0 %v1619_v47  ;;  %1792 = vmatprep.subr.bf16.mxu1 %v1625_v54  ;;  %v5078_v47 = vpack.c.bf16 %v1024_v24, %v1020_v22  ;;  %v1449_v54 = vld [vmem:[#allocation5 + $0xc08] sm:$0xff]  ;;  %v1646_v59 = vpack.c.bf16 %v1450_v40, %v1443_v39  ;;  %v919_v22 = vld [vmem:[%s4745_s22 + $0x58] sm:$0xff]  ;;  %v930_v44 = vld [vmem:[%s4745_s22 + $0xb0] sm:$0xff] }
 0x2ea   : > { %1746 = vmatmul.mubr.bf16.gmra.mrb[20].mxu1 %v5062_v2  ;;  %1952 = vmatmul.mubr.bf16.gmra.mrb[24].mxu0 %v5062_v2  ;;  %v923_v24 = vld [vmem:[%s4745_s22 + $0x78] sm:$0xff]  ;;  %v991_v29 = vmul.f32 %v5082_v53, %v919_v22  ;;  %v1098_v22 = vld [vmem:[#allocation5 + $0x110] sm:$0xff] }
 0x2eb   : > { %1755 = vmatprep.mubr.bf16.mxu1 %v5065_v10  ;;  %1961 = vmatprep.mubr.bf16.mxu0 %v5065_v10  ;;  %v995_v30 = vmul.f32 %v5082_v53, %v923_v24  ;;  %v1196_v39 = vld [vmem:[#allocation5 + $0x420] sm:$0xff]  ;;  %v1203_v40 = vld [vmem:[#allocation5 + $0x458] sm:$0xff]  ;;  %v1105_v24 = vld [vmem:[#allocation5 + $0x148] sm:$0xff] }
 0x2ec   : > { %1793 = vmatpush1.bf16.msra.mxu1 %v1624_v4  ;;  %1998 = vmatprep.subr.bf16.mxu0 %v1627_v8  ;;  %v1645_v4 = vpack.c.bf16 %v1449_v54, %v1442_v0  ;;  %v1032_v8 = vmul.f32 %v4969_v3, %v960_v49  ;;  %v5097_v3 = vrot.slane %v4152_v9, %v4923_v20  ;;  %v1089_v49 = vld [vmem:[#allocation5 + $0xc8] sm:$0xff]  ;;  %v1104_v0 = vld [vmem:[#allocation5 + $0x140] sm:$0xff] }
 0x2ed   : > { %1999 = vmatpush1.bf16.msra.mxu0 %v1626_v11  ;;  %1794 = vmatprep.subr.bf16.mxu1 %v1632_v12  ;;  %v987_v11 = vmul.f32 %v5082_v53, %v915_v61  ;;  %v1461_v12 = vpack.c.bf16 %v1076_v1, %v1069_v63  ;;  %v927_v54 = vld [vmem:[%s4745_s22 + $0x98] sm:$0xff]  ;;  %v1525_v60 = vpack.c.bf16 %v1203_v40, %v1196_v39 }
 0x2ee   : > { %2000 = vmatprep.subr.bf16.mxu0 %v1634_v16  ;;  %v5099_v15 = vpack.c.bf16 %v1032_v8, %v1028_v6  ;;  %v1518_v16 = vpack.c.bf16 %v1189_v14, %v1182_v58  ;;  %v982_v20 = vmul.f32 %v5097_v3, %v910_v18  ;;  %v1091_v61 = vld [vmem:[#allocation5 + $0xd8] sm:$0xff]  ;;  %v990_v1 = vmul.f32 %v5097_v3, %v918_v38  ;;  %v1096_v6 = vld [vmem:[#allocation5 + $0x100] sm:$0xff]  ;;  %v1210_v58 = vld [vmem:[#allocation5 + $0x490] sm:$0xff] }
 0x2ef   : > { %v5101_v17 = vpack.c.bf16 %v987_v11, %v983_v48  ;;  %v1103_v8 = vld [vmem:[#allocation5 + $0x138] sm:$0xff]  ;;  %v1118_v11 = vld [vmem:[#allocation5 + $0x1b0] sm:$0xff]  ;;  %v1217_v14 = vld [vmem:[#allocation5 + $0x4c8] sm:$0xff]  ;;  %v1476_v39 = vpack.c.bf16 %v1105_v24, %v1098_v22 }
 0x2f0   : > { %1795 = vmatpush1.bf16.msra.mxu1 %v1631_v19  ;;  %v914_v19 = vld [vmem:[%s4745_s22 + $0x30] sm:$0xff]  ;;  %v1532_v35 = vpack.c.bf16 %v1217_v14, %v1210_v58  ;;  %v939_v38 = vld [vmem:[%s4745_s22 + $0xf8] sm:$0xff]  ;;  %v1133_v24 = vld [vmem:[#allocation5 + $0x228] sm:$0xff] }
 0x2f1   : > { %2001 = vmatpush1.bf16.msra.mxu0 %v1633_v56  ;;  %1796 = vmatprep.subr.bf16.mxu1 %v1639_v32  ;;  %v986_v56 = vmul.f32 %v5097_v3, %v914_v19  ;;  %v1090_v32 = vld [vmem:[#allocation5 + $0xd0] sm:$0xff]  ;;  %v1111_v48 = vld [vmem:[#allocation5 + $0x178] sm:$0xff]  ;;  %v1160_v58 = vld [vmem:[#allocation5 + $0x300] sm:$0xff] }
 0x2f2   : > { %1756 = vmatmul.mubr.bf16.gmra.mrb[24].mxu1 %v5078_v47  ;;  %1962 = vmatmul.mubr.bf16.gmra.mrb[28].mxu0 %v5078_v47  ;;  %v1468_v42 = vpack.c.bf16 %v1090_v32, %v1083_v31  ;;  %v1110_v18 = vld [vmem:[#allocation5 + $0x170] sm:$0xff]  ;;  %v1125_v31 = vld [vmem:[#allocation5 + $0x1e8] sm:$0xff]  ;;  %v1132_v32 = vld [vmem:[#allocation5 + $0x220] sm:$0xff] }
 0x2f3   : > { %1765 = vmatprep.mubr.bf16.mxu1 %v5084_v55  ;;  %1971 = vmatprep.mubr.bf16.mxu0 %v5084_v55  ;;  %v5118_v41 = vpack.c.bf16 %v986_v56, %v982_v20  ;;  %v926_v19 = vld [vmem:[%s4745_s22 + $0x90] sm:$0xff]  ;;  %v1482_v56 = vpack.c.bf16 %v1118_v11, %v1111_v48  ;;  %v1481_v40 = vpack.c.bf16 %v1117_v25, %v1110_v18  ;;  %v943_v14 = vld [vmem:[%s4745_s22 + $0x118] sm:$0xff] }
 0x2f4   : > { %1797 = vmatpush1.bf16.msra.mxu1 %v1638_v7  ;;  %2002 = vmatprep.subr.bf16.mxu0 %v1641_v50  ;;  %v922_v7 = vld [vmem:[%s4745_s22 + $0x70] sm:$0xff]  ;;  %v5121_v50 = vpack.c.bf16 %v995_v30, %v991_v29  ;;  %v947_v18 = vld [vmem:[%s4745_s22 + $0x138] sm:$0xff] }
 0x2f5   : > { %2003 = vmatpush1.bf16.msra.mxu0 %v1640_v51  ;;  %1798 = vmatprep.subr.bf16.mxu1 %v1646_v59  ;;  %v1097_v51 = vld [vmem:[#allocation5 + $0x108] sm:$0xff]  ;;  %v931_v59 = vld [vmem:[%s4745_s22 + $0xb8] sm:$0xff]  ;;  %v938_v48 = vld [vmem:[%s4745_s22 + $0xf0] sm:$0xff] }
 0x2f6   : > { %2004 = vmatprep.subr.bf16.mxu0 %v1648_v62  ;;  %v1467_v62 = vpack.c.bf16 %v1089_v49, %v1082_v46  ;;  %v1475_v63 = vpack.c.bf16 %v1104_v0, %v1097_v51  ;;  %v1003_v9 = vmul.f32 %v5082_v53, %v931_v59  ;;  %v1231_v29 = vld [vmem:[#allocation5 + $0x538] sm:$0xff]  ;;  %v1489_v46 = vpack.c.bf16 %v1132_v32, %v1125_v31  ;;  %v1124_v51 = vld [vmem:[#allocation5 + $0x1e0] sm:$0xff]  ;;  %v1126_v22 = vld [vmem:[#allocation5 + $0x1f0] sm:$0xff] }
 0x2f7   : > { %v998_v49 = vmul.f32 %v5097_v3, %v926_v19  ;;  %v1131_v0 = vld [vmem:[#allocation5 + $0x218] sm:$0xff]  ;;  %v1152_v31 = vld [vmem:[#allocation5 + $0x2c0] sm:$0xff] }
 0x2f8   : > { %1799 = vmatpush1.bf16.msra.mxu1 %v1645_v4  ;;  %v994_v4 = vmul.f32 %v5097_v3, %v922_v7  ;;  %v1002_v7 = vmul.f32 %v5097_v3, %v930_v44  ;;  %v1139_v59 = vld [vmem:[#allocation5 + $0x258] sm:$0xff]  ;;  %v1015_v44 = vmul.f32 %v5082_v53, %v943_v14 }
 0x2f9   : > { %2005 = vmatpush1.bf16.msra.mxu0 %v1647_v33  ;;  %2085 = vmatprep.subr.bf16.mxu1 %v1461_v12  ;;  %v999_v33 = vmul.f32 %v5082_v53, %v927_v54  ;;  %v1469_v12 = vpack.c.bf16 %v1091_v61, %v1084_v43  ;;  %v1112_v43 = vld [vmem:[#allocation5 + $0x180] sm:$0xff]  ;;  %v1119_v61 = vld [vmem:[#allocation5 + $0x1b8] sm:$0xff] }
 0x2fa   : > { %1766 = vmatmul.mubr.bf16.gmra.mrb[28].mxu1 %v5099_v15  ;;  %1972 = vmatmul.mubr.bf16.gmra.mrb[32].mxu0 %v5099_v15  ;;  %v5136_v20 = vpack.c.bf16 %v994_v4, %v990_v1  ;;  %v1238_v1 = vld [vmem:[#allocation5 + $0x570] sm:$0xff]  ;;  %v1245_v4 = vld [vmem:[#allocation5 + $0x5a8] sm:$0xff]  ;;  %v1159_v32 = vld [vmem:[#allocation5 + $0x2f8] sm:$0xff] }
 0x2fb   : > { %3721 = vmatprep.mubr.msk.bf16.mxu1 %vm544_vm0, %v5101_v17  ;;  %3728 = vmatprep.mubr.msk.bf16.mxu0 %vm544_vm0, %v5101_v17  ;;  %v5138_v30 = vpack.c.bf16 %v1003_v9, %v999_v33  ;;  %v1138_v33 = vld [vmem:[#allocation5 + $0x250] sm:$0xff]  ;;  %v1145_v9 = vld [vmem:[#allocation5 + $0x288] sm:$0xff]  ;;  %v1546_v19 = vpack.c.bf16 %v1245_v4, %v1238_v1 }
 0x2fc   : > { %3790 = vmatprep.subr.bf16.mxu0 %v1518_v16  ;;  %v1474_v16 = vpack.c.bf16 %v1103_v8, %v1096_v6  ;;  %v5154_v6 = vpack.c.bf16 %v1002_v7, %v998_v49  ;;  %v1166_v49 = vld [vmem:[#allocation5 + $0x330] sm:$0xff] }
 0x2fd   : > { %v942_v7 = vld [vmem:[%s4745_s22 + $0x110] sm:$0xff] }
 0x2fe   : > { %v946_v1 = vld [vmem:[%s4745_s22 + $0x130] sm:$0xff]  ;;  %v1014_v14 = vmul.f32 %v5097_v3, %v942_v7  ;;  %v1216_v7 = vld [vmem:[#allocation5 + $0x4c0] sm:$0xff] }
 0x302   : > { %1809 = vmatmul.mubr.bf16.vlgmr.msra.gmra.mrb[4].mxu1 %v5118_v41  ;;  %2015 = vmatmul.mubr.bf16.vlgmr.msra.gmra.mrb[8].mxu0 %v5118_v41 }
 0x303   : > { %2086 = vmatpush1.bf16.msra.mxu1 %v1460_v36  ;;  %3722 = vmatprep.mubr.msk.bf16.mxu1 %vm544_vm0, %v5121_v50  ;;  %v935_v36 = vld [vmem:[%s4745_s22 + $0xd8] sm:$0xff] }
 0x304   : > { %3729 = vmatprep.mubr.msk.bf16.mxu0 %vm544_vm0, %v5121_v50  ;;  %2087 = vmatprep.subr.bf16.mxu1 %v1468_v42  ;;  %v1539_v42 = vpack.c.bf16 %v1231_v29, %v1224_v26  ;;  %v1007_v54 = vmul.f32 %v5082_v53, %v935_v36  ;;  %v1010_v29 = vmul.f32 %v5097_v3, %v938_v48  ;;  %v1167_v36 = vld [vmem:[#allocation5 + $0x338] sm:$0xff] }
 0x305   : > { %3791 = vmatpush3.bf16.msra.mxu0 %v1462_v57  ;;  %v1011_v57 = vmul.f32 %v5082_v53, %v939_v38  ;;  %v1174_v38 = vld [vmem:[#allocation5 + $0x370] sm:$0xff] }
 0x306   : > { %3792 = vmatprep.subr.bf16.mxu0 %v1525_v60  ;;  %v1146_v60 = vld [vmem:[#allocation5 + $0x290] sm:$0xff] }
 0x307   : > { %2088 = vmatpush1.bf16.msra.mxu1 %v1467_v62  ;;  %v1488_v62 = vpack.c.bf16 %v1131_v0, %v1124_v51  ;;  %v1496_v8 = vpack.c.bf16 %v1146_v60, %v1139_v59  ;;  %v5157_v11 = vpack.c.bf16 %v1011_v57, %v1007_v54  ;;  %v1140_v51 = vld [vmem:[#allocation5 + $0x260] sm:$0xff]  ;;  %v1147_v0 = vld [vmem:[#allocation5 + $0x298] sm:$0xff]  ;;  %v1510_v57 = vpack.c.bf16 %v1174_v38, %v1167_v36  ;;  %v1173_v59 = vld [vmem:[#allocation5 + $0x368] sm:$0xff] }
 0x308   : > { %2089 = vmatprep.subr.bf16.mxu1 %v1475_v63  ;;  %v934_v63 = vld [vmem:[%s4745_s22 + $0xd0] sm:$0xff]  ;;  %v1509_v48 = vpack.c.bf16 %v1173_v59, %v1166_v49  ;;  %v1209_v49 = vld [vmem:[#allocation5 + $0x488] sm:$0xff] }
 0x309   : > { %3793 = vmatpush3.bf16.msra.mxu0 %v1469_v12  ;;  %v1153_v12 = vld [vmem:[#allocation5 + $0x2c8] sm:$0xff]  ;;  %v1006_v26 = vmul.f32 %v5097_v3, %v934_v63  ;;  %v1266_v60 = vld [vmem:[#allocation5 + $0x650] sm:$0xff]  ;;  %v1188_v63 = vld [vmem:[#allocation5 + $0x3e0] sm:$0xff] }
 0x30a   : > { %1819 = vmatmul.mubr.bf16.gmra.mrb[8].mxu1 %v5136_v20  ;;  %2025 = vmatmul.mubr.bf16.gmra.mrb[12].mxu0 %v5136_v20  ;;  %v1503_v25 = vpack.c.bf16 %v1160_v58, %v1153_v12 }
 0x30b   : > { %2090 = vmatpush1.bf16.msra.mxu1 %v1474_v16  ;;  %3723 = vmatprep.mubr.msk.bf16.mxu1 %vm544_vm0, %v5138_v30  ;;  %v1483_v16 = vpack.c.bf16 %v1119_v61, %v1112_v43  ;;  %v5172_v54 = vpack.c.bf16 %v1010_v29, %v1006_v26  ;;  %v1273_v43 = vld [vmem:[#allocation5 + $0x688] sm:$0xff]  ;;  %v1154_v26 = vld [vmem:[#allocation5 + $0x2d0] sm:$0xff] }
 0x30c   : > { %3730 = vmatprep.mubr.msk.bf16.mxu0 %vm544_vm0, %v5138_v30  ;;  %2091 = vmatprep.subr.bf16.mxu1 %v1482_v56  ;;  %v1495_v56 = vpack.c.bf16 %v1145_v9, %v1138_v33  ;;  %v955_v33 = vld [vmem:[%s4745_s22 + $0x178] sm:$0xff]  ;;  %v1497_v9 = vpack.c.bf16 %v1147_v0, %v1140_v51  ;;  %v1560_v12 = vpack.c.bf16 %v1273_v43, %v1266_v60  ;;  %v1161_v29 = vld [vmem:[#allocation5 + $0x308] sm:$0xff] }
 0x30d   : > { %3794 = vmatprep.subr.bf16.mxu0 %v1532_v35  ;;  %v1019_v35 = vmul.f32 %v5082_v53, %v947_v18  ;;  %v1180_v18 = vld [vmem:[#allocation5 + $0x3a0] sm:$0xff]  ;;  %v1504_v0 = vpack.c.bf16 %v1161_v29, %v1154_v26  ;;  %v1175_v43 = vld [vmem:[#allocation5 + $0x378] sm:$0xff]  ;;  %v1237_v26 = vld [vmem:[#allocation5 + $0x568] sm:$0xff] }
 0x30e   : > { %3795 = vmatpush3.bf16.msra.mxu0 %v1476_v39  ;;  %v1490_v39 = vpack.c.bf16 %v1133_v24, %v1126_v22  ;;  %v1027_v24 = vmul.f32 %v5082_v53, %v955_v33  ;;  %v959_v51 = vld [vmem:[%s4745_s22 + $0x198] sm:$0xff] }
 0x30f   : > { %2092 = vmatpush1.bf16.msra.mxu1 %v1481_v40  ;;  %3796 = vmatprep.subr.bf16.mxu0 %v1539_v42  ;;  %v1252_v40 = vld [vmem:[#allocation5 + $0x5e0] sm:$0xff]  ;;  %v1259_v42 = vld [vmem:[#allocation5 + $0x618] sm:$0xff]  ;;  %v5174_v61 = vpack.c.bf16 %v1019_v35, %v1015_v44 }
 0x310   : > { %2093 = vmatprep.subr.bf16.mxu1 %v1489_v46  ;;  %v1502_v46 = vpack.c.bf16 %v1159_v32, %v1152_v31  ;;  %v1553_v4 = vpack.c.bf16 %v1259_v42, %v1252_v40  ;;  %v950_v32 = vld [vmem:[%s4745_s22 + $0x150] sm:$0xff]  ;;  %v1280_v44 = vld [vmem:[#allocation5 + $0x6c0] sm:$0xff]  ;;  %v1201_v40 = vld [vmem:[#allocation5 + $0x448] sm:$0xff] }
 0x311   : > { %v1287_v35 = vld [vmem:[#allocation5 + $0x6f8] sm:$0xff]  ;;  %v1168_v60 = vld [vmem:[#allocation5 + $0x340] sm:$0xff] }
 0x312   : > { %1829 = vmatmul.mubr.bf16.gmra.mrb[12].mxu1 %v5154_v6  ;;  %2035 = vmatmul.mubr.bf16.gmra.mrb[16].mxu0 %v5154_v6  ;;  %v954_v42 = vld [vmem:[%s4745_s22 + $0x170] sm:$0xff]  ;;  %v1567_v59 = vpack.c.bf16 %v1287_v35, %v1280_v44  ;;  %v1244_v29 = vld [vmem:[#allocation5 + $0x5a0] sm:$0xff] }
 0x313   : > { %2094 = vmatpush1.bf16.msra.mxu1 %v1488_v62  ;;  %3724 = vmatprep.mubr.msk.bf16.mxu1 %vm544_vm0, %v5157_v11  ;;  %v1181_v62 = vld [vmem:[#allocation5 + $0x3a8] sm:$0xff]  ;;  %v1215_v33 = vld [vmem:[#allocation5 + $0x4b8] sm:$0xff] }
 0x314   : > { %3731 = vmatprep.mubr.msk.bf16.mxu0 %vm544_vm0, %v5157_v11  ;;  %2095 = vmatprep.subr.bf16.mxu1 %v1496_v8  ;;  %v951_v8 = vld [vmem:[%s4745_s22 + $0x158] sm:$0xff]  ;;  %v1517_v58 = vpack.c.bf16 %v1188_v63, %v1181_v62  ;;  %v1531_v63 = vpack.c.bf16 %v1216_v7, %v1209_v49 }
 0x315   : > { %3797 = vmatpush3.bf16.msra.mxu0 %v1483_v16  ;;  %v1018_v16 = vmul.f32 %v5097_v3, %v946_v1  ;;  %v1023_v22 = vmul.f32 %v5082_v53, %v951_v8  ;;  %v1022_v1 = vmul.f32 %v5097_v3, %v950_v32  ;;  %v1208_v8 = vld [vmem:[#allocation5 + $0x480] sm:$0xff]  ;;  %v1545_v32 = vpack.c.bf16 %v1244_v29, %v1237_v26  ;;  %v1299_v29 = vld [vmem:[#allocation5 + $0x758] sm:$0xff] }
 0x316   : > { %3798 = vmatprep.subr.bf16.mxu0 %v1546_v19  ;;  %v1187_v19 = vld [vmem:[#allocation5 + $0x3d8] sm:$0xff]  ;;  %v1292_v26 = vld [vmem:[#allocation5 + $0x720] sm:$0xff] }
 0x317   : > { %2096 = vmatpush1.bf16.msra.mxu1 %v1495_v56  ;;  %v1195_v56 = vld [vmem:[#allocation5 + $0x418] sm:$0xff]  ;;  %v1516_v31 = vpack.c.bf16 %v1187_v19, %v1180_v18  ;;  %v5190_v36 = vpack.c.bf16 %v1018_v16, %v1014_v14  ;;  %v1511_v14 = vpack.c.bf16 %v1175_v43, %v1168_v60  ;;  %v1530_v16 = vpack.c.bf16 %v1215_v33, %v1208_v8  ;;  %v1272_v60 = vld [vmem:[#allocation5 + $0x680] sm:$0xff]  ;;  %v1294_v8 = vld [vmem:[#allocation5 + $0x730] sm:$0xff] }
 0x318   : > { %2097 = vmatprep.subr.bf16.mxu1 %v1503_v25  ;;  %v1202_v25 = vld [vmem:[#allocation5 + $0x450] sm:$0xff]  ;;  %v1301_v33 = vld [vmem:[#allocation5 + $0x768] sm:$0xff] }
 0x319   : > { %3799 = vmatpush3.bf16.msra.mxu0 %v1490_v39  ;;  %v1524_v38 = vpack.c.bf16 %v1202_v25, %v1195_v56  ;;  %v1194_v39 = vld [vmem:[#allocation5 + $0x410] sm:$0xff] }
 0x31a   : > { %1839 = vmatmul.mubr.bf16.gmra.mrb[16].mxu1 %v5172_v54  ;;  %2045 = vmatmul.mubr.bf16.gmra.mrb[20].mxu0 %v5172_v54  ;;  %v1523_v62 = vpack.c.bf16 %v1201_v40, %v1194_v39  ;;  %v958_v56 = vld [vmem:[%s4745_s22 + $0x190] sm:$0xff] }
 0x31b   : > { %2098 = vmatpush1.bf16.msra.mxu1 %v1502_v46  ;;  %3725 = vmatprep.mubr.msk.bf16.mxu1 %vm544_vm0, %v5174_v61  ;;  %v5193_v46 = vpack.c.bf16 %v1027_v24, %v1023_v22  ;;  %v1222_v22 = vld [vmem:[#allocation5 + $0x4f0] sm:$0xff]  ;;  %v1229_v24 = vld [vmem:[#allocation5 + $0x528] sm:$0xff]  ;;  %v1030_v44 = vmul.f32 %v5097_v3, %v958_v56  ;;  %v1243_v39 = vld [vmem:[#allocation5 + $0x598] sm:$0xff] }
 0x31c   : > { %3732 = vmatprep.mubr.msk.bf16.mxu0 %vm544_vm0, %v5174_v61  ;;  %2099 = vmatprep.subr.bf16.mxu1 %v1510_v57  ;;  %v963_v57 = vld [vmem:[%s4745_s22 + $0x1b8] sm:$0xff] }
 0x31d   : > { %3800 = vmatprep.subr.bf16.mxu0 %v1553_v4  ;;  %v1026_v4 = vmul.f32 %v5097_v3, %v954_v42  ;;  %v1251_v40 = vld [vmem:[#allocation5 + $0x5d8] sm:$0xff]  ;;  %v1258_v42 = vld [vmem:[#allocation5 + $0x610] sm:$0xff] }
 0x31e   : > { %3801 = vmatpush3.bf16.msra.mxu0 %v1497_v9  ;;  %v1031_v9 = vmul.f32 %v5082_v53, %v959_v51  ;;  %v1552_v51 = vpack.c.bf16 %v1258_v42, %v1251_v40  ;;  %v1306_v40 = vld [vmem:[#allocation5 + $0x790] sm:$0xff]  ;;  %v1313_v42 = vld [vmem:[#allocation5 + $0x7c8] sm:$0xff] }
 0x31f   : > { %2100 = vmatpush1.bf16.msra.mxu1 %v1509_v48  ;;  %3802 = vmatprep.subr.bf16.mxu0 %v1560_v12  ;;  %v1035_v48 = vmul.f32 %v5082_v53, %v963_v57  ;;  %v1223_v12 = vld [vmem:[#allocation5 + $0x4f8] sm:$0xff]  ;;  %v5207_v18 = vpack.c.bf16 %v1026_v4, %v1022_v1  ;;  %v1257_v57 = vld [vmem:[#allocation5 + $0x608] sm:$0xff]  ;;  %v1286_v4 = vld [vmem:[#allocation5 + $0x6f0] sm:$0xff] }
 0x320   : > { %2101 = vmatprep.subr.bf16.mxu1 %v1517_v58  ;;  %v1230_v58 = vld [vmem:[#allocation5 + $0x530] sm:$0xff]  ;;  %v1279_v1 = vld [vmem:[#allocation5 + $0x6b8] sm:$0xff] }
 0x321   : > { %v1538_v19 = vpack.c.bf16 %v1230_v58, %v1223_v12  ;;  %v5210_v25 = vpack.c.bf16 %v1035_v48, %v1031_v9  ;;  %v962_v53 = vld [vmem:[%s4745_s22 + $0x1b0] sm:$0xff]  ;;  %v1566_v48 = vpack.c.bf16 %v1286_v4, %v1279_v1  ;;  %v1285_v58 = vld [vmem:[#allocation5 + $0x6e8] sm:$0xff]  ;;  %s452_s22 = smul.u32 14, %s4518_s15 }
 0x322   : > { %1849 = vmatmul.mubr.bf16.gmra.mrb[20].mxu1 %v5190_v36  ;;  %2055 = vmatmul.mubr.bf16.gmra.mrb[24].mxu0 %v5190_v36  ;;  %v1034_v35 = vmul.f32 %v5097_v3, %v962_v53  ;;  %v1278_v12 = vld [vmem:[#allocation5 + $0x6b0] sm:$0xff] }
 0x323   : > { %2102 = vmatpush1.bf16.msra.mxu1 %v1516_v31  ;;  %3726 = vmatprep.mubr.msk.bf16.mxu1 %vm544_vm0, %v5193_v46  ;;  %v1537_v31 = vpack.c.bf16 %v1229_v24, %v1222_v22  ;;  %v1308_v22 = vld [vmem:[#allocation5 + $0x7a0] sm:$0xff]  ;;  %v1315_v24 = vld [vmem:[#allocation5 + $0x7d8] sm:$0xff]  ;;  %v1350_v4 = vld [vmem:[#allocation5 + $0x8f0] sm:$0xff]  ;;  %p453_p2 = scmp.lt.s32.totalorder %s452_s22, 55 }
 0x324   : > { %3733 = vmatprep.mubr.msk.bf16.mxu0 %vm544_vm0, %v5193_v46  ;;  %2103 = vmatprep.subr.bf16.mxu1 %v1524_v38  ;;  %v1236_v38 = vld [vmem:[#allocation5 + $0x560] sm:$0xff]  ;;  %v5222_v7 = vpack.c.bf16 %v1034_v35, %v1030_v44  ;;  %v1581_v53 = vpack.c.bf16 %v1315_v24, %v1308_v22  ;;  %v1322_v44 = vld [vmem:[#allocation5 + $0x810] sm:$0xff]  ;;  %v1329_v35 = vld [vmem:[#allocation5 + $0x848] sm:$0xff] }
 0x325   : > { %3803 = vmatpush3.bf16.msra.mxu0 %v1504_v0  ;;  %v1544_v49 = vpack.c.bf16 %v1243_v39, %v1236_v38  ;;  %v1250_v0 = vld [vmem:[#allocation5 + $0x5d0] sm:$0xff]  ;;  %v1572_v38 = vpack.c.bf16 %v1299_v29, %v1292_v26  ;;  %s7182_s22 = smov (!%p453_p2, %s452_s22), 55 }
 0x326   : > { %3804 = vmatprep.subr.bf16.mxu0 %v1567_v59  ;;  %v1265_v59 = vld [vmem:[#allocation5 + $0x648] sm:$0xff]  ;;  %v1551_v3 = vpack.c.bf16 %v1257_v57, %v1250_v0  ;;  %v1588_v0 = vpack.c.bf16 %v1329_v35, %v1322_v44  ;;  %v1336_v57 = vld [vmem:[#allocation5 + $0x880] sm:$0xff]  ;;  %v1370_v29 = vld [vmem:[#allocation5 + $0x990] sm:$0xff]  ;;  %s3712_s26 = sshll.u32 %s7182_s22, 3  ;;  %s6702_s22 = scalar_lea.hbm %s7174_s0, %s4087_s28 }
 0x327   : > { %2104 = vmatpush1.bf16.msra.mxu1 %v1523_v62  ;;  %v1559_v43 = vpack.c.bf16 %v1272_v60, %v1265_v59  ;;  %v1264_v62 = vld [vmem:[#allocation5 + $0x640] sm:$0xff]  ;;  %v1343_v59 = vld [vmem:[#allocation5 + $0x8b8] sm:$0xff]  ;;  %v1579_v60 = vpack.c.bf16 %v1313_v42, %v1306_v40  ;;  %v1362_v44 = vld [vmem:[#allocation5 + $0x950] sm:$0xff]  ;;  %s5275_s14 = scalar_lea.vmem %s6762_s7, %s3712_s26  ;;  %s5318_s18 = scalar_lea.vmem %s6763_s8, %s3712_s26 }
 0x328   : > { %2105 = vmatprep.subr.bf16.mxu1 %v1531_v63  ;;  %v1271_v63 = vld [vmem:[#allocation5 + $0x678] sm:$0xff]  ;;  %v1595_v1 = vpack.c.bf16 %v1343_v59, %v1336_v57  ;;  %v1369_v35 = vld [vmem:[#allocation5 + $0x988] sm:$0xff]  ;;  %v1384_v40 = vld [vmem:[#allocation5 + $0xa00] sm:$0xff]  ;;  %s3535_s26 = scalar_lea.sflag [#allocation4], %s4741_s16 }
 0x329   : > { %3805 = vmatpush3.bf16.msra.mxu0 %v1511_v14  ;;  %v1558_v9 = vpack.c.bf16 %v1271_v63, %v1264_v62  ;;  %v1293_v14 = vld [vmem:[#allocation5 + $0x728] sm:$0xff]  ;;  %v1327_v62 = vld [vmem:[#allocation5 + $0x838] sm:$0xff]  ;;  %v1392_v42 = vld [vmem:[#allocation5 + $0xa40] sm:$0xff] }
 0x32a   : > { %1859 = vmatmul.mubr.bf16.gmra.mrb[24].mxu1 %v5207_v18  ;;  %2065 = vmatmul.mubr.bf16.gmra.mrb[28].mxu0 %v5207_v18  ;;  %v1335_v63 = vld [vmem:[#allocation5 + $0x878] sm:$0xff]  ;;  %v1376_v57 = vld [vmem:[#allocation5 + $0x9c0] sm:$0xff] }
 0x32b   : > { %2106 = vmatpush1.bf16.msra.mxu1 %v1530_v16  ;;  %3727 = vmatprep.mubr.msk.bf16.mxu1 %vm544_vm0, %v5210_v25  ;;  %v1574_v16 = vpack.c.bf16 %v1301_v33, %v1294_v8  ;;  %v1357_v8 = vld [vmem:[#allocation5 + $0x928] sm:$0xff]  ;;  %v1383_v59 = vld [vmem:[#allocation5 + $0x9f8] sm:$0xff] }
 0x32c   : > { %3734 = vmatprep.mubr.msk.bf16.mxu0 %vm544_vm0, %v5210_v25  ;;  %2107 = vmatprep.subr.bf16.mxu1 %v1538_v19  ;;  %v1300_v19 = vld [vmem:[#allocation5 + $0x760] sm:$0xff] }
 0x32d   : > { %2380 = vmatprep.subr.bf16.mxu0 %v4443_v13  ;;  %v1573_v56 = vpack.c.bf16 %v1300_v19, %v1293_v14  ;;  %v1356_v14 = vld [vmem:[#allocation5 + $0x920] sm:$0xff]  ;;  %v1371_v19 = vld [vmem:[#allocation5 + $0x998] sm:$0xff] }
 0x32f   : > { %2108 = vmatpush1.bf16.msra.mxu1 %v1537_v31  ;;  %v1307_v31 = vld [vmem:[#allocation5 + $0x798] sm:$0xff] }
 0x330   : > { %2109 = vmatprep.subr.bf16.mxu1 %v1545_v32  ;;  %v1314_v32 = vld [vmem:[#allocation5 + $0x7d0] sm:$0xff] }
 0x331   : > { %v1580_v39 = vpack.c.bf16 %v1314_v32, %v1307_v31  ;;  %v1385_v31 = vld [vmem:[#allocation5 + $0xa08] sm:$0xff] }
 0x332   : > { %1869 = vmatmul.mubr.bf16.gmra.mrb[28].mxu1 %v5222_v7  ;;  %2075 = vmatmul.mubr.bf16.gmra.mrb[32].mxu0 %v5222_v7 }
 0x333   : > { %2110 = vmatpush1.bf16.msra.mxu1 %v1544_v49  ;;  %2117 = vmatprep.mubr.bf16.mxu1 %v4989_v23  ;;  %v1321_v49 = vld [vmem:[#allocation5 + $0x808] sm:$0xff] }
 0x334   : > { %2323 = vmatprep.mubr.bf16.mxu0 %v4989_v23  ;;  %2111 = vmatprep.subr.bf16.mxu1 %v1552_v51  ;;  %v1565_v23 = vpack.c.bf16 %v1285_v58, %v1278_v12  ;;  %v1328_v51 = vld [vmem:[#allocation5 + $0x840] sm:$0xff]  ;;  %v1602_v12 = vpack.c.bf16 %v1357_v8, %v1350_v4  ;;  %v1349_v58 = vld [vmem:[#allocation5 + $0x8e8] sm:$0xff] }
 0x335   : > { %v1601_v24 = vpack.c.bf16 %v1356_v14, %v1349_v58  ;;  %v1405_v8 = vld [vmem:[#allocation5 + $0xaa8] sm:$0xff]  ;;  %v1404_v14 = vld [vmem:[#allocation5 + $0xaa0] sm:$0xff] }
 0x337   : > { %2112 = vmatpush1.bf16.msra.mxu1 %v1551_v3  ;;  %v1587_v3 = vpack.c.bf16 %v1328_v51, %v1321_v49  ;;  %v1399_v49 = vld [vmem:[#allocation5 + $0xa78] sm:$0xff]  ;;  %v1607_v51 = vpack.c.bf16 %v1369_v35, %v1362_v44 }
 0x338   : > { %2113 = vmatprep.subr.bf16.mxu1 %v1559_v43  ;;  %v1320_v43 = vld [vmem:[#allocation5 + $0x800] sm:$0xff] }
 0x339   : > { %v1586_v33 = vpack.c.bf16 %v1327_v62, %v1320_v43  ;;  %v1406_v43 = vld [vmem:[#allocation5 + $0xab0] sm:$0xff]  ;;  %v1413_v62 = vld [vmem:[#allocation5 + $0xae8] sm:$0xff] }
 0x33a   : > { %2324 = vmatmul.mubr.bf16.vlgmr.msra.gmra.mrb[36].mxu0 %v4992_v28  ;;  %v1630_v4 = vpack.c.bf16 %v1413_v62, %v1406_v43  ;;  %v3259_v43 = vld [vmem:[%s5318_s18 + $0x28] sm:$0xff] }
 0x33b   : > { %2114 = vmatpush1.bf16.msra.mxu1 %v1558_v9  ;;  %2331 = vmatprep.mubr.bf16.mxu0 %v4997_v34  ;;  %v1334_v9 = vld [vmem:[#allocation5 + $0x870] sm:$0xff] }
 0x33c   : > { %2115 = vmatprep.subr.bf16.mxu1 %v1566_v48  ;;  %2381 = vmatpush1.bf16.msra.mxu0 %v1574_v16  ;;  %v1341_v48 = vld [vmem:[#allocation5 + $0x8a8] sm:$0xff]  ;;  %v1364_v16 = vld [vmem:[#allocation5 + $0x960] sm:$0xff] }
 0x33d   : > { %2382 = vmatprep.subr.bf16.mxu0 %v4443_v13  ;;  %v1593_v22 = vpack.c.bf16 %v1341_v48, %v1334_v9  ;;  %v1609_v26 = vpack.c.bf16 %v1371_v19, %v1364_v16  ;;  %v1427_v9 = vld [vmem:[#allocation5 + $0xb58] sm:$0xff]  ;;  %v1426_v19 = vld [vmem:[#allocation5 + $0xb50] sm:$0xff] }
 0x33e   : > { %v1411_v16 = vld [vmem:[#allocation5 + $0xad8] sm:$0xff] }
 0x33f   : > { %2116 = vmatpush1.bf16.msra.mxu1 %v1565_v23  ;;  %v1348_v23 = vld [vmem:[#allocation5 + $0x8e0] sm:$0xff] }
 0x340   : > { %2188 = vmatprep.subr.bf16.mxu1 %v1573_v56  ;;  %2383 = vmatpush1.bf16.msra.mxu0 %v1581_v53  ;;  %v1355_v56 = vld [vmem:[#allocation5 + $0x918] sm:$0xff]  ;;  %v1378_v53 = vld [vmem:[#allocation5 + $0x9d0] sm:$0xff] }
 0x341   : > { %2384 = vmatprep.subr.bf16.mxu0 %v4443_v13 }
 0x342   : > { %2118 = vmatmul.mubr.bf16.vlgmr.msra.gmra.mrb[32].mxu1 %v4992_v28  ;;  %2332 = vmatmul.mubr.bf16.gmra.mrb[40].mxu0 %v5013_v5  ;;  %v1342_v28 = vld [vmem:[#allocation5 + $0x8b0] sm:$0xff] }
 0x343   : > { %2127 = vmatprep.mubr.bf16.mxu1 %v4997_v34  ;;  %2189 = vmatpush1.bf16.msra.mxu1 %v1572_v38  ;;  %v1594_v34 = vpack.c.bf16 %v1342_v28, %v1335_v63  ;;  %v1616_v38 = vpack.c.bf16 %v1385_v31, %v1378_v53  ;;  %v1397_v28 = vld [vmem:[#allocation5 + $0xa68] sm:$0xff]  ;;  %v1455_v53 = vld [vmem:[#allocation5 + $0xc38] sm:$0xff] }
 0x344   : > { %2339 = vmatprep.mubr.bf16.mxu0 %v5016_v37  ;;  %2190 = vmatprep.subr.bf16.mxu1 %v1580_v39  ;;  %v1377_v39 = vld [vmem:[#allocation5 + $0x9c8] sm:$0xff] }
 0x345   : > { %2385 = vmatpush1.bf16.msra.mxu0 %v1588_v0  ;;  %v1615_v0 = vpack.c.bf16 %v1384_v40, %v1377_v39  ;;  %v1433_v31 = vld [vmem:[#allocation5 + $0xb88] sm:$0xff]  ;;  %v1447_v39 = vld [vmem:[#allocation5 + $0xbf8] sm:$0xff]  ;;  %v1454_v40 = vld [vmem:[#allocation5 + $0xc30] sm:$0xff] }
 0x346   : > { %2386 = vmatprep.subr.bf16.mxu0 %v4443_v13 }
 0x347   : > { %2191 = vmatpush1.bf16.msra.mxu1 %v1579_v60  ;;  %v1623_v60 = vpack.c.bf16 %v1399_v49, %v1392_v42  ;;  %v1650_v42 = vpack.c.bf16 %v1454_v40, %v1447_v39  ;;  %v1446_v49 = vld [vmem:[#allocation5 + $0xbf0] sm:$0xff] }
 0x348   : > { %2192 = vmatprep.subr.bf16.mxu1 %v1587_v3  ;;  %v1398_v3 = vld [vmem:[#allocation5 + $0xa70] sm:$0xff] }
 0x349   : > { %2387 = vmatpush1.bf16.msra.mxu0 %v1595_v1  ;;  %v1390_v1 = vld [vmem:[#allocation5 + $0xa30] sm:$0xff] }
 0x34a   : > { %2128 = vmatmul.mubr.bf16.gmra.mrb[36].mxu1 %v5013_v5  ;;  %2340 = vmatmul.mubr.bf16.gmra.mrb[44].mxu0 %v5030_v45  ;;  %v1363_v5 = vld [vmem:[#allocation5 + $0x958] sm:$0xff]  ;;  %v1621_v48 = vpack.c.bf16 %v1397_v28, %v1390_v1 }
 0x34b   : > { %2137 = vmatprep.mubr.bf16.mxu1 %v5016_v37  ;;  %2347 = vmatprep.mubr.bf16.mxu0 %v5033_v52  ;;  %v1600_v37 = vpack.c.bf16 %v1355_v56, %v1348_v23  ;;  %v1608_v32 = vpack.c.bf16 %v1370_v29, %v1363_v5  ;;  %v1425_v5 = vld [vmem:[#allocation5 + $0xb48] sm:$0xff]  ;;  %v1448_v29 = vld [vmem:[#allocation5 + $0xc00] sm:$0xff] }
 0x34c   : > { %2193 = vmatpush1.bf16.msra.mxu1 %v1586_v33  ;;  %2388 = vmatprep.subr.bf16.mxu0 %v4443_v13  ;;  %v1412_v33 = vld [vmem:[#allocation5 + $0xae0] sm:$0xff]  ;;  %v1651_v44 = vpack.c.bf16 %v1455_v53, %v1448_v29 }
 0x34d   : > { %2194 = vmatprep.subr.bf16.mxu1 %v1594_v34  ;;  %2389 = vmatpush1.bf16.msra.mxu0 %v1602_v12  ;;  %v1420_v34 = vld [vmem:[#allocation5 + $0xb20] sm:$0xff]  ;;  %v1629_v12 = vpack.c.bf16 %v1412_v33, %v1405_v8 }
 0x34e   : > { %2390 = vmatprep.subr.bf16.mxu0 %v4443_v13  ;;  %v1637_v58 = vpack.c.bf16 %v1427_v9, %v1420_v34 }
 0x350   : > { %2195 = vmatpush1.bf16.msra.mxu1 %v1593_v22  ;;  %v1434_v22 = vld [vmem:[#allocation5 + $0xb90] sm:$0xff] }
 0x351   : > { %2196 = vmatprep.subr.bf16.mxu1 %v1601_v24  ;;  %2391 = vmatpush1.bf16.msra.mxu0 %v1609_v26  ;;  %v1441_v24 = vld [vmem:[#allocation5 + $0xbc8] sm:$0xff]  ;;  %v1418_v26 = vld [vmem:[#allocation5 + $0xb10] sm:$0xff] }
 0x352   : > { %2138 = vmatmul.mubr.bf16.gmra.mrb[40].mxu1 %v5030_v45  ;;  %2348 = vmatmul.mubr.bf16.gmra.mrb[48].mxu0 %v5046_v21  ;;  %v1391_v45 = vld [vmem:[#allocation5 + $0xa38] sm:$0xff]  ;;  %v1644_v56 = vpack.c.bf16 %v1441_v24, %v1434_v22 }
 0x353   : > { %2147 = vmatprep.mubr.bf16.mxu1 %v5033_v52  ;;  %2355 = vmatprep.mubr.bf16.mxu0 %v5049_v27  ;;  %v1614_v52 = vpack.c.bf16 %v1383_v59, %v1376_v57  ;;  %v1622_v63 = vpack.c.bf16 %v1398_v3, %v1391_v45  ;;  %v3076_v57 = vld [vmem:[%s5275_s14 + $0x20] sm:$0xff]  ;;  %v3081_v59 = vld [vmem:[%s5275_s14 + $0x48] sm:$0xff]  ;;  %v3257_v3 = vld [vmem:[%s5318_s18 + $0x18] sm:$0xff] }
 0x354   : > { %2197 = vmatpush1.bf16.msra.mxu1 %v1600_v37  ;;  %2392 = vmatprep.subr.bf16.mxu0 %v4443_v13  ;;  %v1440_v37 = vld [vmem:[#allocation5 + $0xbc0] sm:$0xff] }
 0x355   : > { %2198 = vmatprep.subr.bf16.mxu1 %v1608_v32  ;;  %2393 = vmatpush1.bf16.msra.mxu0 %v1616_v38  ;;  %v1635_v32 = vpack.c.bf16 %v1425_v5, %v1418_v26  ;;  %v1643_v35 = vpack.c.bf16 %v1440_v37, %v1433_v31  ;;  %v1432_v38 = vld [vmem:[#allocation5 + $0xb80] sm:$0xff] }
 0x356   : > { %2394 = vmatprep.subr.bf16.mxu0 %v4443_v13  ;;  %v3255_v45 = vld [vmem:[%s5318_s18 + $0x8] sm:$0xff] }
 0x358   : > { %2199 = vmatpush1.bf16.msra.mxu1 %v1607_v51  ;;  %v1453_v51 = vld [vmem:[#allocation5 + $0xc28] sm:$0xff] }
 0x359   : > { %2200 = vmatprep.subr.bf16.mxu1 %v1615_v0  ;;  %2395 = vmatpush1.bf16.msra.mxu0 %v1623_v60  ;;  %v3075_v0 = vld [vmem:[%s5275_s14 + $0x18] sm:$0xff]  ;;  %v3260_v60 = vld [vmem:[%s5318_s18 + $0x30] sm:$0xff] }
 0x35a   : > { %2148 = vmatmul.mubr.bf16.gmra.mrb[44].mxu1 %v5046_v21  ;;  %2356 = vmatmul.mubr.bf16.gmra.mrb[52].mxu0 %v5062_v2  ;;  %v1419_v21 = vld [vmem:[#allocation5 + $0xb18] sm:$0xff] }
 0x35b   : > { %2157 = vmatprep.mubr.bf16.mxu1 %v5049_v27  ;;  %2363 = vmatprep.mubr.bf16.mxu0 %v5065_v10  ;;  %v1628_v27 = vpack.c.bf16 %v1411_v16, %v1404_v14  ;;  %v1636_v23 = vpack.c.bf16 %v1426_v19, %v1419_v21 }
 0x35c   : > { %2201 = vmatpush1.bf16.msra.mxu1 %v1614_v52  ;;  %2396 = vmatprep.subr.bf16.mxu0 %v4443_v13 }
 0x35d   : > { %2202 = vmatprep.subr.bf16.mxu1 %v1622_v63  ;;  %2397 = vmatpush1.bf16.msra.mxu0 %v1630_v4 }
 0x35e   : > { %2398 = vmatprep.subr.bf16.mxu0 %v4443_v13 }
 0x360   : > { %2203 = vmatpush1.bf16.msra.mxu1 %v1621_v48 }
 0x361   : > { %2204 = vmatprep.subr.bf16.mxu1 %v1629_v12  ;;  %2399 = vmatpush1.bf16.msra.mxu0 %v1637_v58 }
 0x362   : > { %2158 = vmatmul.mubr.bf16.gmra.mrb[48].mxu1 %v5062_v2  ;;  %2364 = vmatmul.mubr.bf16.gmra.mrb[56].mxu0 %v5078_v47  ;;  %v1439_v2 = vld [vmem:[#allocation5 + $0xbb8] sm:$0xff] }
 0x363   : > { %2167 = vmatprep.mubr.bf16.mxu1 %v5065_v10  ;;  %2371 = vmatprep.mubr.bf16.mxu0 %v5084_v55  ;;  %v1642_v10 = vpack.c.bf16 %v1439_v2, %v1432_v38 }
 0x364   : > { %2205 = vmatpush1.bf16.msra.mxu1 %v1628_v27  ;;  %2400 = vmatprep.subr.bf16.mxu0 %v4443_v13 }
 0x365   : > { %2206 = vmatprep.subr.bf16.mxu1 %v1636_v23  ;;  %2401 = vmatpush1.bf16.msra.mxu0 %v1644_v56 }
 0x366   : > { %2402 = vmatprep.subr.bf16.mxu0 %v4443_v13  ;;  %v1649_v13 = vpack.c.bf16 %v1453_v51, %v1446_v49 }
 0x368   : > { %2207 = vmatpush1.bf16.msra.mxu1 %v1635_v32 }
 0x369   : > { %2403 = vmatpush1.bf16.msra.mxu0 %v1651_v44  ;;  %2208 = vmatprep.subr.bf16.mxu1 %v1643_v35 }
 0x36a   : > { %2168 = vmatmul.mubr.bf16.gmra.mrb[52].mxu1 %v5078_v47  ;;  %2372 = vmatmul.mubr.bf16.gmra.mrb[60].mxu0 %v5099_v15  ;;  %v3073_v47 = vld [vmem:[%s5275_s14 + $0x8] sm:$0xff] }
 0x36b   : > { %2177 = vmatprep.mubr.bf16.mxu1 %v5084_v55  ;;  %3742 = vmatprep.mubr.msk.bf16.mxu0 %vm544_vm0, %v5101_v17  ;;  %v3074_v55 = vld [vmem:[%s5275_s14 + $0x10] sm:$0xff] }
 0x36c   : > { %2209 = vmatpush1.bf16.msra.mxu1 %v1642_v10  ;;  %3093 = vperm.xlu1 %4136, %v3073_v47  }
 0x36d   : > { %2210 = vmatprep.subr.bf16.mxu1 %v1650_v42 }
 0x370   : > { %2211 = vmatpush1.bf16.msra.mxu1 %v1649_v13  ;;  %3098 = vperm.xlu1 %4136, %v3074_v55  }
 0x372   : > { %2178 = vmatmul.mubr.bf16.gmra.mrb[56].mxu1 %v5099_v15  ;;  %2413 = vmatmul.mubr.bf16.vlgmr.msra.gmra.mrb[64].mxu0 %v5118_v41  ;;  %v3077_v15 = vld [vmem:[%s5275_s14 + $0x28] sm:$0xff] }
 0x373   : > { %3735 = vmatprep.mubr.msk.bf16.mxu1 %vm544_vm0, %v5101_v17  ;;  %3743 = vmatprep.mubr.msk.bf16.mxu0 %vm544_vm0, %v5121_v50  ;;  %v3078_v17 = vld [vmem:[%s5275_s14 + $0x30] sm:$0xff] }
 0x374   : > { %3103 = vperm.xlu1 %4136, %v3075_v0  }
 0x378   : > { %3108 = vperm.xlu1 %4136, %v3076_v57  }
 0x37a   : > { %2221 = vmatmul.mubr.bf16.vlgmr.msra.gmra.mrb[32].mxu1 %v5118_v41  ;;  %2421 = vmatmul.mubr.bf16.gmra.mrb[68].mxu0 %v5136_v20  ;;  %v3079_v41 = vld [vmem:[%s5275_s14 + $0x38] sm:$0xff] }
 0x37b   : > { %3736 = vmatprep.mubr.msk.bf16.mxu1 %vm544_vm0, %v5121_v50  ;;  %3744 = vmatprep.mubr.msk.bf16.mxu0 %vm544_vm0, %v5138_v30  ;;  %v3080_v50 = vld [vmem:[%s5275_s14 + $0x40] sm:$0xff] }
 0x37c   : > { %3113 = vperm.xlu1 %4136, %v3077_v15  }
 0x380   : > { %3118 = vperm.xlu1 %4136, %v3078_v17  }
 0x382   : > { %2231 = vmatmul.mubr.bf16.gmra.mrb[36].mxu1 %v5136_v20  ;;  %2429 = vmatmul.mubr.bf16.gmra.mrb[72].mxu0 %v5154_v6  ;;  %v3082_v20 = vld [vmem:[%s5275_s14 + $0x50] sm:$0xff] }
 0x383   : > { %3737 = vmatprep.mubr.msk.bf16.mxu1 %vm544_vm0, %v5138_v30  ;;  %3745 = vmatprep.mubr.msk.bf16.mxu0 %vm544_vm0, %v5157_v11  ;;  %v3084_v30 = vld [vmem:[%s5275_s14 + $0x60] sm:$0xff] }
 0x384   : > { %3123 = vperm.xlu1 %4136, %v3079_v41  }
 0x388   : > { %3128 = vperm.xlu1 %4136, %v3080_v50  }
 0x38a   : > { %2241 = vmatmul.mubr.bf16.gmra.mrb[40].mxu1 %v5154_v6  ;;  %2437 = vmatmul.mubr.bf16.gmra.mrb[76].mxu0 %v5172_v54  ;;  %v3254_v6 = vld [vmem:[%s5318_s18] sm:$0xff] }
 0x38b   : > { %3738 = vmatprep.mubr.msk.bf16.mxu1 %vm544_vm0, %v5157_v11  ;;  %3746 = vmatprep.mubr.msk.bf16.mxu0 %vm544_vm0, %v5174_v61  ;;  %v3256_v11 = vld [vmem:[%s5318_s18 + $0x10] sm:$0xff] }
 0x38c   : > { %3138 = vperm.xlu1 %4136, %v3082_v20  }
 0x390   : > { %3148 = vperm.xlu1 %4136, %v3084_v30  }
 0x392   : > { %2251 = vmatmul.mubr.bf16.gmra.mrb[44].mxu1 %v5172_v54  ;;  %2445 = vmatmul.mubr.bf16.gmra.mrb[80].mxu0 %v5190_v36  ;;  %v3072_v54 = vld [vmem:[%s5275_s14] sm:$0xff] }
 0x393   : > { %3739 = vmatprep.mubr.msk.bf16.mxu1 %vm544_vm0, %v5174_v61  ;;  %3747 = vmatprep.mubr.msk.bf16.mxu0 %vm544_vm0, %v5193_v46  ;;  %v3258_v61 = vld [vmem:[%s5318_s18 + $0x20] sm:$0xff] }
 0x394   : > { %3270 = vperm.xlu1 %4136, %v3254_v6   ;;  %3088 = vperm.xlu0 %4135, %v3072_v54  }
 0x398   : > { %3280 = vperm.xlu1 %4136, %v3256_v11   ;;  %3133 = vperm.xlu0 %4135, %v3081_v59  }
 0x39a   : > { %2261 = vmatmul.mubr.bf16.gmra.mrb[48].mxu1 %v5190_v36  ;;  %2453 = vmatmul.mubr.bf16.gmra.mrb[84].mxu0 %v5207_v18  ;;  %v3083_v36 = vld [vmem:[%s5275_s14 + $0x58] sm:$0xff] }
 0x39b   : > { %3740 = vmatprep.mubr.msk.bf16.mxu1 %vm544_vm0, %v5193_v46  ;;  %3748 = vmatprep.mubr.msk.bf16.mxu0 %vm544_vm0, %v5210_v25  ;;  %v3085_v46 = vld [vmem:[%s5275_s14 + $0x68] sm:$0xff]  ;;  %s4355_s14 = sshll.u32 %s4444_s9, 4  ;;  %s4356_s14 = int_to_ptr.vmem [resolvable:$false] %s4355_s14 }
 0x39c   : > { %3290 = vperm.xlu1 %4136, %v3258_v61   ;;  %3143 = vperm.xlu0 %4135, %v3083_v36   ;;  %s4357_s20 = scalar_lea.vmem %s4356_s14, 25088  ;;  %p4358_p12 = scmp.lt.s32.totalorder %s6704_s13, %s4356_s14 }
 0x39d   : > { %p4359_p13 = scmp.lt.s32.totalorder %s4357_s20, %s4351_s1 }
 0x39f   : > { %p4360_p7 = por %p4359_p13, %p4358_p12 }
 0x3a0   : > { %3300 = vperm.xlu1 %4136, %v3260_v60   ;;  %3153 = vperm.xlu0 %4135, %v3085_v46  }
 0x3a1   : > { %p4361_p3 = pnand %p4360_p7, %p4354_p11 }
 0x3a2   : > { %2271 = vmatmul.mubr.bf16.gmra.mrb[52].mxu1 %v5207_v18  ;;  %2461 = vmatmul.mubr.bf16.gmra.mrb[88].mxu0 %v5222_v7 }
 0x3a3   : > { %3741 = vmatprep.mubr.msk.bf16.mxu1 %vm544_vm0, %v5210_v25 }
 0x3a4   : > { %3275 = vperm.xlu0 %4135, %v3255_v45  }
 0x3a8   : > { %3285 = vperm.xlu0 %4135, %v3257_v3  }
 0x3aa   : > { %2281 = vmatmul.mubr.bf16.gmra.mrb[56].mxu1 %v5222_v7 }
 0x3ac   : > { %3295 = vperm.xlu0 %4135, %v3259_v43  }
 0x3d5   : > { %v5346_v62 = vpop.f32.mrb[4].mxu1  ;;  %v5348_v18 = vpop.f32.mrb[8].mxu0 }
 0x3d6   : > { %v5350_v52 = vpop.f32.mrb[5].mxu1  ;;  %v5352_v63 = vpop.f32.mrb[9].mxu0 }
 0x3d7   : > { %v2469_v25 = vadd.f32 %v5350_v52, %v5346_v62  ;;  %v5356_v1 = vpop.f32.mrb[6].mxu1  ;;  %v5358_v28 = vpop.f32.mrb[10].mxu0 }
 0x3d8   : > { %v5360_v7 = vpop.f32.mrb[7].mxu1  ;;  %v5362_v4 = vpop.f32.mrb[11].mxu0 }
 0x3d9   : > { %v2470_v8 = vadd.f32 %v2469_v25, %v5348_v18  ;;  %v2479_v33 = vadd.f32 %v5360_v7, %v5356_v1 }
 0x3db   : > { %v5368_v34 = vadd.f32 %v2470_v8, %v5352_v63  ;;  %v2480_v9 = vadd.f32 %v2479_v33, %v5358_v28 }
 0x3dd   : > { %v5372_v48 = vadd.f32 %v2480_v9, %v5362_v4  ;;  %v5374_v12 = vpop.f32.mrb[8].mxu1  ;;  %v5376_v58 = vpop.f32.mrb[12].mxu0 }
 0x3de   : > { %v5378_v14 = vpop.f32.mrb[9].mxu1  ;;  %v5380_v16 = vpop.f32.mrb[13].mxu0 }
 0x3df   : > { %v2488_v21 = vadd.f32 %v5378_v14, %v5374_v12  ;;  %v5384_v19 = vpop.f32.mrb[10].mxu1  ;;  %v5386_v22 = vpop.f32.mrb[14].mxu0 }
 0x3e0   : > { %v5388_v24 = vpop.f32.mrb[11].mxu1  ;;  %v5390_v27 = vpop.f32.mrb[15].mxu0 }
 0x3e1   : > { %v2489_v23 = vadd.f32 %v2488_v21, %v5376_v58  ;;  %v2497_v56 = vadd.f32 %v5388_v24, %v5384_v19 }
 0x3e3   : > { %v5396_v26 = vadd.f32 %v2489_v23, %v5380_v16  ;;  %v2498_v5 = vadd.f32 %v2497_v56, %v5386_v22 }
 0x3e5   : > { %v5400_v29 = vadd.f32 %v2498_v5, %v5390_v27  ;;  %v5402_v53 = vpop.f32.mrb[12].mxu1  ;;  %v5404_v31 = vpop.f32.mrb[16].mxu0 }
 0x3e6   : > { %6920 = vst [vmem:[#allocation19_spill] sm:$0xff] %v5404_v31  ;;  %v5406_v37 = vpop.f32.mrb[13].mxu1  ;;  %v5408_v32 = vpop.f32.mrb[17].mxu0 }
 0x3e7   : > { %6921 = vst [vmem:[#allocation20_spill] sm:$0xff] %v5408_v32  ;;  %v2506_v44 = vadd.f32 %v5406_v37, %v5402_v53  ;;  %v5412_v35 = vpop.f32.mrb[14].mxu1  ;;  %v5414_v38 = vpop.f32.mrb[18].mxu0 }
 0x3e8   : > { %6922 = vst [vmem:[#allocation21_spill] sm:$0xff] %v5412_v35  ;;  %6923 = vst [vmem:[#allocation22_spill] sm:$0xff] %v5414_v38  ;;  %v5416_v2 = vpop.f32.mrb[15].mxu1  ;;  %v5418_v39 = vpop.f32.mrb[19].mxu0 }
 0x3e9   : > { %6924 = vst [vmem:[#allocation23_spill] sm:$0xff] %v5416_v2  ;;  %6925 = vst [vmem:[#allocation24_spill] sm:$0xff] %v5418_v39  ;;  %v2507_v40 = vadd.f32 %v2506_v44, %v5404_v31  ;;  %v2515_v10 = vadd.f32 %v5416_v2, %v5412_v35 }
 0x3eb   : > { %v5424_v42 = vadd.f32 %v2507_v40, %v5408_v32  ;;  %v2516_v49 = vadd.f32 %v2515_v10, %v5414_v38 }
 0x3ed   : > { %v5428_v51 = vadd.f32 %v2516_v49, %v5418_v39  ;;  %v5430_v13 = vpop.f32.mrb[16].mxu1  ;;  %v5432_v47 = vpop.f32.mrb[20].mxu0 }
 0x3ee   : > { %6926 = vst [vmem:[#allocation25_spill] sm:$0xff] %v5430_v13  ;;  %6927 = vst [vmem:[#allocation26_spill] sm:$0xff] %v5432_v47  ;;  %v5434_v55 = vpop.f32.mrb[17].mxu1  ;;  %v5436_v0 = vpop.f32.mrb[21].mxu0 }
 0x3ef   : > { %6928 = vst [vmem:[#allocation27_spill] sm:$0xff] %v5434_v55  ;;  %6929 = vst [vmem:[#allocation28_spill] sm:$0xff] %v5436_v0  ;;  %v2524_v57 = vadd.f32 %v5434_v55, %v5430_v13  ;;  %v5440_v15 = vpop.f32.mrb[18].mxu1  ;;  %v5442_v17 = vpop.f32.mrb[22].mxu0 }
 0x3f0   : > { %6930 = vst [vmem:[#allocation29_spill] sm:$0xff] %v5440_v15  ;;  %6931 = vst [vmem:[#allocation30_spill] sm:$0xff] %v5442_v17  ;;  %v5444_v41 = vpop.f32.mrb[19].mxu1  ;;  %v5446_v50 = vpop.f32.mrb[23].mxu0 }
 0x3f1   : > { %6932 = vst [vmem:[#allocation31_spill] sm:$0xff] %v5444_v41  ;;  %6933 = vst [vmem:[#allocation32_spill] sm:$0xff] %v5446_v50  ;;  %v2525_v20 = vadd.f32 %v2524_v57, %v5432_v47  ;;  %v2533_v30 = vadd.f32 %v5444_v41, %v5440_v15 }
 0x3f3   : > { %v5452_v6 = vadd.f32 %v2525_v20, %v5436_v0  ;;  %v2534_v11 = vadd.f32 %v2533_v30, %v5442_v17 }
 0x3f5   : > { %v5456_v54 = vadd.f32 %v2534_v11, %v5446_v50  ;;  %v5458_v61 = vpop.f32.mrb[20].mxu1  ;;  %v5460_v59 = vpop.f32.mrb[24].mxu0 }
 0x3f6   : > { %6934 = vst [vmem:[#allocation33_spill] sm:$0xff] %v5458_v61  ;;  %6935 = vst [vmem:[#allocation34_spill] sm:$0xff] %v5460_v59  ;;  %v5462_v60 = vpop.f32.mrb[21].mxu1  ;;  %v5464_v36 = vpop.f32.mrb[25].mxu0 }
 0x3f7   : > { %6936 = vst [vmem:[#allocation35_spill] sm:$0xff] %v5462_v60  ;;  %6937 = vst [vmem:[#allocation36_spill] sm:$0xff] %v5464_v36  ;;  %v2542_v46 = vadd.f32 %v5462_v60, %v5458_v61  ;;  %v5468_v45 = vpop.f32.mrb[22].mxu1  ;;  %v5470_v3 = vpop.f32.mrb[26].mxu0 }
 0x3f8   : > { %6938 = vst [vmem:[#allocation37_spill] sm:$0xff] %v5468_v45  ;;  %6939 = vst [vmem:[#allocation38_spill] sm:$0xff] %v5470_v3  ;;  %v5472_v43 = vpop.f32.mrb[23].mxu1  ;;  %v5474_v25 = vpop.f32.mrb[27].mxu0 }
 0x3f9   : > { %6940 = vst [vmem:[#allocation39_spill] sm:$0xff] %v5472_v43  ;;  %6941 = vst [vmem:[#allocation40_spill] sm:$0xff] %v5474_v25  ;;  %v2543_v8 = vadd.f32 %v2542_v46, %v5460_v59  ;;  %v2551_v33 = vadd.f32 %v5472_v43, %v5468_v45 }
 0x3fb   : > { %v5480_v9 = vadd.f32 %v2543_v8, %v5464_v36  ;;  %v2552_v21 = vadd.f32 %v2551_v33, %v5470_v3 }
 0x3fd   : > { %v5484_v23 = vadd.f32 %v2552_v21, %v5474_v25  ;;  %v5486_v56 = vpop.f32.mrb[24].mxu1  ;;  %v5488_v5 = vpop.f32.mrb[28].mxu0 }
 0x3fe   : > { %6942 = vst [vmem:[#allocation41_spill] sm:$0xff] %v5486_v56  ;;  %6943 = vst [vmem:[#allocation42_spill] sm:$0xff] %v5488_v5  ;;  %v5490_v44 = vpop.f32.mrb[25].mxu1  ;;  %v5492_v40 = vpop.f32.mrb[29].mxu0 }
 0x3ff   : > { %6944 = vst [vmem:[#allocation43_spill] sm:$0xff] %v5490_v44  ;;  %6945 = vst [vmem:[#allocation44_spill] sm:$0xff] %v5492_v40  ;;  %v2560_v10 = vadd.f32 %v5490_v44, %v5486_v56  ;;  %v5496_v49 = vpop.f32.mrb[26].mxu1  ;;  %v5498_v57 = vpop.f32.mrb[30].mxu0 }
 0x400   : > { %6946 = vst [vmem:[#allocation45_spill] sm:$0xff] %v5496_v49  ;;  %6947 = vst [vmem:[#allocation46_spill] sm:$0xff] %v5498_v57  ;;  %v5500_v20 = vpop.f32.mrb[27].mxu1  ;;  %v5502_v30 = vpop.f32.mrb[31].mxu0 }
 0x401   : > { %6948 = vst [vmem:[#allocation47_spill] sm:$0xff] %v5500_v20  ;;  %6949 = vst [vmem:[#allocation48_spill] sm:$0xff] %v5502_v30  ;;  %v2561_v11 = vadd.f32 %v2560_v10, %v5488_v5  ;;  %v2569_v46 = vadd.f32 %v5500_v20, %v5496_v49 }
 0x403   : > { %v5508_v8 = vadd.f32 %v2561_v11, %v5492_v40  ;;  %v2570_v33 = vadd.f32 %v2569_v46, %v5498_v57 }
 0x405   : > { %v5512_v21 = vadd.f32 %v2570_v33, %v5502_v30  ;;  %v5514_v44 = vpop.f32.mrb[28].mxu1  ;;  %v5516_v56 = vpop.f32.mrb[32].mxu0 }
 0x406   : > { %6950 = vst [vmem:[#allocation49_spill] sm:$0xff] %v5514_v44  ;;  %6951 = vst [vmem:[#allocation50_spill] sm:$0xff] %v5516_v56  ;;  %v5518_v25 = vpop.f32.mrb[29].mxu1  ;;  %v5520_v3 = vpop.f32.mrb[33].mxu0 }
 0x407   : > { %6952 = vst [vmem:[#allocation51_spill] sm:$0xff] %v5518_v25  ;;  %6953 = vst [vmem:[#allocation52_spill] sm:$0xff] %v5520_v3  ;;  %v2578_v10 = vadd.f32 %v5518_v25, %v5514_v44  ;;  %v5524_v20 = vpop.f32.mrb[30].mxu1  ;;  %v5526_v11 = vpop.f32.mrb[34].mxu0 }
 0x408   : > { %6954 = vst [vmem:[#allocation53_spill] sm:$0xff] %v5524_v20  ;;  %6955 = vst [vmem:[#allocation54_spill] sm:$0xff] %v5526_v11  ;;  %v5528_v49 = vpop.f32.mrb[31].mxu1  ;;  %v5530_v46 = vpop.f32.mrb[35].mxu0 }
 0x409   : > { %6956 = vst [vmem:[#allocation55_spill] sm:$0xff] %v5528_v49  ;;  %6957 = vst [vmem:[#allocation56_spill] sm:$0xff] %v5530_v46  ;;  %v2579_v33 = vadd.f32 %v2578_v10, %v5516_v56  ;;  %v2587_v30 = vadd.f32 %v5528_v49, %v5524_v20 }
 0x40b   : > { %v5536_v57 = vadd.f32 %v2579_v33, %v5520_v3  ;;  %v2588_v40 = vadd.f32 %v2587_v30, %v5526_v11 }
 0x40d   : > { %v5540_v25 = vadd.f32 %v2588_v40, %v5530_v46  ;;  %v3806_v44 = vpop.f32.mrb[36].mxu0 }
 0x40e   : > { %v3807_v5 = vpop.f32.mrb[37].mxu0 }
 0x40f   : > { %v3808_v43 = vadd.f32 %v3807_v5, %v3806_v44  ;;  %v3809_v45 = vpop.f32.mrb[38].mxu0 }
 0x410   : > { %v3810_v36 = vpop.f32.mrb[39].mxu0 }
 0x411   : > { %v3811_v59 = vadd.f32 %v3810_v36, %v3809_v45 }
 0x415   : > { %v3812_v60 = vpop.f32.mrb[40].mxu0 }
 0x416   : > { %v3813_v61 = vpop.f32.mrb[41].mxu0 }
 0x417   : > { %v3814_v10 = vadd.f32 %v3813_v61, %v3812_v60  ;;  %v3815_v56 = vpop.f32.mrb[42].mxu0 }
 0x418   : > { %v3816_v50 = vpop.f32.mrb[43].mxu0 }
 0x419   : > { %v3817_v49 = vadd.f32 %v3816_v50, %v3815_v56 }
 0x41d   : > { %v3818_v20 = vpop.f32.mrb[44].mxu0 }
 0x41e   : > { %v3819_v33 = vpop.f32.mrb[45].mxu0 }
 0x41f   : > { %v3820_v3 = vadd.f32 %v3819_v33, %v3818_v20  ;;  %v3821_v17 = vpop.f32.mrb[46].mxu0 }
 0x420   : > { %v3822_v30 = vpop.f32.mrb[47].mxu0 }
 0x421   : > { %v3823_v11 = vadd.f32 %v3822_v30, %v3821_v17 }
 0x425   : > { %v3824_v40 = vpop.f32.mrb[48].mxu0 }
 0x426   : > { %v3825_v46 = vpop.f32.mrb[49].mxu0 }
 0x427   : > { %v5542_v41 = vadd.f32 %v3825_v46, %v3824_v40  ;;  %v3827_v5 = vpop.f32.mrb[50].mxu0 }
 0x428   : > { %v3828_v44 = vpop.f32.mrb[51].mxu0 }
 0x429   : > { %v5544_v15 = vadd.f32 %v3828_v44, %v3827_v5 }
 0x42d   : > { %v3830_v36 = vpop.f32.mrb[52].mxu0 }
 0x42e   : > { %v3831_v45 = vpop.f32.mrb[53].mxu0 }
 0x42f   : > { %v5546_v61 = vadd.f32 %v3831_v45, %v3830_v36  ;;  %v3833_v60 = vpop.f32.mrb[54].mxu0 }
 0x430   : > { %v3834_v50 = vpop.f32.mrb[55].mxu0 }
 0x431   : > { %v5548_v56 = vadd.f32 %v3834_v50, %v3833_v60 }
 0x435   : > { %v3836_v20 = vpop.f32.mrb[56].mxu0 }
 0x436   : > { %v3837_v33 = vpop.f32.mrb[57].mxu0 }
 0x437   : > { %v5550_v0 = vadd.f32 %v3837_v33, %v3836_v20  ;;  %v3839_v17 = vpop.f32.mrb[58].mxu0 }
 0x438   : > { %v3840_v30 = vpop.f32.mrb[59].mxu0 }
 0x439   : > { %v5552_v46 = vadd.f32 %v3840_v30, %v3839_v17 }
 0x43d   : > { %v3842_v40 = vpop.f32.mrb[60].mxu0 }
 0x43e   : > { %v3843_v47 = vpop.f32.mrb[61].mxu0 }
 0x43f   : > { %v5554_v5 = vadd.f32 %v3843_v47, %v3842_v40  ;;  %v3845_v44 = vpop.f32.mrb[62].mxu0 }
 0x440   : > { %v3846_v55 = vpop.f32.mrb[63].mxu0 }
 0x441   : > { %v5556_v36 = vadd.f32 %v3846_v55, %v3845_v44 }
 0x445   : > { %v2414_v45 = vpop.f32.mrb[64].mxu0 }
 0x446   : > { %v5558_v13 = vadd.f32 %v3808_v43, %v2414_v45  ;;  %v2416_v60 = vpop.f32.mrb[65].mxu0 }
 0x447   : > { %v2417_v50 = vpop.f32.mrb[66].mxu0 }
 0x448   : > { %v5560_v39 = vadd.f32 %v3811_v59, %v2417_v50  ;;  %v2419_v20 = vpop.f32.mrb[67].mxu0 }
 0x44d   : > { %v5562_v33 = vpop.f32.mrb[32].mxu1  ;;  %v2422_v17 = vpop.f32.mrb[68].mxu0 }
 0x44e   : > { %v2472_v30 = vadd.f32 %v5368_v34, %v5562_v33  ;;  %v5566_v47 = vpop.f32.mrb[33].mxu1  ;;  %v5568_v40 = vadd.f32 %v3814_v10, %v2422_v17  ;;  %v2424_v55 = vpop.f32.mrb[69].mxu0  ;;  %v2475_v34 = vsel %vm2474_vm2, %v5558_v13, 0.0 }
 0x44f   : > { %v5570_v44 = vpop.f32.mrb[34].mxu1  ;;  %v2425_v43 = vpop.f32.mrb[70].mxu0 }
 0x450   : > { %v2473_v45 = vadd.f32 %v2472_v30, %v5566_v47  ;;  %v2482_v59 = vadd.f32 %v5372_v48, %v5570_v44  ;;  %v5575_v60 = vpop.f32.mrb[35].mxu1  ;;  %v5577_v50 = vadd.f32 %v3817_v49, %v2425_v43  ;;  %v2427_v20 = vpop.f32.mrb[71].mxu0  ;;  %v2484_v30 = vsel %vm2474_vm2, %v5560_v39, 0.0 }
 0x452   : > { %v2483_v10 = vadd.f32 %v2482_v59, %v5575_v60  ;;  %v2476_v17 = vadd.f32 %v2475_v34, %v2473_v45 }
 0x454   : > { %2477 = vadd.xlane.f32.xlu0 %v2476_v17  ;;  %v2485_v20 = vadd.f32 %v2484_v30, %v2483_v10 }
 0x455   : > { %v5582_v55 = vpop.f32.mrb[36].mxu1  ;;  %v2430_v38 = vpop.f32.mrb[72].mxu0 }
 0x456   : > { %v2491_v48 = vadd.f32 %v5396_v26, %v5582_v55  ;;  %v5588_v2 = vpop.f32.mrb[37].mxu1  ;;  %v5590_v49 = vadd.f32 %v3820_v3, %v2430_v38  ;;  %v2432_v43 = vpop.f32.mrb[73].mxu0  ;;  %v2493_v38 = vsel %vm2474_vm2, %v5568_v40, 0.0 }
 0x457   : > { %v5592_v35 = vpop.f32.mrb[38].mxu1  ;;  %v2433_v59 = vpop.f32.mrb[74].mxu0 }
 0x458   : > { %v2492_v45 = vadd.f32 %v2491_v48, %v5588_v2  ;;  %v2500_v34 = vadd.f32 %v5400_v29, %v5592_v35  ;;  %v5597_v17 = vadd.f32 %v3823_v11, %v2433_v59  ;;  %2486 = vadd.xlane.f32.xlu0 %v2485_v20  ;;  %v5599_v32 = vpop.f32.mrb[39].mxu1  ;;  %v2435_v26 = vpop.f32.mrb[75].mxu0  ;;  %v2502_v48 = vsel %vm2474_vm2, %v5577_v50, 0.0 }
 0x45a   : > { %v2501_v3 = vadd.f32 %v2500_v34, %v5599_v32  ;;  %v2494_v10 = vadd.f32 %v2493_v38, %v2492_v45 }
 0x45c   : > { %2495 = vadd.xlane.f32.xlu1 %v2494_v10  ;;  %v2503_v26 = vadd.f32 %v2502_v48, %v2501_v3  ;;  %v2520_v48 = vsel %vm2474_vm2, %v5597_v17, 0.0 }
 0x45d   : > { %v5604_v30 = vpop.f32.mrb[40].mxu1  ;;  %v2438_v43 = vpop.f32.mrb[76].mxu0 }
 0x45e   : > { %6958 = vst [vmem:[#allocation57_spill] sm:$0xff] %v5604_v30  ;;  %v2509_v29 = vadd.f32 %v5424_v42, %v5604_v30  ;;  %v5610_v11 = vpop.f32.mrb[41].mxu1  ;;  %v5613_v20 = vadd.f32 %v5542_v41, %v2438_v43  ;;  %v2440_v59 = vpop.f32.mrb[77].mxu0  ;;  %v2511_v41 = vsel %vm2474_vm2, %v5590_v49, 0.0 }
 0x45f   : > { %v5615_v31 = vpop.f32.mrb[42].mxu1  ;;  %v2441_v45 = vpop.f32.mrb[78].mxu0 }
 0x460   : > { %v2510_v34 = vadd.f32 %v2509_v29, %v5610_v11  ;;  %v2518_v38 = vadd.f32 %v5428_v51, %v5615_v31  ;;  %v5621_v10 = vadd.f32 %v5544_v15, %v2441_v45  ;;  %2504 = vadd.xlane.f32.xlu1 %v2503_v26  ;;  %v5623_v42 = vpop.f32.mrb[43].mxu1  ;;  %v2443_v30 = vpop.f32.mrb[79].mxu0 }
 0x462   : > { %v2519_v3 = vadd.f32 %v2518_v38, %v5623_v42  ;;  %v2512_v43 = vadd.f32 %v2511_v41, %v2510_v34 }
 0x464   : > { %2513 = vadd.xlane.f32.xlu0 %v2512_v43  ;;  %v2521_v29 = vadd.f32 %v2520_v48, %v2519_v3 }
 0x465   : > { %v5630_v59 = vpop.f32.mrb[44].mxu1  ;;  %v2446_v51 = vpop.f32.mrb[80].mxu0 }
 0x466   : > { %v2527_v15 = vadd.f32 %v5452_v6, %v5630_v59  ;;  %v5635_v26 = vadd.f32 %v5546_v61, %v2446_v51  ;;  %2522 = vadd.xlane.f32.xlu1 %v2521_v29  ;;  %v5637_v30 = vpop.f32.mrb[45].mxu1  ;;  %v2448_v45 = vpop.f32.mrb[81].mxu0  ;;  %v2529_v61 = vsel %vm2474_vm2, %v5613_v20, 0.0 }
 0x467   : > { %6959 = vst [vmem:[#allocation58_spill] sm:$0xff] %v5637_v30  ;;  %v5639_v38 = vpop.f32.mrb[46].mxu1  ;;  %v2449_v34 = vpop.f32.mrb[82].mxu0  ;;  %v2538_v45 = vsel %vm2474_vm2, %v5621_v10, 0.0 }
 0x468   : > { %6960 = vst [vmem:[#allocation59_spill] sm:$0xff] %v5639_v38  ;;  %v2528_v41 = vadd.f32 %v2527_v15, %v5637_v30  ;;  %v2536_v3 = vadd.f32 %v5456_v54, %v5639_v38  ;;  %v5644_v43 = vpop.f32.mrb[47].mxu1  ;;  %v5647_v48 = vadd.f32 %v5548_v56, %v2449_v34  ;;  %v2451_v6 = vpop.f32.mrb[83].mxu0 }
 0x46a   : > { %v2537_v29 = vadd.f32 %v2536_v3, %v5644_v43  ;;  %v2530_v51 = vadd.f32 %v2529_v61, %v2528_v41 }
 0x46c   : > { %2531 = vadd.xlane.f32.xlu0 %v2530_v51  ;;  %v2539_v15 = vadd.f32 %v2538_v45, %v2537_v29 }
 0x46d   : > { %v5654_v30 = vpop.f32.mrb[48].mxu1  ;;  %v2454_v54 = vpop.f32.mrb[84].mxu0 }
 0x46e   : > { %v2545_v38 = vadd.f32 %v5480_v9, %v5654_v30  ;;  %v5659_v56 = vadd.f32 %v5550_v0, %v2454_v54  ;;  %2540 = vadd.xlane.f32.xlu1 %v2539_v15  ;;  %v5661_v34 = vpop.f32.mrb[49].mxu1  ;;  %v2456_v6 = vpop.f32.mrb[85].mxu0  ;;  %v2547_v0 = vsel %vm2474_vm2, %v5635_v26, 0.0 }
 0x46f   : > { %6961 = vst [vmem:[#allocation60_spill] sm:$0xff] %v5661_v34  ;;  %v5663_v3 = vpop.f32.mrb[50].mxu1  ;;  %v2457_v41 = vpop.f32.mrb[86].mxu0  ;;  %v2556_v6 = vsel %vm2474_vm2, %v5647_v48, 0.0 }
 0x470   : > { %6962 = vst [vmem:[#allocation61_spill] sm:$0xff] %v5663_v3  ;;  %v2546_v61 = vadd.f32 %v2545_v38, %v5661_v34  ;;  %v2554_v29 = vadd.f32 %v5484_v23, %v5663_v3  ;;  %v5668_v51 = vpop.f32.mrb[51].mxu1  ;;  %v5671_v45 = vadd.f32 %v5552_v46, %v2457_v41  ;;  %v2459_v9 = vpop.f32.mrb[87].mxu0 }
 0x472   : > { %v2555_v15 = vadd.f32 %v2554_v29, %v5668_v51  ;;  %v2548_v54 = vadd.f32 %v2547_v0, %v2546_v61 }
 0x474   : > { %2549 = vadd.xlane.f32.xlu0 %v2548_v54  ;;  %v2557_v38 = vadd.f32 %v2556_v6, %v2555_v15 }
 0x475   : > { %v5678_v34 = vpop.f32.mrb[52].mxu1  ;;  %v2462_v23 = vpop.f32.mrb[88].mxu0 }
 0x476   : > { %v2563_v3 = vadd.f32 %v5508_v8, %v5678_v34  ;;  %v5683_v46 = vadd.f32 %v5554_v5, %v2462_v23  ;;  %2558 = vadd.xlane.f32.xlu1 %v2557_v38  ;;  %v5685_v41 = vpop.f32.mrb[53].mxu1  ;;  %v2464_v9 = vpop.f32.mrb[89].mxu0  ;;  %v2565_v5 = vsel %vm2474_vm2, %v5659_v56, 0.0 }
 0x477   : > { %6964 = vst [vmem:[#allocation63_spill] sm:$0xff] %v5685_v41  ;;  %v5687_v29 = vpop.f32.mrb[54].mxu1  ;;  %v2465_v61 = vpop.f32.mrb[90].mxu0  ;;  %v2574_v9 = vsel %vm2474_vm2, %v5671_v45, 0.0 }
 0x478   : > { %6963 = vst [vmem:[#allocation62_spill] sm:$0xff] %v5683_v46  ;;  %v2564_v0 = vadd.f32 %v2563_v3, %v5685_v41  ;;  %v2572_v15 = vadd.f32 %v5512_v21, %v5687_v29  ;;  %v5692_v54 = vpop.f32.mrb[55].mxu1  ;;  %v5695_v6 = vadd.f32 %v5556_v36, %v2465_v61  ;;  %v2467_v8 = vpop.f32.mrb[91].mxu0 }
 0x47a   : > { %v2573_v38 = vadd.f32 %v2572_v15, %v5692_v54  ;;  %v2566_v23 = vadd.f32 %v2565_v5, %v2564_v0  ;;  %v2583_v5 = vsel %vm2474_vm2, %v5683_v46, 0.0 }
 0x47c   : > { %2567 = vadd.xlane.f32.xlu0 %v2566_v23  ;;  %v2575_v3 = vadd.f32 %v2574_v9, %v2573_v38  ;;  %v2592_v23 = vsel %vm2474_vm2, %v5695_v6, 0.0 }
 0x47d   : > { %v5702_v41 = vpop.f32.mrb[56].mxu1 }
 0x47e   : > { %v2581_v21 = vadd.f32 %v5536_v57, %v5702_v41  ;;  %2576 = vadd.xlane.f32.xlu1 %v2575_v3  ;;  %v5706_v36 = vpop.f32.mrb[57].mxu1  ;;  %v3262_v3 = vld [vmem:[%s5318_s18 + $0x40] sm:$0xff] }
 0x47f   : > { %6965 = vst [vmem:[#allocation64_spill] sm:$0xff] %v5706_v36  ;;  %v5708_v61 = vpop.f32.mrb[58].mxu1 }
 0x480   : > { %6966 = vst [vmem:[#allocation65_spill] sm:$0xff] %v5708_v61  ;;  %v2582_v0 = vadd.f32 %v2581_v21, %v5706_v36  ;;  %v2590_v15 = vadd.f32 %v5540_v25, %v5708_v61  ;;  %v5713_v8 = vpop.f32.mrb[59].mxu1  ;;  %v5721_v21 = vpop.permute.xlu1 %3093  ;;  %v3261_v25 = vld [vmem:[%s5318_s18 + $0x38] sm:$0xff]  ;;  %v3264_v61 = vld [vmem:[%s5318_s18 + $0x50] sm:$0xff]  ;;  %v3263_v36 = vld [vmem:[%s5318_s18 + $0x48] sm:$0xff] }
 0x481   : > { %6967 = vst [vmem:[#allocation66_spill] sm:$0xff] %v5721_v21 }
 0x482   : > { %v2591_v57 = vadd.f32 %v2590_v15, %v5713_v8  ;;  %v2584_v38 = vadd.f32 %v2583_v5, %v2582_v0  ;;  %v3265_v15 = vld [vmem:[%s5318_s18 + $0x58] sm:$0xff] }
 0x484   : > { %2585 = vadd.xlane.f32.xlu0 %v2584_v38  ;;  %v2593_v9 = vadd.f32 %v2592_v23, %v2591_v57  ;;  %v5726_v46 = vpop.permute.xlu1 %3098  ;;  %v5737_v23 = vpop.permute.xlu0 %3088 }
 0x485   : > { %6968 = vst [vmem:[#allocation67_spill] sm:$0xff] %v5726_v46  ;;  %6973 = vst [vmem:[#allocation72_spill] sm:$0xff] %v5737_v23 }
 0x486   : > { %2594 = vadd.xlane.f32.xlu1 %v2593_v9 }
 0x488   : > { %v5729_v0 = vpop.permute.xlu1 %3103 }
 0x489   : > { %6969 = vst [vmem:[#allocation68_spill] sm:$0xff] %v5729_v0 }
 0x48c   : > { %v5731_v5 = vpop.permute.xlu1 %3108 }
 0x48d   : > { %6970 = vst [vmem:[#allocation69_spill] sm:$0xff] %v5731_v5 }
 0x490   : > { %v5733_v57 = vpop.permute.xlu1 %3113 }
 0x491   : > { %6971 = vst [vmem:[#allocation70_spill] sm:$0xff] %v5733_v57 }
 0x494   : > { %v5735_v38 = vpop.permute.xlu1 %3118 }
 0x495   : > { %6972 = vst [vmem:[#allocation71_spill] sm:$0xff] %v5735_v38 }
 0x497   : > { %3310 = vperm.xlu1 %4136, %v3262_v3   ;;  %v5741_v3 = vpop.permute.xlu0 %3133 }
 0x498   : > { %v5739_v9 = vpop.permute.xlu1 %3123  ;;  %6975 = vst [vmem:[#allocation74_spill] sm:$0xff] %v5741_v3 }
 0x499   : > { %6974 = vst [vmem:[#allocation73_spill] sm:$0xff] %v5739_v9 }
 0x49a   : > { %3305 = vperm.xlu0 %4135, %v3261_v25  }
 0x49b   : > { %3320 = vperm.xlu1 %4136, %v3264_v61   ;;  %v5745_v25 = vpop.permute.xlu0 %3143 }
 0x49c   : > { %v5743_v61 = vpop.permute.xlu1 %3128  ;;  %6977 = vst [vmem:[#allocation76_spill] sm:$0xff] %v5745_v25 }
 0x49d   : > { %6976 = vst [vmem:[#allocation75_spill] sm:$0xff] %v5743_v61 }
 0x49e   : > { %3315 = vperm.xlu0 %4135, %v3263_v36  }
 0x4a0   : > { %v5747_v36 = vpop.permute.xlu1 %3138 }
 0x4a1   : > { %6978 = vst [vmem:[#allocation77_spill] sm:$0xff] %v5747_v36 }
 0x4a2   : > { %3325 = vperm.xlu0 %4135, %v3265_v15   ;;  %v5749_v15 = vpop.permute.xlu0 %3153 }
 0x4a3   : > { %6979 = vst [vmem:[#allocation78_spill] sm:$0xff] %v5749_v15 }
 0x4a4   : > { %v5751_v0 = vpop.permute.xlu1 %3148 }
 0x4a5   : > { %6980 = vst [vmem:[#allocation79_spill] sm:$0xff] %v5751_v0 }
 0x4a6   : > { %v5753_v5 = vpop.permute.xlu0 %3275 }
 0x4a7   : > { %6981 = vst [vmem:[#allocation80_spill] sm:$0xff] %v5753_v5 }
 0x4a8   : > { %v5755_v57 = vpop.permute.xlu1 %3270 }
 0x4a9   : > { %6982 = vst [vmem:[#allocation81_spill] sm:$0xff] %v5755_v57 }
 0x4aa   : > { %v5757_v38 = vpop.permute.xlu0 %3285 }
 0x4ab   : > { %6983 = vst [vmem:[#allocation82_spill] sm:$0xff] %v5757_v38 }
 0x4ac   : > { %v5759_v46 = vpop.permute.xlu1 %3280 }
 0x4ad   : > { %6984 = vst [vmem:[#allocation83_spill] sm:$0xff] %v5759_v46 }
 0x4ae   : > { %v5761_v9 = vpop.permute.xlu0 %3295 }
 0x4af   : > { %6985 = vst [vmem:[#allocation84_spill] sm:$0xff] %v5761_v9 }
 0x4b0   : > { %v5763_v3 = vpop.permute.xlu1 %3290 }
 0x4b1   : > { %6986 = vst [vmem:[#allocation85_spill] sm:$0xff] %v5763_v3 }
 0x4b4   : > { %v5774_v5 = vpop.permute.xlu1 %3300 }
 0x4b5   : > { %6987 = vst [vmem:[#allocation86_spill] sm:$0xff] %v5774_v5 }
 0x4e1   : > { %v2478_v61 = vpop.xlane.xlu0 %2477 }
 0x4e2   : > { %v2596_v25 = vmul.f32 0.0012755102, %v2478_v61 }
 0x4e4   : > { %v5766_v36 = vsub.f32 %v5346_v62, %v2596_v25  ;;  %v5769_v15 = vsub.f32 %v5350_v52, %v2596_v25  ;;  %v5772_v0 = vsub.f32 %v5348_v18, %v2596_v25  ;;  %v5777_v46 = vsub.f32 %v5352_v63, %v2596_v25 }
 0x4e5   : > { %v2487_v38 = vpop.xlane.xlu0 %2486  ;;  %v5780_v3 = vsub.f32 %v5558_v13, %v2596_v25  ;;  %v5787_v61 = vsub.f32 %v5562_v33, %v2596_v25  ;;  %v5790_v18 = vsub.f32 %v5566_v47, %v2596_v25 }
 0x4e6   : > { %6988 = vst [vmem:[#allocation87_spill] sm:$0xff] %v5777_v46  ;;  %v2597_v9 = vmul.f32 0.0012755102, %v2487_v38  ;;  %v2708_v62 = vmul.f32 %v5766_v36, %v5766_v36  ;;  %v2709_v52 = vmul.f32 %v5769_v15, %v5769_v15  ;;  %v2710_v63 = vmul.f32 %v5772_v0, %v5772_v0 }
 0x4e7   : > { %6989 = vst [vmem:[#allocation88_spill] sm:$0xff] %v5780_v3  ;;  %6990 = vst [vmem:[#allocation89_spill] sm:$0xff] %v5787_v61  ;;  %v2711_v57 = vmul.f32 %v5777_v46, %v5777_v46  ;;  %v2714_v47 = vmul.f32 %v5780_v3, %v5780_v3 }
 0x4e8   : > { %6991 = vst [vmem:[#allocation90_spill] sm:$0xff] %v5790_v18  ;;  %v2806_v5 = vadd.f32 %v2709_v52, %v2708_v62  ;;  %v5795_v38 = vsub.f32 %v5356_v1, %v2597_v9  ;;  %v5798_v13 = vsub.f32 %v5360_v7, %v2597_v9  ;;  %v5803_v33 = vsub.f32 %v5358_v28, %v2597_v9 }
 0x4e9   : > { %v2496_v21 = vpop.xlane.xlu1 %2495  ;;  %v2712_v1 = vmul.f32 %v5787_v61, %v5787_v61  ;;  %v5812_v7 = vsub.f32 %v5362_v4, %v2597_v9  ;;  %v5815_v52 = vsub.f32 %v5570_v44, %v2597_v9  ;;  %v5828_v4 = vsub.f32 %v5575_v60, %v2597_v9 }
 0x4ea   : > { %6992 = vst [vmem:[#allocation91_spill] sm:$0xff] %v5795_v38  ;;  %6993 = vst [vmem:[#allocation92_spill] sm:$0xff] %v5798_v13  ;;  %v2598_v23 = vmul.f32 0.0012755102, %v2496_v21  ;;  %v2807_v25 = vadd.f32 %v2806_v5, %v2710_v63  ;;  %v2715_v62 = vmul.f32 %v5795_v38, %v5795_v38  ;;  %v2716_v28 = vmul.f32 %v5798_v13, %v5798_v13 }
 0x4eb   : > { %v2713_v21 = vmul.f32 %v5790_v18, %v5790_v18  ;;  %v5822_v5 = vsub.f32 %v5560_v39, %v2597_v9  ;;  %v2717_v44 = vmul.f32 %v5803_v33, %v5803_v33  ;;  %v2719_v60 = vmul.f32 %v5815_v52, %v5815_v52 }
 0x4ec   : > { %v2808_v3 = vadd.f32 %v2807_v25, %v2711_v57  ;;  %v5825_v63 = vsub.f32 %v5374_v12, %v2598_v23  ;;  %v2815_v61 = vadd.f32 %v2716_v28, %v2715_v62  ;;  %v5833_v13 = vsub.f32 %v5378_v14, %v2598_v23 }
 0x4ed   : > { %v2505_v38 = vpop.xlane.xlu1 %2504  ;;  %v2811_v57 = vsel %vm2474_vm2, %v2714_v47, 0.0  ;;  %v5837_v39 = vsub.f32 %v5376_v58, %v2598_v23  ;;  %v2718_v12 = vmul.f32 %v5812_v7, %v5812_v7  ;;  %v2721_v14 = vmul.f32 %v5822_v5, %v5822_v5 }
 0x4ee   : > { %6994 = vst [vmem:[#allocation93_spill] sm:$0xff] %v5825_v63  ;;  %6995 = vst [vmem:[#allocation94_spill] sm:$0xff] %v5833_v13  ;;  %v2599_v46 = vmul.f32 0.0012755102, %v2505_v38  ;;  %v2809_v18 = vadd.f32 %v2808_v3, %v2712_v1  ;;  %v2816_v9 = vadd.f32 %v2815_v61, %v2717_v44  ;;  %v2722_v25 = vmul.f32 %v5825_v63, %v5825_v63 }
 0x4ef   : > { %v5848_v3 = vsub.f32 %v5380_v16, %v2598_v23  ;;  %v2723_v58 = vmul.f32 %v5833_v13, %v5833_v13  ;;  %v2720_v47 = vmul.f32 %v5828_v4, %v5828_v4  ;;  %v5855_v61 = vsub.f32 %v5582_v55, %v2598_v23 }
 0x4f0   : > { %v2810_v62 = vadd.f32 %v2809_v18, %v2713_v21  ;;  %v2817_v1 = vadd.f32 %v2816_v9, %v2718_v12  ;;  %v5858_v28 = vsub.f32 %v5568_v40, %v2598_v23  ;;  %v2724_v21 = vmul.f32 %v5837_v39, %v5837_v39 }
 0x4f1   : > { %v2514_v38 = vpop.xlane.xlu0 %2513  ;;  %v2824_v16 = vadd.f32 %v2723_v58, %v2722_v25  ;;  %v5863_v44 = vsub.f32 %v5384_v19, %v2599_v46  ;;  %v5866_v63 = vsub.f32 %v5588_v2, %v2598_v23  ;;  %v5869_v12 = vsub.f32 %v5388_v24, %v2599_v46 }
 0x4f2   : > { %v2812_v18 = vadd.f32 %v2811_v57, %v2810_v62  ;;  %v2818_v13 = vadd.f32 %v2817_v1, %v2719_v60  ;;  %v5872_v55 = vsub.f32 %v5386_v22, %v2599_v46  ;;  %v2600_v40 = vmul.f32 0.0012755102, %v2514_v38 }
 0x4f3   : > { %v2820_v57 = vsel %vm2474_vm2, %v2721_v14, 0.0  ;;  %v2725_v9 = vmul.f32 %v5848_v3, %v5848_v3  ;;  %v2825_v25 = vadd.f32 %v2824_v16, %v2724_v21  ;;  %v2728_v60 = vmul.f32 %v5858_v28, %v5858_v28 }
 0x4f4   : > { %2813 = vadd.xlane.f32.xlu0 %v2812_v18  ;;  %v2819_v19 = vadd.f32 %v2818_v13, %v2720_v47  ;;  %v5880_v2 = vsub.f32 %v5577_v50, %v2599_v46  ;;  %v2729_v24 = vmul.f32 %v5863_v44, %v5863_v44  ;;  %v2726_v22 = vmul.f32 %v5855_v61, %v5855_v61  ;;  %v2523_v13 = vpop.xlane.xlu1 %2522 }
 0x4f5   : > { %v2826_v23 = vadd.f32 %v2825_v25, %v2725_v9  ;;  %v5887_v62 = vsub.f32 %v5390_v27, %v2599_v46  ;;  %v2730_v14 = vmul.f32 %v5869_v12, %v5869_v12  ;;  %v2727_v38 = vmul.f32 %v5866_v63, %v5866_v63  ;;  %v7001_v9 = vld [vmem:[#allocation19_spill] sm:$0xff] }
 0x4f6   : > { %6996 = vst [vmem:[#allocation95_spill] sm:$0xff] %v5880_v2  ;;  %v2821_v58 = vadd.f32 %v2820_v57, %v2819_v19  ;;  %v5894_v50 = vsub.f32 %v5592_v35, %v2599_v46  ;;  %v2731_v47 = vmul.f32 %v5872_v55, %v5872_v55  ;;  %v5899_v21 = vsub.f32 %v5402_v53, %v2600_v40 }
 0x4f7   : > { %v2827_v1 = vadd.f32 %v2826_v23, %v2726_v22  ;;  %v2833_v18 = vadd.f32 %v2730_v14, %v2729_v24  ;;  %v5902_v27 = vsub.f32 %v5406_v37, %v2600_v40  ;;  %v2829_v16 = vsel %vm2474_vm2, %v2728_v60, 0.0  ;;  %v7003_v23 = vld [vmem:[#allocation20_spill] sm:$0xff] }
 0x4f8   : > { %6997 = vst [vmem:[#allocation96_spill] sm:$0xff] %v5894_v50  ;;  %6998 = vst [vmem:[#allocation97_spill] sm:$0xff] %v5899_v21  ;;  %2822 = vadd.xlane.f32.xlu1 %v2821_v58  ;;  %v5906_v57 = vsub.f32 %v5599_v32, %v2599_v46  ;;  %v2735_v35 = vmul.f32 %v5880_v2, %v5880_v2  ;;  %v5911_v25 = vsub.f32 %v7001_v9, %v2600_v40 }
 0x4f9   : > { %6999 = vst [vmem:[#allocation98_spill] sm:$0xff] %v5902_v27  ;;  %v2601_v19 = vmul.f32 0.0012755102, %v2523_v13  ;;  %v2828_v24 = vadd.f32 %v2827_v1, %v2727_v38  ;;  %v2732_v53 = vmul.f32 %v5887_v62, %v5887_v62  ;;  %v2834_v22 = vadd.f32 %v2833_v18, %v2731_v47  ;;  %v2532_v14 = vpop.xlane.xlu0 %2531  ;;  %v7004_v38 = vld [vmem:[#allocation57_spill] sm:$0xff] }
 0x4fa   : > { %7000 = vst [vmem:[#allocation99_spill] sm:$0xff] %v5906_v57  ;;  %7002 = vst [vmem:[#allocation19_spill] sm:$0xff] %v5911_v25  ;;  %v2733_v37 = vmul.f32 %v5894_v50, %v5894_v50  ;;  %v5918_v60 = vsub.f32 %v7003_v23, %v2600_v40  ;;  %v2736_v32 = vmul.f32 %v5899_v21, %v5899_v21  ;;  %v2838_v9 = vsel %vm2474_vm2, %v2735_v35, 0.0  ;;  %v7008_v50 = vld [vmem:[#allocation22_spill] sm:$0xff] }
 0x4fb   : > { %v2737_v46 = vmul.f32 %v5902_v27, %v5902_v27  ;;  %v2830_v58 = vadd.f32 %v2829_v16, %v2828_v24  ;;  %v2835_v13 = vadd.f32 %v2834_v22, %v2732_v53  ;;  %v5925_v1 = vsub.f32 %v7004_v38, %v2600_v40  ;;  %v7005_v24 = vld [vmem:[#allocation21_spill] sm:$0xff]  ;;  %v7006_v22 = vld [vmem:[#allocation23_spill] sm:$0xff]  ;;  %v2541_v2 = vpop.xlane.xlu1 %2540 }
 0x4fc   : > { %v5928_v47 = vsub.f32 %v5590_v49, %v2600_v40  ;;  %v2734_v18 = vmul.f32 %v5906_v57, %v5906_v57  ;;  %v2738_v23 = vmul.f32 %v5911_v25, %v5911_v25  ;;  %v5936_v16 = vsub.f32 %v5610_v11, %v2600_v40 }
 0x4fd   : > { %v2842_v21 = vadd.f32 %v2737_v46, %v2736_v32  ;;  %2831 = vadd.xlane.f32.xlu0 %v2830_v58  ;;  %v2836_v27 = vadd.f32 %v2835_v13, %v2733_v37  ;;  %v5939_v53 = vsub.f32 %v7005_v24, %v2601_v19  ;;  %v5942_v49 = vsub.f32 %v7006_v22, %v2601_v19 }
 0x4fe   : > { %v2602_v38 = vmul.f32 0.0012755102, %v2532_v14  ;;  %v2739_v35 = vmul.f32 %v5918_v60, %v5918_v60  ;;  %v5947_v25 = vsub.f32 %v7008_v50, %v2601_v19  ;;  %v2740_v11 = vmul.f32 %v5925_v1, %v5925_v1  ;;  %v7010_v14 = vld [vmem:[#allocation24_spill] sm:$0xff] }
 0x4ff   : > { %7007 = vst [vmem:[#allocation20_spill] sm:$0xff] %v5942_v49  ;;  %v2843_v57 = vadd.f32 %v2842_v21, %v2738_v23  ;;  %v2837_v32 = vadd.f32 %v2836_v27, %v2734_v18  ;;  %v2742_v40 = vmul.f32 %v5928_v47, %v5928_v47  ;;  %v2743_v37 = vmul.f32 %v5939_v53, %v5939_v53 }
 0x500   : > { %7009 = vst [vmem:[#allocation57_spill] sm:$0xff] %v5947_v25  ;;  %v5956_v58 = vsub.f32 %v7010_v14, %v2601_v19  ;;  %v5959_v13 = vsub.f32 %v5615_v31, %v2601_v19  ;;  %v2744_v50 = vmul.f32 %v5942_v49, %v5942_v49  ;;  %v2603_v21 = vmul.f32 0.0012755102, %v2541_v2  ;;  %v7019_v49 = vld [vmem:[#allocation26_spill] sm:$0xff] }
 0x501   : > { %v2844_v46 = vadd.f32 %v2843_v57, %v2739_v35  ;;  %v2839_v27 = vadd.f32 %v2838_v9, %v2837_v32  ;;  %v2741_v18 = vmul.f32 %v5936_v16, %v5936_v16  ;;  %v5966_v23 = vsub.f32 %v5597_v17, %v2601_v19  ;;  %v7014_v35 = vld [vmem:[#allocation25_spill] sm:$0xff]  ;;  %v7017_v9 = vld [vmem:[#allocation27_spill] sm:$0xff] }
 0x502   : > { %7011 = vst [vmem:[#allocation21_spill] sm:$0xff] %v5956_v58  ;;  %7012 = vst [vmem:[#allocation23_spill] sm:$0xff] %v5959_v13  ;;  %v2745_v57 = vmul.f32 %v5947_v25, %v5947_v25  ;;  %v2851_v22 = vadd.f32 %v2744_v50, %v2743_v37  ;;  %v5971_v14 = vsub.f32 %v7014_v35, %v2602_v38  ;;  %v2847_v31 = vsel %vm2474_vm2, %v2742_v40, 0.0 }
 0x503   : > { %7013 = vst [vmem:[#allocation22_spill] sm:$0xff] %v5966_v23  ;;  %v2845_v24 = vadd.f32 %v2844_v46, %v2740_v11  ;;  %2840 = vadd.xlane.f32.xlu1 %v2839_v27  ;;  %v5975_v2 = vsub.f32 %v5623_v42, %v2601_v19  ;;  %v5978_v32 = vsub.f32 %v7017_v9, %v2602_v38  ;;  %v2550_v11 = vpop.xlane.xlu0 %2549  ;;  %v7021_v42 = vld [vmem:[#allocation28_spill] sm:$0xff] }
 0x504   : > { %7015 = vst [vmem:[#allocation24_spill] sm:$0xff] %v5971_v14  ;;  %v5981_v17 = vsub.f32 %v7019_v49, %v2602_v38  ;;  %v2746_v37 = vmul.f32 %v5956_v58, %v5956_v58  ;;  %v2747_v50 = vmul.f32 %v5959_v13, %v5959_v13  ;;  %v2852_v27 = vadd.f32 %v2851_v22, %v2745_v57 }
 0x505   : > { %7016 = vst [vmem:[#allocation25_spill] sm:$0xff] %v5975_v2  ;;  %7018 = vst [vmem:[#allocation27_spill] sm:$0xff] %v5978_v32  ;;  %v2846_v46 = vadd.f32 %v2845_v24, %v2741_v18  ;;  %v2749_v40 = vmul.f32 %v5966_v23, %v5966_v23  ;;  %v5990_v19 = vsub.f32 %v7021_v42, %v2602_v38  ;;  %v2559_v18 = vpop.xlane.xlu1 %2558  ;;  %v2604_v22 = vmul.f32 0.0012755102, %v2550_v11 }
 0x506   : > { %7020 = vst [vmem:[#allocation26_spill] sm:$0xff] %v5981_v17  ;;  %v2750_v35 = vmul.f32 %v5971_v14, %v5971_v14  ;;  %v2751_v49 = vmul.f32 %v5978_v32, %v5978_v32  ;;  %v2853_v9 = vadd.f32 %v2852_v27, %v2746_v37  ;;  %v5997_v58 = vsub.f32 %v5630_v59, %v2602_v38  ;;  %v7023_v32 = vld [vmem:[#allocation58_spill] sm:$0xff]  ;;  %v7026_v59 = vld [vmem:[#allocation31_spill] sm:$0xff] }
 0x507   : > { %v2848_v24 = vadd.f32 %v2847_v31, %v2846_v46  ;;  %v6000_v57 = vsub.f32 %v5613_v20, %v2602_v38  ;;  %v2748_v42 = vmul.f32 %v5975_v2, %v5975_v2  ;;  %v2752_v23 = vmul.f32 %v5981_v17, %v5981_v17  ;;  %v7024_v31 = vld [vmem:[#allocation29_spill] sm:$0xff]  ;;  %v7028_v17 = vld [vmem:[#allocation30_spill] sm:$0xff] }
 0x508   : > { %v2860_v14 = vadd.f32 %v2751_v49, %v2750_v35  ;;  %v2854_v13 = vadd.f32 %v2853_v9, %v2747_v50  ;;  %v6007_v25 = vsub.f32 %v7023_v32, %v2602_v38  ;;  %v6010_v46 = vsub.f32 %v7024_v31, %v2603_v21 }
 0x509   : > { %7022 = vst [vmem:[#allocation28_spill] sm:$0xff] %v6000_v57  ;;  %2849 = vadd.xlane.f32.xlu0 %v2848_v24  ;;  %v6013_v37 = vsub.f32 %v7026_v59, %v2603_v21  ;;  %v6015_v20 = vmul.f32 0.0012755102, %v2559_v18  ;;  %v2568_v11 = vpop.xlane.xlu0 %2567  ;;  %v2753_v27 = vmul.f32 %v5990_v19, %v5990_v19  ;;  %v6020_v35 = vsub.f32 %v7028_v17, %v2603_v21  ;;  %v7030_v18 = vld [vmem:[#allocation32_spill] sm:$0xff] }
 0x50a   : > { %7025 = vst [vmem:[#allocation58_spill] sm:$0xff] %v6010_v46  ;;  %v2861_v2 = vadd.f32 %v2860_v14, %v2752_v23  ;;  %v2855_v50 = vadd.f32 %v2854_v13, %v2748_v42  ;;  %v2856_v38 = vsel %vm2474_vm2, %v2749_v40, 0.0  ;;  %v2754_v32 = vmul.f32 %v5997_v58, %v5997_v58 }
 0x50b   : > { %7027 = vst [vmem:[#allocation29_spill] sm:$0xff] %v6013_v37  ;;  %7029 = vst [vmem:[#allocation31_spill] sm:$0xff] %v6020_v35  ;;  %v2756_v49 = vmul.f32 %v6000_v57, %v6000_v57  ;;  %v6028_v9 = vsub.f32 %v7030_v18, %v2603_v21  ;;  %v2757_v31 = vmul.f32 %v6010_v46, %v6010_v46  ;;  %v6034_v13 = vmul.f32 0.0012755102, %v2568_v11  ;;  %v7035_v46 = vld [vmem:[#allocation35_spill] sm:$0xff] }
 0x50c   : > { %v2862_v24 = vadd.f32 %v2861_v2, %v2753_v27  ;;  %v2758_v23 = vmul.f32 %v6013_v37, %v6013_v37  ;;  %v2857_v14 = vadd.f32 %v2856_v38, %v2855_v50  ;;  %v2755_v17 = vmul.f32 %v6007_v25, %v6007_v25  ;;  %v7032_v2 = vld [vmem:[#allocation59_spill] sm:$0xff]  ;;  %v7033_v50 = vld [vmem:[#allocation33_spill] sm:$0xff] }
 0x50d   : > { %v6039_v40 = vsub.f32 %v5621_v10, %v2603_v21  ;;  %v6042_v59 = vsub.f32 %v7032_v2, %v2603_v21  ;;  %v2759_v27 = vmul.f32 %v6020_v35, %v6020_v35  ;;  %v2865_v37 = vsel %vm2474_vm2, %v2756_v49, 0.0  ;;  %v7037_v35 = vld [vmem:[#allocation34_spill] sm:$0xff] }
 0x50e   : > { %v2863_v42 = vadd.f32 %v2862_v24, %v2754_v32  ;;  %v2869_v18 = vadd.f32 %v2758_v23, %v2757_v31  ;;  %2858 = vadd.xlane.f32.xlu1 %v2857_v14  ;;  %v6048_v11 = vsub.f32 %v5644_v43, %v2603_v21  ;;  %v6051_v38 = vsub.f32 %v7033_v50, %v2604_v22  ;;  %v2577_v32 = vpop.xlane.xlu1 %2576  ;;  %v7038_v43 = vld [vmem:[#allocation36_spill] sm:$0xff] }
 0x50f   : > { %7031 = vst [vmem:[#allocation30_spill] sm:$0xff] %v6039_v40  ;;  %v6054_v10 = vsub.f32 %v7035_v46, %v2604_v22  ;;  %v2760_v2 = vmul.f32 %v6028_v9, %v6028_v9  ;;  %v6059_v31 = vsub.f32 %v7037_v35, %v2604_v22  ;;  %v2763_v49 = vmul.f32 %v6039_v40, %v6039_v40 }
 0x510   : > { %7034 = vst [vmem:[#allocation32_spill] sm:$0xff] %v6051_v38  ;;  %v2864_v24 = vadd.f32 %v2863_v42, %v2755_v17  ;;  %v2870_v57 = vadd.f32 %v2869_v18, %v2759_v27  ;;  %v6064_v21 = vsub.f32 %v7038_v43, %v2604_v22  ;;  %v2764_v23 = vmul.f32 %v6051_v38, %v6051_v38  ;;  %v7041_v43 = vld [vmem:[#allocation60_spill] sm:$0xff] }
 0x511   : > { %7036 = vst [vmem:[#allocation59_spill] sm:$0xff] %v6054_v10  ;;  %v2765_v46 = vmul.f32 %v6054_v10, %v6054_v10  ;;  %v2761_v17 = vmul.f32 %v6042_v59, %v6042_v59  ;;  %v6073_v35 = vsub.f32 %v5635_v26, %v2604_v22  ;;  %v6075_v27 = vmul.f32 0.0012755102, %v2577_v32  ;;  %v7043_v26 = vld [vmem:[#allocation37_spill] sm:$0xff] }
 0x512   : > { %7039 = vst [vmem:[#allocation33_spill] sm:$0xff] %v6064_v21  ;;  %v2866_v14 = vadd.f32 %v2865_v37, %v2864_v24  ;;  %v2871_v42 = vadd.f32 %v2870_v57, %v2760_v2  ;;  %v2762_v18 = vmul.f32 %v6048_v11, %v6048_v11  ;;  %v6080_v50 = vsub.f32 %v5654_v30, %v2604_v22  ;;  %v7045_v30 = vld [vmem:[#allocation39_spill] sm:$0xff] }
 0x513   : > { %7040 = vst [vmem:[#allocation35_spill] sm:$0xff] %v6073_v35  ;;  %v6083_v38 = vsub.f32 %v7041_v43, %v2604_v22  ;;  %v2766_v24 = vmul.f32 %v6059_v31, %v6059_v31  ;;  %v2878_v57 = vadd.f32 %v2765_v46, %v2764_v23  ;;  %v6089_v2 = vsub.f32 %v7043_v26, %v6015_v20  ;;  %v7047_v22 = vld [vmem:[#allocation38_spill] sm:$0xff] }
 0x514   : > { %2867 = vadd.xlane.f32.xlu0 %v2866_v14  ;;  %v2872_v37 = vadd.f32 %v2871_v42, %v2761_v17  ;;  %v2874_v32 = vsel %vm2474_vm2, %v2763_v49, 0.0  ;;  %v2767_v10 = vmul.f32 %v6064_v21, %v6064_v21  ;;  %v6096_v40 = vsub.f32 %v7045_v30, %v6015_v20  ;;  %v7048_v42 = vld [vmem:[#allocation40_spill] sm:$0xff]  ;;  %v7049_v49 = vld [vmem:[#allocation61_spill] sm:$0xff] }
 0x515   : > { %7042 = vst [vmem:[#allocation34_spill] sm:$0xff] %v6083_v38  ;;  %7044 = vst [vmem:[#allocation36_spill] sm:$0xff] %v6089_v2  ;;  %v6100_v14 = vsub.f32 %v7047_v22, %v6015_v20  ;;  %v2770_v23 = vmul.f32 %v6073_v35, %v6073_v35  ;;  %v2879_v46 = vadd.f32 %v2878_v57, %v2766_v24 }
 0x516   : > { %7046 = vst [vmem:[#allocation60_spill] sm:$0xff] %v6096_v40  ;;  %v2873_v17 = vadd.f32 %v2872_v37, %v2762_v18  ;;  %v6106_v43 = vsub.f32 %v7048_v42, %v6015_v20  ;;  %v6110_v26 = vsub.f32 %v7049_v49, %v6015_v20  ;;  %v6114_v30 = vsub.f32 %v5647_v48, %v6015_v20 }
 0x517   : > { %v2771_v22 = vmul.f32 %v6089_v2, %v6089_v2  ;;  %v2772_v18 = vmul.f32 %v6096_v40, %v6096_v40  ;;  %v2768_v24 = vmul.f32 %v6080_v50, %v6080_v50  ;;  %v2769_v57 = vmul.f32 %v6083_v38, %v6083_v38  ;;  %v7053_v2 = vld [vmem:[#allocation41_spill] sm:$0xff]  ;;  %v7055_v40 = vld [vmem:[#allocation43_spill] sm:$0xff] }
 0x518   : > { %7050 = vst [vmem:[#allocation37_spill] sm:$0xff] %v6110_v26  ;;  %7051 = vst [vmem:[#allocation39_spill] sm:$0xff] %v6114_v30  ;;  %v2875_v37 = vadd.f32 %v2874_v32, %v2873_v17  ;;  %v2880_v42 = vadd.f32 %v2879_v46, %v2767_v10  ;;  %v6126_v49 = vsub.f32 %v5668_v51, %v6015_v20  ;;  %v2883_v17 = vsel %vm2474_vm2, %v2770_v23, 0.0  ;;  %v7057_v10 = vld [vmem:[#allocation42_spill] sm:$0xff]  ;;  %v7058_v23 = vld [vmem:[#allocation44_spill] sm:$0xff] }
 0x519   : > { %v2773_v48 = vmul.f32 %v6100_v14, %v6100_v14  ;;  %v2887_v35 = vadd.f32 %v2772_v18, %v2771_v22  ;;  %v6132_v21 = vsub.f32 %v7053_v2, %v6034_v13  ;;  %v6137_v38 = vsub.f32 %v7055_v40, %v6034_v13 }
 0x51a   : > { %7052 = vst [vmem:[#allocation38_spill] sm:$0xff] %v6126_v49  ;;  %2876 = vadd.xlane.f32.xlu1 %v2875_v37  ;;  %v2881_v32 = vadd.f32 %v2880_v42, %v2768_v24  ;;  %v6141_v51 = vsub.f32 %v7057_v10, %v6034_v13  ;;  %v2774_v20 = vmul.f32 %v6106_v43, %v6106_v43  ;;  %v2586_v42 = vpop.xlane.xlu0 %2585 }
 0x51b   : > { %7054 = vst [vmem:[#allocation40_spill] sm:$0xff] %v6132_v21  ;;  %7056 = vst [vmem:[#allocation61_spill] sm:$0xff] %v6137_v38  ;;  %v2775_v46 = vmul.f32 %v6110_v26, %v6110_v26  ;;  %v2777_v2 = vmul.f32 %v6114_v30, %v6114_v30  ;;  %v2888_v22 = vadd.f32 %v2887_v35, %v2773_v48  ;;  %v7061_v48 = vld [vmem:[#allocation63_spill] sm:$0xff] }
 0x51c   : > { %v2882_v18 = vadd.f32 %v2881_v32, %v2769_v57  ;;  %v6151_v37 = vsub.f32 %v7058_v23, %v6034_v13  ;;  %v2778_v40 = vmul.f32 %v6132_v21, %v6132_v21  ;;  %v2779_v24 = vmul.f32 %v6137_v38, %v6137_v38 }
 0x51d   : > { %v2776_v10 = vmul.f32 %v6126_v49, %v6126_v49  ;;  %v2889_v26 = vadd.f32 %v2888_v22, %v2774_v20  ;;  %v6161_v30 = vsub.f32 %v5678_v34, %v6034_v13  ;;  %v6165_v35 = vsub.f32 %v5659_v56, %v6034_v13  ;;  %v7063_v20 = vld [vmem:[#allocation45_spill] sm:$0xff]  ;;  %v7065_v34 = vld [vmem:[#allocation47_spill] sm:$0xff]  ;;  %v7067_v56 = vld [vmem:[#allocation46_spill] sm:$0xff] }
 0x51e   : > { %v2884_v57 = vadd.f32 %v2883_v17, %v2882_v18  ;;  %v6169_v32 = vsub.f32 %v7061_v48, %v6034_v13  ;;  %v2780_v23 = vmul.f32 %v6141_v51, %v6141_v51  ;;  %v2896_v38 = vadd.f32 %v2779_v24, %v2778_v40 }
 0x51f   : > { %7059 = vst [vmem:[#allocation41_spill] sm:$0xff] %v6161_v30  ;;  %7060 = vst [vmem:[#allocation43_spill] sm:$0xff] %v6165_v35  ;;  %v2890_v21 = vadd.f32 %v2889_v26, %v2775_v46  ;;  %v6175_v22 = vsub.f32 %v7063_v20, %v6075_v27  ;;  %v6179_v49 = vsub.f32 %v7065_v34, %v6075_v27  ;;  %v2608_v18 = vmul.f32 0.0012755102, %v2586_v42  ;;  %v2595_v34 = vpop.xlane.xlu1 %2594  ;;  %v7069_v42 = vld [vmem:[#allocation48_spill] sm:$0xff] }
 0x520   : > { %7062 = vst [vmem:[#allocation42_spill] sm:$0xff] %v6169_v32  ;;  %v6183_v17 = vsub.f32 %v7067_v56, %v6075_v27  ;;  %2885 = vadd.xlane.f32.xlu0 %v2884_v57  ;;  %v2892_v13 = vsel %vm2474_vm2, %v2777_v2, 0.0  ;;  %v2781_v40 = vmul.f32 %v6151_v37, %v6151_v37  ;;  %v2897_v26 = vadd.f32 %v2896_v38, %v2780_v23 }
 0x521   : > { %7064 = vst [vmem:[#allocation44_spill] sm:$0xff] %v6175_v22  ;;  %7066 = vst [vmem:[#allocation63_spill] sm:$0xff] %v6179_v49  ;;  %v2891_v46 = vadd.f32 %v2890_v21, %v2776_v10  ;;  %v2782_v24 = vmul.f32 %v6161_v30, %v6161_v30  ;;  %v2784_v48 = vmul.f32 %v6165_v35, %v6165_v35 }
 0x522   : > { %7068 = vst [vmem:[#allocation45_spill] sm:$0xff] %v6183_v17  ;;  %v2785_v20 = vmul.f32 %v6175_v22, %v6175_v22  ;;  %v2898_v56 = vadd.f32 %v2897_v26, %v2781_v40  ;;  %v6196_v57 = vsub.f32 %v7069_v42, %v6075_v27  ;;  %v6200_v2 = vsub.f32 %v5687_v29, %v6075_v27  ;;  %v7071_v22 = vld [vmem:[#allocation49_spill] sm:$0xff]  ;;  %v7073_v29 = vld [vmem:[#allocation51_spill] sm:$0xff] }
 0x523   : > { %v2786_v38 = vmul.f32 %v6179_v49, %v6179_v49  ;;  %v2893_v21 = vadd.f32 %v2892_v13, %v2891_v46  ;;  %v2783_v10 = vmul.f32 %v6169_v32, %v6169_v32  ;;  %v6208_v23 = vsub.f32 %v5671_v45, %v6075_v27  ;;  %v7075_v45 = vld [vmem:[#allocation50_spill] sm:$0xff] }
 0x524   : > { %v2787_v40 = vmul.f32 %v6183_v17, %v6183_v17  ;;  %v2899_v26 = vadd.f32 %v2898_v56, %v2782_v24  ;;  %v6213_v35 = vsub.f32 %v7071_v22, %v2608_v18  ;;  %v6216_v30 = vsub.f32 %v7073_v29, %v2608_v18  ;;  %v7077_v56 = vld [vmem:[#allocation52_spill] sm:$0xff] }
 0x525   : > { %7070 = vst [vmem:[#allocation47_spill] sm:$0xff] %v6208_v23  ;;  %v2905_v42 = vadd.f32 %v2786_v38, %v2785_v20  ;;  %v2609_v49 = vmul.f32 0.0012755102, %v2595_v34  ;;  %2894 = vadd.xlane.f32.xlu1 %v2893_v21  ;;  %v2901_v13 = vsel %vm2474_vm2, %v2784_v48, 0.0  ;;  %v6221_v46 = vsub.f32 %v5692_v54, %v6075_v27 }
 0x526   : > { %7072 = vst [vmem:[#allocation46_spill] sm:$0xff] %v6213_v35  ;;  %7074 = vst [vmem:[#allocation48_spill] sm:$0xff] %v6216_v30  ;;  %v6224_v32 = vsub.f32 %v7075_v45, %v2608_v18  ;;  %v2900_v17 = vadd.f32 %v2899_v26, %v2783_v10  ;;  %v2788_v24 = vmul.f32 %v6196_v57, %v6196_v57  ;;  %v7078_v26 = vld [vmem:[#allocation62_spill] sm:$0xff]  ;;  %v7080_v45 = vld [vmem:[#allocation53_spill] sm:$0xff] }
 0x527   : > { %v2789_v22 = vmul.f32 %v6200_v2, %v6200_v2  ;;  %v2906_v20 = vadd.f32 %v2905_v42, %v2787_v40  ;;  %v2791_v34 = vmul.f32 %v6208_v23, %v6208_v23  ;;  %v6233_v48 = vsub.f32 %v7077_v56, %v2608_v18  ;;  %v7082_v23 = vld [vmem:[#allocation55_spill] sm:$0xff] }
 0x528   : > { %7076 = vst [vmem:[#allocation49_spill] sm:$0xff] %v6224_v32  ;;  %v2792_v54 = vmul.f32 %v6213_v35, %v6213_v35  ;;  %v2793_v27 = vmul.f32 %v6216_v30, %v6216_v30  ;;  %v2902_v38 = vadd.f32 %v2901_v13, %v2900_v17  ;;  %v6240_v10 = vsub.f32 %v5702_v41, %v2608_v18  ;;  %v7084_v41 = vld [vmem:[#allocation54_spill] sm:$0xff] }
 0x529   : > { %v2907_v21 = vadd.f32 %v2906_v20, %v2788_v24  ;;  %v6243_v29 = vsub.f32 %v7078_v26, %v2608_v18  ;;  %v2794_v40 = vmul.f32 %v6224_v32, %v6224_v32  ;;  %v6248_v56 = vsub.f32 %v7080_v45, %v2609_v49  ;;  %v7086_v20 = vld [vmem:[#allocation64_spill] sm:$0xff] }
 0x52a   : > { %v2914_v42 = vadd.f32 %v2793_v27, %v2792_v54  ;;  %v6251_v35 = vsub.f32 %v7082_v23, %v2609_v49  ;;  %2903 = vadd.xlane.f32.xlu0 %v2902_v38  ;;  %v2790_v17 = vmul.f32 %v6221_v46, %v6221_v46  ;;  %v6256_v24 = vsub.f32 %v7084_v41, %v2609_v49  ;;  %v7088_v32 = vld [vmem:[#allocation56_spill] sm:$0xff] }
 0x52b   : > { %7079 = vst [vmem:[#allocation51_spill] sm:$0xff] %v6243_v29  ;;  %7081 = vst [vmem:[#allocation50_spill] sm:$0xff] %v6248_v56  ;;  %v2908_v13 = vadd.f32 %v2907_v21, %v2789_v22  ;;  %v6259_v26 = vsub.f32 %v7086_v20, %v2608_v18  ;;  %v2795_v54 = vmul.f32 %v6233_v48, %v6233_v48  ;;  %v2910_v38 = vsel %vm2474_vm2, %v2791_v34, 0.0 }
 0x52c   : > { %7083 = vst [vmem:[#allocation52_spill] sm:$0xff] %v6251_v35  ;;  %7085 = vst [vmem:[#allocation62_spill] sm:$0xff] %v6256_v24  ;;  %v2915_v27 = vadd.f32 %v2914_v42, %v2794_v40  ;;  %v6264_v30 = vsub.f32 %v7088_v32, %v2609_v49  ;;  %v2799_v23 = vmul.f32 %v6248_v56, %v6248_v56  ;;  %v7090_v42 = vld [vmem:[#allocation65_spill] sm:$0xff] }
 0x52d   : > { %7087 = vst [vmem:[#allocation53_spill] sm:$0xff] %v6259_v26  ;;  %v2909_v45 = vadd.f32 %v2908_v13, %v2790_v17  ;;  %v2800_v22 = vmul.f32 %v6251_v35, %v6251_v35  ;;  %v2796_v18 = vmul.f32 %v6240_v10, %v6240_v10  ;;  %v2798_v21 = vmul.f32 %v6243_v29, %v6243_v29 }
 0x52e   : > { %7089 = vst [vmem:[#allocation55_spill] sm:$0xff] %v6264_v30  ;;  %v2916_v41 = vadd.f32 %v2915_v27, %v2795_v54  ;;  %v6276_v17 = vsub.f32 %v7090_v42, %v2609_v49  ;;  %v2801_v32 = vmul.f32 %v6256_v24, %v6256_v24  ;;  %v2797_v20 = vmul.f32 %v6259_v26, %v6259_v26 }
 0x52f   : > { %v2911_v40 = vadd.f32 %v2910_v38, %v2909_v45  ;;  %v2923_v13 = vadd.f32 %v2800_v22, %v2799_v23  ;;  %v6283_v34 = vsub.f32 %v5695_v6, %v2609_v49  ;;  %v6286_v56 = vsub.f32 %v5713_v8, %v2609_v49 }
 0x530   : > { %7091 = vst [vmem:[#allocation54_spill] sm:$0xff] %v6276_v17  ;;  %v2917_v35 = vadd.f32 %v2916_v41, %v2796_v18  ;;  %v2802_v54 = vmul.f32 %v6264_v30, %v6264_v30  ;;  %v2919_v23 = vsel %vm2474_vm2, %v2798_v21, 0.0  ;;  %v2803_v22 = vmul.f32 %v6276_v17, %v6276_v17  ;;  %v3267_v21 = vld [vmem:[%s5318_s18 + $0x68] sm:$0xff] }
 0x531   : > { %7092 = vst [vmem:[#allocation64_spill] sm:$0xff] %v6283_v34  ;;  %2912 = vadd.xlane.f32.xlu1 %v2911_v40  ;;  %7093 = vst [vmem:[#allocation56_spill] sm:$0xff] %v6286_v56  ;;  %v2924_v27 = vadd.f32 %v2923_v13, %v2801_v32  ;;  %v2805_v6 = vmul.f32 %v6283_v34, %v6283_v34  ;;  %v2804_v8 = vmul.f32 %v6286_v56, %v6286_v56  ;;  %v6300_v32 = vpop.permute.xlu0 %3305  ;;  %v7094_v34 = vld [vmem:[#allocation87_spill] sm:$0xff] }
 0x532   : > { %v2918_v45 = vadd.f32 %v2917_v35, %v2797_v20  ;;  %v3266_v35 = vld [vmem:[%s5318_s18 + $0x60] sm:$0xff]  ;;  %v6304_v20 = vpop.permute.xlu1 %3310 }
 0x533   : > { %v2925_v38 = vadd.f32 %v2924_v27, %v2802_v54  ;;  %v2928_v40 = vsel %vm2474_vm2, %v2805_v6, 0.0 }
 0x534   : > { %v2920_v18 = vadd.f32 %v2919_v23, %v2918_v45 }
 0x535   : > { %v2926_v49 = vadd.f32 %v2925_v38, %v2803_v22  ;;  %v6302_v13 = vpop.permute.xlu0 %3315 }
 0x536   : > { %2921 = vadd.xlane.f32.xlu0 %v2920_v18  ;;  %v6308_v45 = vpop.permute.xlu1 %3320 }
 0x537   : > { %v2927_v41 = vadd.f32 %v2926_v49, %v2804_v8 }
 0x539   : > { %v2929_v42 = vadd.f32 %v2928_v40, %v2927_v41  ;;  %v6306_v54 = vpop.permute.xlu0 %3325 }
 0x53b   : > { %2930 = vadd.xlane.f32.xlu1 %v2929_v42 }
 0x54c   : > { %3330 = vperm.xlu1 %4136, %v3266_v35   ;;  %3335 = vperm.xlu0 %4135, %v3267_v21  }
 0x581   : > { %v2814_v27 = vpop.xlane.xlu0 %2813 }
 0x582   : > { %v2932_v23 = vmul.f32 0.0012755102, %v2814_v27 }
 0x584   : > { %v2946_v22 = vadd.f32 1e-05, %v2932_v23 }
 0x585   : > { %v2823_v38 = vpop.xlane.xlu1 %2822 }
 0x586   : > { %4153 = vrsqrt.f32 %v2946_v22  ;;  %v2933_v18 = vmul.f32 0.0012755102, %v2823_v38  ;;  %v7095_v22 = vld [vmem:[#allocation89_spill] sm:$0xff]  ;;  %v7096_v38 = vld [vmem:[#allocation90_spill] sm:$0xff] }
 0x588   : > { %v2947_v6 = vadd.f32 1e-05, %v2933_v18 }
 0x58a   : > { %4155 = vrsqrt.f32 %v2947_v6  ;;  %v2832_v8 = vpop.xlane.xlu0 %2831  ;;  %v7097_v6 = vld [vmem:[#allocation88_spill] sm:$0xff] }
 0x58b   : > { %v2934_v49 = vmul.f32 0.0012755102, %v2832_v8 }
 0x58d   : > { %v2948_v41 = vadd.f32 1e-05, %v2934_v49  ;;  %v7098_v49 = vld [vmem:[#allocation72_spill] sm:$0xff] }
 0x58f   : > { %4157 = vrsqrt.f32 %v2948_v41 }
 0x590   : > { %v4154_v40 = vpop.eup %4153  ;;  %v2841_v23 = vpop.xlane.xlu1 %2840 }
 0x591   : > { %v2974_v42 = vmul.f32 %v4154_v40, %v5766_v36  ;;  %v2975_v35 = vmul.f32 %v4154_v40, %v5769_v15  ;;  %v2976_v21 = vmul.f32 %v4154_v40, %v5772_v0  ;;  %v2977_v27 = vmul.f32 %v4154_v40, %v7094_v34 }
 0x592   : > { %v2978_v56 = vmul.f32 %v4154_v40, %v7095_v22  ;;  %v2979_v18 = vmul.f32 %v4154_v40, %v7096_v38  ;;  %v2980_v17 = vmul.f32 %v4154_v40, %v7097_v6  ;;  %v2935_v8 = vmul.f32 0.0012755102, %v2841_v23  ;;  %v7099_v38 = vld [vmem:[#allocation81_spill] sm:$0xff]  ;;  %v7100_v23 = vld [vmem:[#allocation91_spill] sm:$0xff] }
 0x593   : > { %v3156_v30 = vmul.f32 %v7098_v49, %v2974_v42  ;;  %v3157_v41 = vmul.f32 %v7098_v49, %v2975_v35  ;;  %v3158_v36 = vmul.f32 %v7098_v49, %v2976_v21  ;;  %v3159_v15 = vmul.f32 %v7098_v49, %v2977_v27 }
 0x594   : > { %v3160_v0 = vmul.f32 %v7098_v49, %v2978_v56  ;;  %v3161_v34 = vmul.f32 %v7098_v49, %v2979_v18  ;;  %v3162_v24 = vmul.f32 %v7098_v49, %v2980_v17  ;;  %v2949_v22 = vadd.f32 1e-05, %v2935_v8  ;;  %v4156_v29 = vpop.eup %4155 }
 0x595   : > { %v3338_v26 = vadd.f32 %v7099_v38, %v3156_v30  ;;  %v3339_v40 = vadd.f32 %v7099_v38, %v3157_v41  ;;  %v3340_v42 = vadd.f32 %v7099_v38, %v3158_v36  ;;  %v3341_v35 = vadd.f32 %v7099_v38, %v3159_v15  ;;  %v7101_v30 = vld [vmem:[#allocation92_spill] sm:$0xff]  ;;  %v7102_v36 = vld [vmem:[#allocation66_spill] sm:$0xff] }
 0x596   : > { %v3342_v21 = vadd.f32 %v7099_v38, %v3160_v0  ;;  %v3343_v27 = vadd.f32 %v7099_v38, %v3161_v34  ;;  %v3344_v56 = vadd.f32 %v7099_v38, %v3162_v24  ;;  %v2981_v18 = vmul.f32 %v4156_v29, %v7100_v23  ;;  %v2850_v49 = vpop.xlane.xlu0 %2849  ;;  %v7104_v23 = vld [vmem:[#allocation93_spill] sm:$0xff] }
 0x597   : > { %3436 = vst [vmem:[%s6333_s23] sm:$0xff] %v3338_v26  ;;  %3437 = vst [vmem:[%s6333_s23 + $0x8] sm:$0xff] %v3339_v40  ;;  %v2982_v17 = vmul.f32 %v4156_v29, %v7101_v30  ;;  %v2983_v6 = vmul.f32 %v4156_v29, %v5803_v33  ;;  %v2984_v24 = vmul.f32 %v4156_v29, %v5812_v7  ;;  %4159 = vrsqrt.f32 %v2949_v22  ;;  %v7105_v30 = vld [vmem:[#allocation94_spill] sm:$0xff] }
 0x598   : > { %3438 = vst [vmem:[%s6333_s23 + $0x10] sm:$0xff] %v3340_v42  ;;  %3439 = vst [vmem:[%s6333_s23 + $0x18] sm:$0xff] %v3341_v35  ;;  %v2985_v8 = vmul.f32 %v4156_v29, %v5815_v52  ;;  %v2986_v41 = vmul.f32 %v4156_v29, %v5828_v4  ;;  %v2987_v26 = vmul.f32 %v4156_v29, %v5822_v5  ;;  %v7103_v29 = vld [vmem:[#allocation80_spill] sm:$0xff]  ;;  %v2936_v38 = vmul.f32 0.0012755102, %v2850_v49 }
 0x599   : > { %3440 = vst [vmem:[%s6333_s23 + $0x20] sm:$0xff] %v3342_v21  ;;  %3441 = vst [vmem:[%s6333_s23 + $0x28] sm:$0xff] %v3343_v27  ;;  %v3163_v15 = vmul.f32 %v7102_v36, %v2981_v18  ;;  %v3164_v0 = vmul.f32 %v7102_v36, %v2982_v17  ;;  %v3165_v33 = vmul.f32 %v7102_v36, %v2983_v6  ;;  %v4158_v34 = vpop.eup %4157 }
 0x59a   : > { %3442 = vst.msk [vmem:[%s6333_s23 + $0x30] sm:$0xff] %vm2474_vm2, %v3344_v56  ;;  %v3166_v7 = vmul.f32 %v7102_v36, %v2984_v24  ;;  %v3167_v52 = vmul.f32 %v7102_v36, %v2985_v8  ;;  %v3168_v4 = vmul.f32 %v7102_v36, %v2986_v41  ;;  %v3169_v5 = vmul.f32 %v7102_v36, %v2987_v26  ;;  %v7106_v26 = vld [vmem:[#allocation67_spill] sm:$0xff] }
 0x59b   : > { %v3345_v22 = vadd.f32 %v7103_v29, %v3163_v15  ;;  %v3346_v40 = vadd.f32 %v7103_v29, %v3164_v0  ;;  %v3347_v42 = vadd.f32 %v7103_v29, %v3165_v33  ;;  %v2988_v18 = vmul.f32 %v4158_v34, %v7104_v23 }
 0x59c   : > { %v3348_v35 = vadd.f32 %v7103_v29, %v3166_v7  ;;  %v3349_v21 = vadd.f32 %v7103_v29, %v3167_v52  ;;  %v3350_v27 = vadd.f32 %v7103_v29, %v3168_v4  ;;  %v3351_v56 = vadd.f32 %v7103_v29, %v3169_v5 }
 0x59d   : > { %3443 = vst [vmem:[%s6333_s23 + $0x38] sm:$0xff] %v3345_v22  ;;  %v2989_v17 = vmul.f32 %v4158_v34, %v7105_v30  ;;  %3444 = vst [vmem:[%s6333_s23 + $0x40] sm:$0xff] %v3346_v40  ;;  %v2990_v6 = vmul.f32 %v4158_v34, %v5837_v39  ;;  %v2991_v24 = vmul.f32 %v4158_v34, %v5848_v3  ;;  %v2950_v0 = vadd.f32 1e-05, %v2936_v38  ;;  %v7108_v30 = vld [vmem:[#allocation96_spill] sm:$0xff] }
 0x59e   : > { %3445 = vst [vmem:[%s6333_s23 + $0x48] sm:$0xff] %v3347_v42  ;;  %3446 = vst [vmem:[%s6333_s23 + $0x50] sm:$0xff] %v3348_v35  ;;  %v2992_v8 = vmul.f32 %v4158_v34, %v5855_v61  ;;  %v2993_v49 = vmul.f32 %v4158_v34, %v5866_v63  ;;  %v2994_v41 = vmul.f32 %v4158_v34, %v5858_v28  ;;  %v2859_v61 = vpop.xlane.xlu1 %2858  ;;  %v7107_v28 = vld [vmem:[#allocation83_spill] sm:$0xff] }
 0x59f   : > { %3447 = vst [vmem:[%s6333_s23 + $0x58] sm:$0xff] %v3349_v21  ;;  %3448 = vst [vmem:[%s6333_s23 + $0x60] sm:$0xff] %v3350_v27  ;;  %v3170_v36 = vmul.f32 %v7106_v26, %v2988_v18  ;;  %v3171_v15 = vmul.f32 %v7106_v26, %v2989_v17  ;;  %v3172_v33 = vmul.f32 %v7106_v26, %v2990_v6  ;;  %4161 = vrsqrt.f32 %v2950_v0  ;;  %v7109_v6 = vld [vmem:[#allocation99_spill] sm:$0xff] }
 0x5a0   : > { %3449 = vst.msk [vmem:[%s6333_s23 + $0x68] sm:$0xff] %vm2474_vm2, %v3351_v56  ;;  %v3173_v39 = vmul.f32 %v7106_v26, %v2991_v24  ;;  %v3174_v3 = vmul.f32 %v7106_v26, %v2992_v8  ;;  %v3175_v63 = vmul.f32 %v7106_v26, %v2993_v49  ;;  %v3176_v7 = vmul.f32 %v7106_v26, %v2994_v41  ;;  %v7110_v8 = vld [vmem:[#allocation95_spill] sm:$0xff]  ;;  %v7111_v26 = vld [vmem:[#allocation68_spill] sm:$0xff] }
 0x5a1   : > { %v3352_v52 = vadd.f32 %v7107_v28, %v3170_v36  ;;  %v3353_v34 = vadd.f32 %v7107_v28, %v3171_v15  ;;  %v3354_v4 = vadd.f32 %v7107_v28, %v3172_v33  ;;  %v2868_v38 = vpop.xlane.xlu0 %2867  ;;  %v4160_v40 = vpop.eup %4159  ;;  %v2937_v35 = vmul.f32 0.0012755102, %v2859_v61  ;;  %v7112_v33 = vld [vmem:[#allocation82_spill] sm:$0xff] }
 0x5a2   : > { %v3355_v5 = vadd.f32 %v7107_v28, %v3173_v39  ;;  %v3356_v29 = vadd.f32 %v7107_v28, %v3174_v3  ;;  %v3357_v22 = vadd.f32 %v7107_v28, %v3175_v63  ;;  %v3358_v42 = vadd.f32 %v7107_v28, %v3176_v7 }
 0x5a3   : > { %3450 = vst [vmem:[%s6333_s23 + $0x70] sm:$0xff] %v3352_v52  ;;  %3451 = vst [vmem:[%s6333_s23 + $0x78] sm:$0xff] %v3353_v34  ;;  %v2938_v21 = vmul.f32 0.0012755102, %v2868_v38  ;;  %v2995_v27 = vmul.f32 %v4160_v40, %v5863_v44  ;;  %v2996_v56 = vmul.f32 %v4160_v40, %v5869_v12  ;;  %v2997_v23 = vmul.f32 %v4160_v40, %v5872_v55 }
 0x5a4   : > { %3452 = vst [vmem:[%s6333_s23 + $0x80] sm:$0xff] %v3354_v4  ;;  %3453 = vst [vmem:[%s6333_s23 + $0x88] sm:$0xff] %v3355_v5  ;;  %v2998_v18 = vmul.f32 %v4160_v40, %v5887_v62  ;;  %v2999_v17 = vmul.f32 %v4160_v40, %v7108_v30  ;;  %v3000_v24 = vmul.f32 %v4160_v40, %v7109_v6  ;;  %v2951_v41 = vadd.f32 1e-05, %v2937_v35  ;;  %v7115_v35 = vld [vmem:[#allocation19_spill] sm:$0xff] }
 0x5a5   : > { %3454 = vst [vmem:[%s6333_s23 + $0x90] sm:$0xff] %v3356_v29  ;;  %3455 = vst [vmem:[%s6333_s23 + $0x98] sm:$0xff] %v3357_v22  ;;  %v3001_v49 = vmul.f32 %v4160_v40, %v7110_v8  ;;  %v3177_v36 = vmul.f32 %v7111_v26, %v2995_v27  ;;  %v3178_v15 = vmul.f32 %v7111_v26, %v2996_v56  ;;  %v2952_v4 = vadd.f32 1e-05, %v2938_v21  ;;  %v7113_v22 = vld [vmem:[#allocation97_spill] sm:$0xff]  ;;  %v7114_v40 = vld [vmem:[#allocation98_spill] sm:$0xff] }
 0x5a6   : > { %3456 = vst.msk [vmem:[%s6333_s23 + $0xa0] sm:$0xff] %vm2474_vm2, %v3358_v42  ;;  %v3179_v44 = vmul.f32 %v7111_v26, %v2997_v23  ;;  %v3180_v12 = vmul.f32 %v7111_v26, %v2998_v18  ;;  %v3181_v55 = vmul.f32 %v7111_v26, %v2999_v17  ;;  %v3182_v62 = vmul.f32 %v7111_v26, %v3000_v24  ;;  %v7116_v17 = vld [vmem:[#allocation69_spill] sm:$0xff] }
 0x5a7   : > { %v3183_v0 = vmul.f32 %v7111_v26, %v3001_v49  ;;  %4163 = vrsqrt.f32 %v2951_v41  ;;  %v3359_v39 = vadd.f32 %v7112_v33, %v3177_v36  ;;  %v3360_v3 = vadd.f32 %v7112_v33, %v3178_v15  ;;  %v2877_v7 = vpop.xlane.xlu1 %2876 }
 0x5a8   : > { %v3361_v63 = vadd.f32 %v7112_v33, %v3179_v44  ;;  %v3362_v61 = vadd.f32 %v7112_v33, %v3180_v12  ;;  %v3363_v28 = vadd.f32 %v7112_v33, %v3181_v55  ;;  %v3364_v52 = vadd.f32 %v7112_v33, %v3182_v62 }
 0x5a9   : > { %v3365_v34 = vadd.f32 %v7112_v33, %v3183_v0  ;;  %3457 = vst [vmem:[%s6333_s23 + $0xa8] sm:$0xff] %v3359_v39  ;;  %3458 = vst [vmem:[%s6333_s23 + $0xb0] sm:$0xff] %v3360_v3  ;;  %v2939_v5 = vmul.f32 0.0012755102, %v2877_v7  ;;  %v4162_v29 = vpop.eup %4161  ;;  %4165 = vrsqrt.f32 %v2952_v4  ;;  %v7118_v3 = vld [vmem:[#allocation20_spill] sm:$0xff] }
 0x5aa   : > { %3459 = vst [vmem:[%s6333_s23 + $0xb8] sm:$0xff] %v3361_v63  ;;  %3460 = vst [vmem:[%s6333_s23 + $0xc0] sm:$0xff] %v3362_v61  ;;  %v3002_v38 = vmul.f32 %v4162_v29, %v7113_v22  ;;  %v3003_v42 = vmul.f32 %v4162_v29, %v7114_v40  ;;  %v3004_v27 = vmul.f32 %v4162_v29, %v7115_v35  ;;  %v7119_v61 = vld [vmem:[#allocation57_spill] sm:$0xff]  ;;  %v7123_v22 = vld [vmem:[#allocation22_spill] sm:$0xff] }
 0x5ab   : > { %3461 = vst [vmem:[%s6333_s23 + $0xc8] sm:$0xff] %v3363_v28  ;;  %3462 = vst [vmem:[%s6333_s23 + $0xd0] sm:$0xff] %v3364_v52  ;;  %v3005_v56 = vmul.f32 %v4162_v29, %v5918_v60  ;;  %v3006_v21 = vmul.f32 %v4162_v29, %v5925_v1  ;;  %v3007_v23 = vmul.f32 %v4162_v29, %v5936_v16  ;;  %v2953_v30 = vadd.f32 1e-05, %v2939_v5  ;;  %v7117_v16 = vld [vmem:[#allocation85_spill] sm:$0xff] }
 0x5ac   : > { %3463 = vst.msk [vmem:[%s6333_s23 + $0xd8] sm:$0xff] %vm2474_vm2, %v3365_v34  ;;  %v3008_v18 = vmul.f32 %v4162_v29, %v5928_v47  ;;  %v3184_v6 = vmul.f32 %v7116_v17, %v3002_v38  ;;  %v3185_v24 = vmul.f32 %v7116_v17, %v3003_v42  ;;  %v3186_v8 = vmul.f32 %v7116_v17, %v3004_v27  ;;  %v7120_v28 = vld [vmem:[#allocation21_spill] sm:$0xff]  ;;  %v7121_v34 = vld [vmem:[#allocation23_spill] sm:$0xff]  ;;  %v7124_v42 = vld [vmem:[#allocation70_spill] sm:$0xff] }
 0x5ad   : > { %v3187_v49 = vmul.f32 %v7116_v17, %v3005_v56  ;;  %v2886_v41 = vpop.xlane.xlu0 %2885  ;;  %v3188_v60 = vmul.f32 %v7116_v17, %v3006_v21  ;;  %v3189_v1 = vmul.f32 %v7116_v17, %v3007_v23  ;;  %4167 = vrsqrt.f32 %v2953_v30  ;;  %v7122_v5 = vld [vmem:[#allocation25_spill] sm:$0xff] }
 0x5ae   : > { %v3190_v47 = vmul.f32 %v7116_v17, %v3008_v18  ;;  %v3366_v26 = vadd.f32 %v7117_v16, %v3184_v6  ;;  %v3367_v36 = vadd.f32 %v7117_v16, %v3185_v24  ;;  %v3368_v15 = vadd.f32 %v7117_v16, %v3186_v8  ;;  %v7125_v17 = vld [vmem:[#allocation84_spill] sm:$0xff] }
 0x5af   : > { %v3369_v44 = vadd.f32 %v7117_v16, %v3187_v49  ;;  %v3370_v55 = vadd.f32 %v7117_v16, %v3188_v60  ;;  %v3371_v62 = vadd.f32 %v7117_v16, %v3189_v1  ;;  %v2940_v33 = vmul.f32 0.0012755102, %v2886_v41 }
 0x5b0   : > { %v3372_v0 = vadd.f32 %v7117_v16, %v3190_v47  ;;  %3464 = vst [vmem:[%s6333_s23 + $0xe0] sm:$0xff] %v3366_v26  ;;  %3465 = vst [vmem:[%s6333_s23 + $0xe8] sm:$0xff] %v3367_v36  ;;  %v7126_v16 = vld [vmem:[#allocation24_spill] sm:$0xff]  ;;  %v7127_v36 = vld [vmem:[#allocation27_spill] sm:$0xff] }
 0x5b1   : > { %v4164_v12 = vpop.eup %4163  ;;  %3466 = vst [vmem:[%s6333_s23 + $0xf0] sm:$0xff] %v3368_v15  ;;  %3467 = vst [vmem:[%s6333_s23 + $0xf8] sm:$0xff] %v3369_v44  ;;  %v2954_v40 = vadd.f32 1e-05, %v2940_v33  ;;  %v7128_v44 = vld [vmem:[#allocation26_spill] sm:$0xff] }
 0x5b2   : > { %v3009_v39 = vmul.f32 %v4164_v12, %v5939_v53  ;;  %v3010_v63 = vmul.f32 %v4164_v12, %v7118_v3  ;;  %v3011_v7 = vmul.f32 %v4164_v12, %v7119_v61  ;;  %v3012_v52 = vmul.f32 %v4164_v12, %v7120_v28  ;;  %3468 = vst [vmem:[%s6333_s23 + $0x100] sm:$0xff] %v3370_v55  ;;  %v2895_v41 = vpop.xlane.xlu1 %2894 }
 0x5b3   : > { %3469 = vst [vmem:[%s6333_s23 + $0x108] sm:$0xff] %v3371_v62  ;;  %3470 = vst.msk [vmem:[%s6333_s23 + $0x110] sm:$0xff] %vm2474_vm2, %v3372_v0  ;;  %v3013_v4 = vmul.f32 %v4164_v12, %v7121_v34  ;;  %v3014_v29 = vmul.f32 %v4164_v12, %v7122_v5  ;;  %v3015_v38 = vmul.f32 %v4164_v12, %v7123_v22  ;;  %v4166_v21 = vpop.eup %4165  ;;  %4169 = vrsqrt.f32 %v2954_v40 }
 0x5b4   : > { %v3191_v35 = vmul.f32 %v7124_v42, %v3009_v39  ;;  %v3192_v53 = vmul.f32 %v7124_v42, %v3010_v63  ;;  %v3193_v27 = vmul.f32 %v7124_v42, %v3011_v7  ;;  %v3194_v56 = vmul.f32 %v7124_v42, %v3012_v52  ;;  %v7129_v39 = vld [vmem:[#allocation28_spill] sm:$0xff]  ;;  %v7130_v63 = vld [vmem:[#allocation71_spill] sm:$0xff] }
 0x5b5   : > { %v3195_v23 = vmul.f32 %v7124_v42, %v3013_v4  ;;  %v3196_v18 = vmul.f32 %v7124_v42, %v3014_v29  ;;  %v3197_v30 = vmul.f32 %v7124_v42, %v3015_v38  ;;  %v3016_v26 = vmul.f32 %v4166_v21, %v7126_v16  ;;  %v7131_v4 = vld [vmem:[#allocation86_spill] sm:$0xff] }
 0x5b6   : > { %v3373_v6 = vadd.f32 %v7125_v17, %v3191_v35  ;;  %v3374_v24 = vadd.f32 %v7125_v17, %v3192_v53  ;;  %v3375_v8 = vadd.f32 %v7125_v17, %v3193_v27  ;;  %v3376_v49 = vadd.f32 %v7125_v17, %v3194_v56  ;;  %v7132_v29 = vld [vmem:[#allocation58_spill] sm:$0xff]  ;;  %v7133_v56 = vld [vmem:[#allocation29_spill] sm:$0xff] }
 0x5b7   : > { %v3377_v60 = vadd.f32 %v7125_v17, %v3195_v23  ;;  %v3378_v1 = vadd.f32 %v7125_v17, %v3196_v18  ;;  %v3379_v47 = vadd.f32 %v7125_v17, %v3197_v30  ;;  %v3017_v15 = vmul.f32 %v4166_v21, %v7127_v36  ;;  %v4168_v0 = vpop.eup %4167  ;;  %v7134_v23 = vld [vmem:[#allocation31_spill] sm:$0xff] }
 0x5b8   : > { %3471 = vst [vmem:[%s6333_s23 + $0x118] sm:$0xff] %v3373_v6  ;;  %3472 = vst [vmem:[%s6333_s23 + $0x120] sm:$0xff] %v3374_v24  ;;  %v3018_v12 = vmul.f32 %v4166_v21, %v7128_v44  ;;  %v3019_v55 = vmul.f32 %v4166_v21, %v5990_v19  ;;  %v3020_v62 = vmul.f32 %v4166_v21, %v5997_v58  ;;  %v2941_v7 = vmul.f32 0.0012755102, %v2895_v41  ;;  %v7135_v24 = vld [vmem:[#allocation30_spill] sm:$0xff]  ;;  %v7136_v41 = vld [vmem:[#allocation73_spill] sm:$0xff] }
 0x5b9   : > { %3473 = vst [vmem:[%s6333_s23 + $0x128] sm:$0xff] %v3375_v8  ;;  %3474 = vst [vmem:[%s6333_s23 + $0x130] sm:$0xff] %v3376_v49  ;;  %v3021_v33 = vmul.f32 %v4166_v21, %v6007_v25  ;;  %v3022_v3 = vmul.f32 %v4166_v21, %v7129_v39  ;;  %v3198_v61 = vmul.f32 %v7130_v63, %v3016_v26 }
 0x5ba   : > { %3475 = vst [vmem:[%s6333_s23 + $0x138] sm:$0xff] %v3377_v60  ;;  %3476 = vst [vmem:[%s6333_s23 + $0x140] sm:$0xff] %v3378_v1  ;;  %v3199_v28 = vmul.f32 %v7130_v63, %v3017_v15  ;;  %v3200_v52 = vmul.f32 %v7130_v63, %v3018_v12  ;;  %v3201_v58 = vmul.f32 %v7130_v63, %v3019_v55  ;;  %v2955_v16 = vadd.f32 1e-05, %v2941_v7  ;;  %v7137_v12 = vld [vmem:[#allocation32_spill] sm:$0xff] }
 0x5bb   : > { %3477 = vst.msk [vmem:[%s6333_s23 + $0x148] sm:$0xff] %vm2474_vm2, %v3379_v47  ;;  %v3202_v19 = vmul.f32 %v7130_v63, %v3020_v62  ;;  %v3203_v34 = vmul.f32 %v7130_v63, %v3021_v33  ;;  %v3204_v25 = vmul.f32 %v7130_v63, %v3022_v3  ;;  %v3380_v5 = vadd.f32 %v7131_v4, %v3198_v61  ;;  %v2904_v3 = vpop.xlane.xlu0 %2903  ;;  %v7138_v63 = vld [vmem:[#allocation59_spill] sm:$0xff] }
 0x5bc   : > { %v3023_v22 = vmul.f32 %v4168_v0, %v7132_v29  ;;  %v3381_v38 = vadd.f32 %v7131_v4, %v3199_v28  ;;  %v3382_v40 = vadd.f32 %v7131_v4, %v3200_v52  ;;  %v3383_v42 = vadd.f32 %v7131_v4, %v3201_v58  ;;  %v7139_v28 = vld [vmem:[#allocation33_spill] sm:$0xff] }
 0x5bd   : > { %v3384_v35 = vadd.f32 %v7131_v4, %v3202_v19  ;;  %v3385_v53 = vadd.f32 %v7131_v4, %v3203_v34  ;;  %v3386_v27 = vadd.f32 %v7131_v4, %v3204_v25  ;;  %3478 = vst [vmem:[%s6333_s23 + $0x150] sm:$0xff] %v3380_v5  ;;  %v3024_v21 = vmul.f32 %v4168_v0, %v7133_v56  ;;  %v4170_v49 = vpop.eup %4169  ;;  %v7140_v19 = vld [vmem:[#allocation34_spill] sm:$0xff]  ;;  %v7142_v4 = vld [vmem:[#allocation75_spill] sm:$0xff] }
 0x5be   : > { %v3025_v18 = vmul.f32 %v4168_v0, %v7134_v23  ;;  %3479 = vst [vmem:[%s6333_s23 + $0x158] sm:$0xff] %v3381_v38  ;;  %3480 = vst [vmem:[%s6333_s23 + $0x160] sm:$0xff] %v3382_v40  ;;  %v3026_v30 = vmul.f32 %v4168_v0, %v6028_v9  ;;  %v3027_v17 = vmul.f32 %v4168_v0, %v6042_v59  ;;  %4171 = vrsqrt.f32 %v2955_v16  ;;  %v2913_v38 = vpop.xlane.xlu1 %2912 }
 0x5bf   : > { %3481 = vst [vmem:[%s6333_s23 + $0x168] sm:$0xff] %v3383_v42  ;;  %3482 = vst [vmem:[%s6333_s23 + $0x170] sm:$0xff] %v3384_v35  ;;  %v3028_v6 = vmul.f32 %v4168_v0, %v6048_v11  ;;  %v3029_v8 = vmul.f32 %v4168_v0, %v7135_v24  ;;  %v3205_v60 = vmul.f32 %v7136_v41, %v3023_v22  ;;  %v2943_v24 = vmul.f32 0.0012755102, %v2913_v38 }
 0x5c0   : > { %3483 = vst [vmem:[%s6333_s23 + $0x178] sm:$0xff] %v3385_v53  ;;  %3484 = vst.msk [vmem:[%s6333_s23 + $0x180] sm:$0xff] %vm2474_vm2, %v3386_v27  ;;  %v3206_v1 = vmul.f32 %v7136_v41, %v3024_v21  ;;  %v3207_v47 = vmul.f32 %v7136_v41, %v3025_v18  ;;  %v3208_v9 = vmul.f32 %v7136_v41, %v3026_v30  ;;  %v2942_v53 = vmul.f32 0.0012755102, %v2904_v3 }
 0x5c1   : > { %v3209_v59 = vmul.f32 %v7136_v41, %v3027_v17  ;;  %v3210_v11 = vmul.f32 %v7136_v41, %v3028_v6  ;;  %v3211_v26 = vmul.f32 %v7136_v41, %v3029_v8  ;;  %v3387_v36 = vadd.f32 %v6300_v32, %v3205_v60 }
 0x5c2   : > { %v3388_v15 = vadd.f32 %v6300_v32, %v3206_v1  ;;  %v3389_v44 = vadd.f32 %v6300_v32, %v3207_v47  ;;  %v3030_v55 = vmul.f32 %v4170_v49, %v7137_v12  ;;  %v3390_v62 = vadd.f32 %v6300_v32, %v3208_v9  ;;  %v7144_v9 = vld [vmem:[#allocation60_spill] sm:$0xff] }
 0x5c3   : > { %v3391_v0 = vadd.f32 %v6300_v32, %v3209_v59  ;;  %v3392_v33 = vadd.f32 %v6300_v32, %v3210_v11  ;;  %v3393_v39 = vadd.f32 %v6300_v32, %v3211_v26  ;;  %3485 = vst [vmem:[%s6333_s23 + $0x188] sm:$0xff] %v3387_v36  ;;  %v3031_v61 = vmul.f32 %v4170_v49, %v7138_v63  ;;  %v7141_v32 = vld [vmem:[#allocation35_spill] sm:$0xff]  ;;  %v2922_v27 = vpop.xlane.xlu0 %2921  ;;  %v7145_v36 = vld [vmem:[#allocation37_spill] sm:$0xff] }
 0x5c4   : > { %3486 = vst [vmem:[%s6333_s23 + $0x190] sm:$0xff] %v3388_v15  ;;  %3487 = vst [vmem:[%s6333_s23 + $0x198] sm:$0xff] %v3389_v44  ;;  %v3032_v7 = vmul.f32 %v4170_v49, %v6059_v31  ;;  %v3033_v52 = vmul.f32 %v4170_v49, %v7139_v28  ;;  %v3034_v58 = vmul.f32 %v4170_v49, %v6080_v50  ;;  %v2956_v6 = vadd.f32 1e-05, %v2942_v53  ;;  %v7146_v44 = vld [vmem:[#allocation38_spill] sm:$0xff] }
 0x5c5   : > { %3488 = vst [vmem:[%s6333_s23 + $0x1a0] sm:$0xff] %v3390_v62  ;;  %3489 = vst [vmem:[%s6333_s23 + $0x1a8] sm:$0xff] %v3391_v0  ;;  %v3035_v34 = vmul.f32 %v4170_v49, %v7140_v19  ;;  %v3036_v25 = vmul.f32 %v4170_v49, %v7141_v32  ;;  %v3212_v5 = vmul.f32 %v7142_v4, %v3030_v55  ;;  %v2944_v8 = vmul.f32 0.0012755102, %v2922_v27  ;;  %v7147_v55 = vld [vmem:[#allocation39_spill] sm:$0xff] }
 0x5c6   : > { %3490 = vst [vmem:[%s6333_s23 + $0x1b0] sm:$0xff] %v3392_v33  ;;  %3491 = vst.msk [vmem:[%s6333_s23 + $0x1b8] sm:$0xff] %vm2474_vm2, %v3393_v39  ;;  %v3213_v29 = vmul.f32 %v7142_v4, %v3031_v61  ;;  %v3214_v31 = vmul.f32 %v7142_v4, %v3032_v7  ;;  %v3215_v22 = vmul.f32 %v7142_v4, %v3033_v52  ;;  %4173 = vrsqrt.f32 %v2956_v6  ;;  %v7148_v33 = vld [vmem:[#allocation74_spill] sm:$0xff]  ;;  %v7153_v27 = vld [vmem:[#allocation43_spill] sm:$0xff] }
 0x5c7   : > { %v3216_v50 = vmul.f32 %v7142_v4, %v3034_v58  ;;  %v3217_v40 = vmul.f32 %v7142_v4, %v3035_v34  ;;  %v3218_v42 = vmul.f32 %v7142_v4, %v3036_v25  ;;  %v3394_v35 = vadd.f32 %v6304_v20, %v3212_v5  ;;  %v7149_v5 = vld [vmem:[#allocation40_spill] sm:$0xff] }
 0x5c8   : > { %v3395_v56 = vadd.f32 %v6304_v20, %v3213_v29  ;;  %v3396_v21 = vadd.f32 %v6304_v20, %v3214_v31  ;;  %v3397_v23 = vadd.f32 %v6304_v20, %v3215_v22  ;;  %v2931_v49 = vpop.xlane.xlu1 %2930  ;;  %v2957_v41 = vadd.f32 1e-05, %v2943_v24  ;;  %v4172_v47 = vpop.eup %4171  ;;  %v7150_v31 = vld [vmem:[#allocation61_spill] sm:$0xff] }
 0x5c9   : > { %v3398_v18 = vadd.f32 %v6304_v20, %v3216_v50  ;;  %v3399_v30 = vadd.f32 %v6304_v20, %v3217_v40  ;;  %v3400_v17 = vadd.f32 %v6304_v20, %v3218_v42  ;;  %3492 = vst [vmem:[%s6333_s23 + $0x1c0] sm:$0xff] %v3394_v35  ;;  %v2958_v60 = vadd.f32 1e-05, %v2944_v8  ;;  %v7143_v20 = vld [vmem:[#allocation36_spill] sm:$0xff]  ;;  %v7151_v42 = vld [vmem:[#allocation41_spill] sm:$0xff]  ;;  %v7152_v35 = vld [vmem:[#allocation42_spill] sm:$0xff] }
 0x5ca   : > { %3493 = vst [vmem:[%s6333_s23 + $0x1c8] sm:$0xff] %v3395_v56  ;;  %3494 = vst [vmem:[%s6333_s23 + $0x1d0] sm:$0xff] %v3396_v21  ;;  %4175 = vrsqrt.f32 %v2957_v41  ;;  %v2945_v1 = vmul.f32 0.0012755102, %v2931_v49  ;;  %v3037_v16 = vmul.f32 %v4172_v47, %v7143_v20  ;;  %v3038_v59 = vmul.f32 %v4172_v47, %v7144_v9  ;;  %v7154_v21 = vld [vmem:[#allocation77_spill] sm:$0xff]  ;;  %v7155_v8 = vld [vmem:[#allocation44_spill] sm:$0xff] }
 0x5cb   : > { %3495 = vst [vmem:[%s6333_s23 + $0x1d8] sm:$0xff] %v3397_v23  ;;  %3496 = vst [vmem:[%s6333_s23 + $0x1e0] sm:$0xff] %v3398_v18  ;;  %4177 = vrsqrt.f32 %v2958_v60  ;;  %v3039_v11 = vmul.f32 %v4172_v47, %v6100_v14  ;;  %v3040_v26 = vmul.f32 %v4172_v47, %v6106_v43  ;;  %v3041_v15 = vmul.f32 %v4172_v47, %v7145_v36 }
 0x5cc   : > { %3497 = vst [vmem:[%s6333_s23 + $0x1e8] sm:$0xff] %v3399_v30  ;;  %3498 = vst.msk [vmem:[%s6333_s23 + $0x1f0] sm:$0xff] %vm2474_vm2, %v3400_v17  ;;  %v3042_v12 = vmul.f32 %v4172_v47, %v7146_v44  ;;  %v3043_v62 = vmul.f32 %v4172_v47, %v7147_v55  ;;  %v2959_v0 = vadd.f32 1e-05, %v2945_v1  ;;  %v3219_v39 = vmul.f32 %v7148_v33, %v3037_v16  ;;  %v7158_v55 = vld [vmem:[#allocation47_spill] sm:$0xff] }
 0x5cd   : > { %v3220_v3 = vmul.f32 %v7148_v33, %v3038_v59  ;;  %v3221_v63 = vmul.f32 %v7148_v33, %v3039_v11  ;;  %v3222_v14 = vmul.f32 %v7148_v33, %v3040_v26  ;;  %v3223_v43 = vmul.f32 %v7148_v33, %v3041_v15  ;;  %v7156_v59 = vld [vmem:[#allocation63_spill] sm:$0xff]  ;;  %v7157_v26 = vld [vmem:[#allocation45_spill] sm:$0xff] }
 0x5ce   : > { %v3224_v61 = vmul.f32 %v7148_v33, %v3042_v12  ;;  %v3225_v7 = vmul.f32 %v7148_v33, %v3043_v62  ;;  %v3401_v28 = vadd.f32 %v6302_v13, %v3219_v39  ;;  %4179 = vrsqrt.f32 %v2959_v0  ;;  %v7159_v62 = vld [vmem:[#allocation76_spill] sm:$0xff]  ;;  %v7160_v39 = vld [vmem:[#allocation46_spill] sm:$0xff] }
 0x5cf   : > { %v3402_v52 = vadd.f32 %v6302_v13, %v3220_v3  ;;  %v3403_v58 = vadd.f32 %v6302_v13, %v3221_v63  ;;  %v3404_v19 = vadd.f32 %v6302_v13, %v3222_v14  ;;  %v3405_v32 = vadd.f32 %v6302_v13, %v3223_v43 }
 0x5d0   : > { %v4174_v34 = vpop.eup %4173  ;;  %v3406_v25 = vadd.f32 %v6302_v13, %v3224_v61  ;;  %v3407_v4 = vadd.f32 %v6302_v13, %v3225_v7  ;;  %3499 = vst [vmem:[%s6333_s23 + $0x1f8] sm:$0xff] %v3401_v28  ;;  %v7161_v28 = vld [vmem:[#allocation48_spill] sm:$0xff] }
 0x5d1   : > { %3500 = vst [vmem:[%s6333_s23 + $0x200] sm:$0xff] %v3402_v52  ;;  %3501 = vst [vmem:[%s6333_s23 + $0x208] sm:$0xff] %v3403_v58  ;;  %v3044_v29 = vmul.f32 %v4174_v34, %v7149_v5  ;;  %v3045_v22 = vmul.f32 %v4174_v34, %v7150_v31  ;;  %v3046_v50 = vmul.f32 %v4174_v34, %v6141_v51 }
 0x5d2   : > { %3502 = vst [vmem:[%s6333_s23 + $0x210] sm:$0xff] %v3404_v19  ;;  %v3047_v38 = vmul.f32 %v4174_v34, %v6151_v37  ;;  %3503 = vst [vmem:[%s6333_s23 + $0x218] sm:$0xff] %v3405_v32  ;;  %v3048_v13 = vmul.f32 %v4174_v34, %v7151_v42  ;;  %v3049_v53 = vmul.f32 %v4174_v34, %v7152_v35  ;;  %v7165_v42 = vld [vmem:[#allocation79_spill] sm:$0xff] }
 0x5d3   : > { %3504 = vst [vmem:[%s6333_s23 + $0x220] sm:$0xff] %v3406_v25  ;;  %3505 = vst.msk [vmem:[%s6333_s23 + $0x228] sm:$0xff] %vm2474_vm2, %v3407_v4  ;;  %v3050_v56 = vmul.f32 %v4174_v34, %v7153_v27  ;;  %v3226_v23 = vmul.f32 %v7154_v21, %v3044_v29  ;;  %v3227_v18 = vmul.f32 %v7154_v21, %v3045_v22  ;;  %v7162_v4 = vld [vmem:[#allocation49_spill] sm:$0xff]  ;;  %v7166_v27 = vld [vmem:[#allocation50_spill] sm:$0xff] }
 0x5d4   : > { %v4176_v40 = vpop.eup %4175  ;;  %v3228_v51 = vmul.f32 %v7154_v21, %v3046_v50  ;;  %v3229_v37 = vmul.f32 %v7154_v21, %v3047_v38  ;;  %v3230_v17 = vmul.f32 %v7154_v21, %v3048_v13  ;;  %v3231_v6 = vmul.f32 %v7154_v21, %v3049_v53  ;;  %v7163_v22 = vld [vmem:[#allocation53_spill] sm:$0xff]  ;;  %v7164_v38 = vld [vmem:[#allocation51_spill] sm:$0xff]  ;;  %v3331_v53 = vpop.permute.xlu1 %3330 }
 0x5d5   : > { %v4178_v30 = vpop.eup %4177  ;;  %v3232_v24 = vmul.f32 %v7154_v21, %v3050_v56  ;;  %v3051_v49 = vmul.f32 %v4176_v40, %v7155_v8  ;;  %v3408_v41 = vadd.f32 %v6308_v45, %v3226_v23  ;;  %v3409_v60 = vadd.f32 %v6308_v45, %v3227_v18 }
 0x5d6   : > { %v3410_v1 = vadd.f32 %v6308_v45, %v3228_v51  ;;  %v3411_v47 = vadd.f32 %v6308_v45, %v3229_v37  ;;  %v3412_v20 = vadd.f32 %v6308_v45, %v3230_v17  ;;  %v3413_v16 = vadd.f32 %v6308_v45, %v3231_v6  ;;  %v7167_v6 = vld [vmem:[#allocation52_spill] sm:$0xff] }
 0x5d7   : > { %v3414_v9 = vadd.f32 %v6308_v45, %v3232_v24  ;;  %v3052_v11 = vmul.f32 %v4176_v40, %v7156_v59  ;;  %3506 = vst [vmem:[%s6333_s23 + $0x230] sm:$0xff] %v3408_v41  ;;  %3507 = vst [vmem:[%s6333_s23 + $0x238] sm:$0xff] %v3409_v60  ;;  %v3053_v36 = vmul.f32 %v4176_v40, %v7157_v26  ;;  %v7168_v41 = vld [vmem:[#allocation62_spill] sm:$0xff] }
 0x5d8   : > { %3508 = vst [vmem:[%s6333_s23 + $0x240] sm:$0xff] %v3410_v1  ;;  %3509 = vst [vmem:[%s6333_s23 + $0x248] sm:$0xff] %v3411_v47  ;;  %v3054_v15 = vmul.f32 %v4176_v40, %v6196_v57  ;;  %v3055_v44 = vmul.f32 %v4176_v40, %v6200_v2  ;;  %v3056_v12 = vmul.f32 %v4176_v40, %v6221_v46  ;;  %v4180_v14 = vpop.eup %4179  ;;  %v7169_v1 = vld [vmem:[#allocation55_spill] sm:$0xff] }
 0x5d9   : > { %3510 = vst [vmem:[%s6333_s23 + $0x250] sm:$0xff] %v3412_v20  ;;  %3511 = vst [vmem:[%s6333_s23 + $0x258] sm:$0xff] %v3413_v16  ;;  %v3057_v45 = vmul.f32 %v4176_v40, %v7158_v55  ;;  %v3233_v0 = vmul.f32 %v7159_v62, %v3051_v49  ;;  %v3234_v33 = vmul.f32 %v7159_v62, %v3052_v11  ;;  %v7170_v20 = vld [vmem:[#allocation54_spill] sm:$0xff]  ;;  %v7172_v11 = vld [vmem:[#allocation64_spill] sm:$0xff] }
 0x5da   : > { %3512 = vst.msk [vmem:[%s6333_s23 + $0x260] sm:$0xff] %vm2474_vm2, %v3414_v9  ;;  %v3058_v3 = vmul.f32 %v4178_v30, %v7160_v39  ;;  %v3235_v57 = vmul.f32 %v7159_v62, %v3053_v36  ;;  %v3236_v2 = vmul.f32 %v7159_v62, %v3054_v15  ;;  %v3237_v46 = vmul.f32 %v7159_v62, %v3055_v44  ;;  %v7171_v9 = vld [vmem:[#allocation56_spill] sm:$0xff]  ;;  %v7173_v36 = vld [vmem:[#allocation78_spill] sm:$0xff]  ;;  %v3336_v44 = vpop.permute.xlu0 %3335 }
 0x5db   : > { %v3238_v63 = vmul.f32 %v7159_v62, %v3056_v12  ;;  %v3239_v43 = vmul.f32 %v7159_v62, %v3057_v45  ;;  %v3415_v61 = vadd.f32 %v6306_v54, %v3233_v0  ;;  %v3416_v7 = vadd.f32 %v6306_v54, %v3234_v33 }
 0x5dc   : > { %v3059_v52 = vmul.f32 %v4178_v30, %v7161_v28  ;;  %v3417_v58 = vadd.f32 %v6306_v54, %v3235_v57  ;;  %v3418_v19 = vadd.f32 %v6306_v54, %v3236_v2  ;;  %v3419_v34 = vadd.f32 %v6306_v54, %v3237_v46 }
 0x5dd   : > { %v3420_v32 = vadd.f32 %v6306_v54, %v3238_v63  ;;  %v3421_v25 = vadd.f32 %v6306_v54, %v3239_v43  ;;  %3513 = vst [vmem:[%s6333_s23 + $0x268] sm:$0xff] %v3415_v61  ;;  %3514 = vst [vmem:[%s6333_s23 + $0x270] sm:$0xff] %v3416_v7  ;;  %v3060_v5 = vmul.f32 %v4178_v30, %v7162_v4 }
 0x5de   : > { %v3061_v29 = vmul.f32 %v4178_v30, %v6233_v48  ;;  %v3062_v31 = vmul.f32 %v4178_v30, %v6240_v10  ;;  %3515 = vst [vmem:[%s6333_s23 + $0x278] sm:$0xff] %v3417_v58  ;;  %3516 = vst [vmem:[%s6333_s23 + $0x280] sm:$0xff] %v3418_v19  ;;  %v3063_v50 = vmul.f32 %v4178_v30, %v7163_v22 }
 0x5df   : > { %3517 = vst [vmem:[%s6333_s23 + $0x288] sm:$0xff] %v3419_v34  ;;  %3518 = vst [vmem:[%s6333_s23 + $0x290] sm:$0xff] %v3420_v32  ;;  %v3064_v40 = vmul.f32 %v4178_v30, %v7164_v38  ;;  %v3240_v13 = vmul.f32 %v7165_v42, %v3058_v3  ;;  %v3241_v54 = vmul.f32 %v7165_v42, %v3059_v52 }
 0x5e0   : > { %3519 = vst.msk [vmem:[%s6333_s23 + $0x298] sm:$0xff] %vm2474_vm2, %v3421_v25  ;;  %v3242_v35 = vmul.f32 %v7165_v42, %v3060_v5  ;;  %v3243_v48 = vmul.f32 %v7165_v42, %v3061_v29  ;;  %v3244_v10 = vmul.f32 %v7165_v42, %v3062_v31  ;;  %v3065_v56 = vmul.f32 %v4180_v14, %v7166_v27 }
 0x5e1   : > { %v3245_v21 = vmul.f32 %v7165_v42, %v3063_v50  ;;  %v3246_v23 = vmul.f32 %v7165_v42, %v3064_v40  ;;  %v3422_v18 = vadd.f32 %v3331_v53, %v3240_v13  ;;  %v3423_v51 = vadd.f32 %v3331_v53, %v3241_v54 }
 0x5e2   : > { %v3424_v37 = vadd.f32 %v3331_v53, %v3242_v35  ;;  %v3425_v30 = vadd.f32 %v3331_v53, %v3243_v48  ;;  %v3426_v17 = vadd.f32 %v3331_v53, %v3244_v10  ;;  %v3066_v24 = vmul.f32 %v4180_v14, %v7167_v6 }
 0x5e3   : > { %v3427_v8 = vadd.f32 %v3331_v53, %v3245_v21  ;;  %v3428_v49 = vadd.f32 %v3331_v53, %v3246_v23  ;;  %3520 = vst [vmem:[%s6333_s23 + $0x2a0] sm:$0xff] %v3422_v18  ;;  %3521 = vst [vmem:[%s6333_s23 + $0x2a8] sm:$0xff] %v3423_v51  ;;  %v3067_v60 = vmul.f32 %v4180_v14, %v7168_v41 }
 0x5e4   : > { %v3068_v47 = vmul.f32 %v4180_v14, %v7169_v1  ;;  %3522 = vst [vmem:[%s6333_s23 + $0x2b0] sm:$0xff] %v3424_v37  ;;  %3523 = vst [vmem:[%s6333_s23 + $0x2b8] sm:$0xff] %v3425_v30  ;;  %v3069_v16 = vmul.f32 %v4180_v14, %v7170_v20  ;;  %v3070_v59 = vmul.f32 %v4180_v14, %v7171_v9 }
 0x5e5   : > { %3524 = vst [vmem:[%s6333_s23 + $0x2c0] sm:$0xff] %v3426_v17  ;;  %v3071_v26 = vmul.f32 %v4180_v14, %v7172_v11  ;;  %v3247_v15 = vmul.f32 %v7173_v36, %v3065_v56  ;;  %3525 = vst [vmem:[%s6333_s23 + $0x2c8] sm:$0xff] %v3427_v8  ;;  %v3248_v12 = vmul.f32 %v7173_v36, %v3066_v24 }
 0x5e6   : > { %3526 = vst.msk [vmem:[%s6333_s23 + $0x2d0] sm:$0xff] %vm2474_vm2, %v3428_v49  ;;  %v3249_v55 = vmul.f32 %v7173_v36, %v3067_v60  ;;  %v3250_v45 = vmul.f32 %v7173_v36, %v3068_v47  ;;  %v3251_v62 = vmul.f32 %v7173_v36, %v3069_v16  ;;  %v3252_v0 = vmul.f32 %v7173_v36, %v3070_v59 }
 0x5e7   : > { %v3253_v33 = vmul.f32 %v7173_v36, %v3071_v26  ;;  %v3429_v39 = vadd.f32 %v3336_v44, %v3247_v15  ;;  %v3430_v3 = vadd.f32 %v3336_v44, %v3248_v12 }
 0x5e8   : > { %v3431_v57 = vadd.f32 %v3336_v44, %v3249_v55  ;;  %v3432_v2 = vadd.f32 %v3336_v44, %v3250_v45  ;;  %v3433_v46 = vadd.f32 %v3336_v44, %v3251_v62  ;;  %v3434_v63 = vadd.f32 %v3336_v44, %v3252_v0 }
 0x5e9   : > { %v3435_v14 = vadd.f32 %v3336_v44, %v3253_v33  ;;  %3527 = vst [vmem:[%s6333_s23 + $0x2d8] sm:$0xff] %v3429_v39  ;;  %3528 = vst [vmem:[%s6333_s23 + $0x2e0] sm:$0xff] %v3430_v3 }
 0x5ea   : > { %3529 = vst [vmem:[%s6333_s23 + $0x2e8] sm:$0xff] %v3431_v57  ;;  %3530 = vst [vmem:[%s6333_s23 + $0x2f0] sm:$0xff] %v3432_v2 }
 0x5eb   : > { %3531 = vst [vmem:[%s6333_s23 + $0x2f8] sm:$0xff] %v3433_v46  ;;  %3532 = vst [vmem:[%s6333_s23 + $0x300] sm:$0xff] %v3434_v63 }
 0x5ec   : > { %3533 = vst.msk [vmem:[%s6333_s23 + $0x308] sm:$0xff] %vm2474_vm2, %v3435_v14 }
 0x5ed   : > { %4364 = shalt.err (!%p4361_p3)
}
 0x5ee   : > { %s4365_s24 = scalar_lea.hbm %s6702_s22, 12544  ;;  %s4369_s23 = scalar_lea.hbm %s7174_s0, 50176 }
 0x5ef   : > { %p4366_p0 = scmp.ne.s32.totalorder %s6702_s22, %s4365_s24  ;;  %p4370_p4 = scmp.lt.u32.totalorder %s6702_s22, %s7174_s0 }
 0x5f0   : > { %p4371_p9 = scmp.lt.u32.totalorder %s4369_s23, %s4365_s24  ;;  %p4373_p6 = scmp.lt.u32.totalorder %s4365_s24, %s6702_s22 }
 0x5f1   : > { %p4367_p5 = pnand %p4366_p0, %p7175_p10 }
 0x5f2   : > { %p4372_p2 = por %p4371_p9, %p4370_p4 }
 0x5f3   : > { %p4368_p8 = pneg %p4367_p5 }
 0x5f4   : > { %p4374_p1 = por %p4373_p6, %p4372_p2 }
 0x5f6   : > { %p4375_p11 = pnand %p4374_p1, %p4368_p8 }
 0x5f8   : > { %4378 = shalt.err (!%p4375_p11)
}
 0x5f9   : > { %s4445_s27 = smov 896   ;;  %s4446_s1 = smov 56  }
 0x5fa   : > { %4050 = dma.vmem_to_hbm [thread:$0]  (%p7175_p10), %s6704_s13, 12544, %s6702_s22, %s3535_s26, %s4445_s27, %s4445_s27, %s4446_s1  }
 0x5fb PF: > { %p4088_p12 = scmp.ge.s32.totalorder %s4429_s12, 2  ;;  %s3564_s9 = sand.u32 1, %s4417_s30  }
 0x5fc   : > { %p7176_p13 = scmp.ne.s32.totalorder %s6909_s29, 0  ;;  %s3565_s14 = scalar_lea.sflag [#allocation4], %s3564_s9 }
 0x5fe   : > { %p4073_p7 = pnand %p4088_p12, %p7176_p13 }
 0x600   : > { %4412 = dma.done.wait (!%p4073_p7), %s3565_s14, 12544  }
 0x601   : > { %4414 = vsyncadd (!%p4073_p7), %s3565_s14, 4294954752  ;;  %p25_p3 = scmp.ge.s32.totalorder %s4653_s19, 6   ;;  %s7177_s30 = smov %s4421_s10 }
 0x602   : > { %s7178_s10 = smov %s4425_s11  ;;  %s7179_s11 = smov %s4665_s17 }
 0x603   : > { %s7180_s12 = smov %s4653_s19  ;;  %27 = sbr.rel (!%p25_p3) target bundleno = 12 (0xc), region = 128 }
 0x60a   :  { %3570 = vsyncpa [#allocation3], 1 }
 0x60b   :  { %3572 = vsyncpa [#allocation3 + $0x1], 1 }
 0x60c   :  { %3573 = vsyncpa [#allocation6], 1 }
 0x60d   :  { %3574 = vsyncpa [#allocation9], 1 }
 0x60e   :  { %3575 = vsyncpa [#allocation12], 1 }
 0x60f   :  { %3577 = vsyncpa [#allocation12 + $0x1], 1 }
 0x610   :  { %3578 = vsyncpa [#allocation4], 1 }
 0x611   :  { %3580 = vsyncpa [#allocation4 + $0x1], 1 }

</bundles_post_ra>
